<compile_context>
chip_gen: v6e
topology: v6e:2x2x1
jax: 0.10.0
libtpu: 0.0.40
codegen_flags: <defaults>
</compile_context>

<pallas_src>
import jax
import jax.numpy as jnp
from jax import lax
from jax.experimental import pallas as pl
from jax.experimental.pallas import tpu as pltpu

EPS = 1e-5


def bottleneck_kernel(x_ref, w1_ref, s1_ref, b1_ref,
                      w2_ref, s2_ref, b2_ref,
                      w3_ref, s3_ref, b3_ref,
                      o_ref, pad_ref):
    """Fused Bottleneck forward for one NHWC image (eval-mode BN folded).

    pad_ref: VMEM scratch (3, (H+2)*W, Cmid) bf16.  Plane dx in {0,1,2}
    holds the conv1 output shifted by (dx-1) along W (zero at the W edges),
    with one zero image-row of padding at rows [0, W) and [(H+1)*W, (H+2)*W).
    The 3x3 conv is then 9 matmuls whose LHS are contiguous, aligned row
    slices pad_ref[dx, dy*W : dy*W + H*W, :].
    """
    _, H, W, Cin = x_ref.shape
    Cmid = w1_ref.shape[1]
    Cout = w3_ref.shape[1]
    HW = H * W
    f32 = jnp.float32
    bf16 = jnp.bfloat16

    # ---- conv1 (1x1, no bias) + bn1 + relu: bf16 MXU, f32 accumulate ------
    xb = x_ref[0].reshape(HW, Cin).astype(bf16)
    h1 = jnp.dot(xb, w1_ref[...], preferred_element_type=f32)
    h1 = jnp.maximum(h1 * s1_ref[...] + b1_ref[...], 0.0)        # (HW, Cmid) f32

    # ---- build the three dx-shifted copies of h1 (zero cols at W edges) ---
    h1_hwc = h1.reshape(H, W, Cmid)
    zcol = jnp.zeros((H, 1, Cmid), f32)
    t_left = jnp.concatenate([zcol, h1_hwc[:, :W - 1, :]], axis=1)   # in[h, w-1]
    t_right = jnp.concatenate([h1_hwc[:, 1:, :], zcol], axis=1)      # in[h, w+1]

    # Zero only the one-row top/bottom halo (cheap and megacore-safe: no
    # state carried between grid steps), then write interiors full-width.
    zrows = jnp.zeros((3, W, Cmid), bf16)
    pad_ref[:, 0:W, :] = zrows
    pad_ref[:, W + HW:(H + 2) * W, :] = zrows
    pad_ref[0, W:W + HW, :] = t_left.reshape(HW, Cmid).astype(bf16)
    pad_ref[1, W:W + HW, :] = h1.astype(bf16)
    pad_ref[2, W:W + HW, :] = t_right.reshape(HW, Cmid).astype(bf16)

    # ---- conv2 (3x3, stride 1, pad 1, no bias) + bn2 + relu ---------------
    acc = jnp.zeros((HW, Cmid), f32)
    for dy in range(3):
        for dx in range(3):
            lhs = pad_ref[dx, dy * W:dy * W + HW, :]             # aligned slice
            acc += jnp.dot(lhs, w2_ref[dy, dx], preferred_element_type=f32)
    h2 = jnp.maximum(acc * s2_ref[...] + b2_ref[...], 0.0)       # (HW, Cmid) f32

    # ---- conv3 (1x1, no bias) + bn3 ---------------------------------------
    h3 = jnp.dot(h2.astype(bf16), w3_ref[...], preferred_element_type=f32)
    h3 = h3 * s3_ref[...] + b3_ref[...]                          # (HW, Cout) f32

    # ---- residual add (re-read x_ref here, keep it out of live ranges) ----
    res = x_ref[0].reshape(HW, Cout)
    out = jnp.maximum(h3 + res, 0.0)
    o_ref[0] = out.reshape(H, W, Cout).astype(o_ref.dtype)


def bottleneck_forward(x_nchw, w1, s1, b1, w2, s2, b2, w3, s3, b3):
    N, Cin, H, W = x_nchw.shape
    Cmid = w1.shape[1]
    Cout = w3.shape[1]
    assert Cin == Cout, "downsample is None => inplanes must equal 4*outplanes"

    # NCHW -> NHWC for the kernel (module interface is NCHW).
    # TODO(synk): in an NHWC pipeline these two relayout passes disappear.
    x = jnp.transpose(x_nchw, (0, 2, 3, 1))

    def full_spec(a):
        r = len(a.shape)
        return pl.BlockSpec(a.shape, lambda n, _r=r: (0,) * _r)

    out_nhwc = pl.pallas_call(
        bottleneck_kernel,
        out_shape=jax.ShapeDtypeStruct((N, H, W, Cout), x.dtype),
        grid_spec=pltpu.PrefetchScalarGridSpec(
            num_scalar_prefetch=0,
            grid=(N,),
            in_specs=[
                pl.BlockSpec((1, H, W, Cin), lambda n: (n, 0, 0, 0)),
                full_spec(w1), full_spec(s1), full_spec(b1),
                full_spec(w2), full_spec(s2), full_spec(b2),
                full_spec(w3), full_spec(s3), full_spec(b3),
            ],
            out_specs=pl.BlockSpec((1, H, W, Cout), lambda n: (n, 0, 0, 0)),
            scratch_shapes=[
                pltpu.VMEM((3, (H + 2) * W, Cmid), jnp.bfloat16),
            ],
        ),
        compiler_params=pltpu.CompilerParams(
            # Batch images are independent -> let megacore shard the grid.
            dimension_semantics=("parallel",),
        ),
    )(x, w1, s1, b1, w2, s2, b2, w3, s3, b3)

    return jnp.transpose(out_nhwc, (0, 3, 1, 2))   # back to NCHW


def make_params(key, inplanes, outplanes, dtype=jnp.float32):
    """Deterministic synthetic parameters: PyTorch layouts + kernel layouts."""
    keys = jax.random.split(key, 15)
    # PyTorch conv weights: (Cout, Cin, kh, kw), bias=False
    w1_t = 0.1 * jax.random.normal(keys[0], (outplanes, inplanes, 1, 1), dtype)
    w2_t = 0.1 * jax.random.normal(keys[1], (outplanes, outplanes, 3, 3), dtype)
    w3_t = 0.1 * jax.random.normal(keys[2], (outplanes * 4, outplanes, 1, 1), dtype)

    def bn_params(kg, kb, km, kv, c):
        gamma = 1.0 + 0.1 * jax.random.normal(kg, (c,), dtype)
        beta = 0.1 * jax.random.normal(kb, (c,), dtype)
        mean = 0.1 * jax.random.normal(km, (c,), dtype)
        var = jnp.abs(jax.random.normal(kv, (c,), dtype)) + 0.5
        scale = gamma / jnp.sqrt(var + EPS)
        bias = beta - mean * scale
        return (gamma, beta, mean, var), scale, bias

    bn1, s1, b1 = bn_params(keys[3], keys[4], keys[5], keys[6], outplanes)
    bn2, s2, b2 = bn_params(keys[7], keys[8], keys[9], keys[10], outplanes)
    bn3, s3, b3 = bn_params(keys[11], keys[12], keys[13], keys[14], outplanes * 4)

    # Kernel layouts; weights pre-cast to bf16 (MXU operands), BN params f32.
    #   1x1 convs -> (Cin, Cout); 3x3 conv -> (dy, dx, ci, co).
    w1 = jnp.transpose(w1_t[:, :, 0, 0], (1, 0)).astype(jnp.bfloat16)
    w2 = jnp.transpose(w2_t, (2, 3, 1, 0)).astype(jnp.bfloat16)
    w3 = jnp.transpose(w3_t[:, :, 0, 0], (1, 0)).astype(jnp.bfloat16)

    kernel_params = (w1, s1.reshape(1, -1), b1.reshape(1, -1),
                     w2, s2.reshape(1, -1), b2.reshape(1, -1),
                     w3, s3.reshape(1, -1), b3.reshape(1, -1))
    torch_params = (w1_t, w2_t, w3_t, bn1, bn2, bn3)
    return kernel_params, torch_params


def ref_forward(x, w1_t, w2_t, w3_t, bn1, bn2, bn3):
    """Pure-JAX f32 reference matching the PyTorch forward (eval-mode BN)."""
    dn = ('NCHW', 'OIHW', 'NCHW')

    def bnorm(y, p):
        gamma, beta, mean, var = p
        inv = gamma / jnp.sqrt(var + EPS)
        return (y - mean[None, :, None, None]) * inv[None, :, None, None] \
            + beta[None, :, None, None]

    out = lax.conv_general_dilated(x, w1_t, (1, 1), 'VALID', dimension_numbers=dn)
    out = jnp.maximum(bnorm(out, bn1), 0.0)
    out = lax.conv_general_dilated(out, w2_t, (1, 1), ((1, 1), (1, 1)),
                                   dimension_numbers=dn)
    out = jnp.maximum(bnorm(out, bn2), 0.0)
    out = lax.conv_general_dilated(out, w3_t, (1, 1), 'VALID', dimension_numbers=dn)
    out = bnorm(out, bn3)
    return jnp.maximum(out + x, 0.0)


if __name__ == "__main__":
    key = jax.random.PRNGKey(0)
    k_x, k_p = jax.random.split(key)

    outplanes = 8
    inplanes = outplanes * 4          # downsample=None => residual shapes match
    N, H, W = 2, 16, 16

    x = jax.random.normal(k_x, (N, inplanes, H, W), jnp.float32)
    kernel_params, torch_params = make_params(k_p, inplanes, outplanes)

    out = jax.block_until_ready(bottleneck_forward(x, *kernel_params))
    ref = ref_forward(x, *torch_params)

    assert out.shape == (N, inplanes, H, W)
    # bf16 MXU operands with f32 accumulation -> widened tolerance vs f32 ref.
    err = float(jnp.max(jnp.abs(out - ref)))
    assert jnp.allclose(out, ref, rtol=5e-2, atol=5e-2), f"max abs err {err}"

    print("KERNEL_OK")
</pallas_src>

<mosaic_0001>
module attributes {stable_mosaic.version = 11 : i64} {
  func.func @bottleneck_kernel(%arg0: i32, %arg1: memref<1x16x16x32xf32, #tpu.memory_space<vmem>>, %arg2: memref<32x8xbf16, #tpu.memory_space<vmem>>, %arg3: memref<1x8xf32, #tpu.memory_space<vmem>>, %arg4: memref<1x8xf32, #tpu.memory_space<vmem>>, %arg5: memref<3x3x8x8xbf16, #tpu.memory_space<vmem>>, %arg6: memref<1x8xf32, #tpu.memory_space<vmem>>, %arg7: memref<1x8xf32, #tpu.memory_space<vmem>>, %arg8: memref<8x32xbf16, #tpu.memory_space<vmem>>, %arg9: memref<1x32xf32, #tpu.memory_space<vmem>>, %arg10: memref<1x32xf32, #tpu.memory_space<vmem>>, %arg11: memref<1x16x16x32xf32, #tpu.memory_space<vmem>>, %arg12: memref<3x288x8xbf16, #tpu.memory_space<vmem>>) attributes {dimension_semantics = [#tpu.dimension_semantics<parallel>], iteration_bounds = array<i64: 2>, scalar_prefetch = 0 : i64, scratch_operands = 1 : i64, tpu.core_type = #tpu.core_type<tc>, window_params = [{transform_indices = @transform_0, window_bounds = array<i64: 1, 16, 16, 32>}, {pipeline_mode = #tpu.pipeline_mode<synchronous>, transform_indices = @transform_1, window_bounds = array<i64: 32, 8>}, {pipeline_mode = #tpu.pipeline_mode<synchronous>, transform_indices = @transform_2, window_bounds = array<i64: 1, 8>}, {pipeline_mode = #tpu.pipeline_mode<synchronous>, transform_indices = @transform_3, window_bounds = array<i64: 1, 8>}, {pipeline_mode = #tpu.pipeline_mode<synchronous>, transform_indices = @transform_4, window_bounds = array<i64: 3, 3, 8, 8>}, {pipeline_mode = #tpu.pipeline_mode<synchronous>, transform_indices = @transform_5, window_bounds = array<i64: 1, 8>}, {pipeline_mode = #tpu.pipeline_mode<synchronous>, transform_indices = @transform_6, window_bounds = array<i64: 1, 8>}, {pipeline_mode = #tpu.pipeline_mode<synchronous>, transform_indices = @transform_7, window_bounds = array<i64: 8, 32>}, {pipeline_mode = #tpu.pipeline_mode<synchronous>, transform_indices = @transform_8, window_bounds = array<i64: 1, 32>}, {pipeline_mode = #tpu.pipeline_mode<synchronous>, transform_indices = @transform_9, window_bounds = array<i64: 1, 32>}, {transform_indices = @transform_10, window_bounds = array<i64: 1, 16, 16, 32>}]} {
    %c0 = arith.constant 0 : index
    %c0_0 = arith.constant 0 : index
    %c0_1 = arith.constant 0 : index
    %c0_2 = arith.constant 0 : index
    %0 = vector.load %arg1[%c0, %c0_0, %c0_1, %c0_2] : memref<1x16x16x32xf32, #tpu.memory_space<vmem>>, vector<1x16x16x32xf32>
    %1 = vector.shape_cast %0 : vector<1x16x16x32xf32> to vector<16x16x32xf32>
    %2 = vector.shape_cast %1 : vector<16x16x32xf32> to vector<256x32xf32>
    %3 = arith.truncf %2 : vector<256x32xf32> to vector<256x32xbf16>
    %c0_3 = arith.constant 0 : index
    %c0_4 = arith.constant 0 : index
    %4 = vector.load %arg2[%c0_3, %c0_4] : memref<32x8xbf16, #tpu.memory_space<vmem>>, vector<32x8xbf16>
    %cst = arith.constant dense<0.000000e+00> : vector<256x8xf32>
    %5 = tpu.matmul %3, %4, %cst {dimension_numbers = #tpu.dot_dimension_numbers<[1], [0], [0], [1], [0, 0, 1, 1], [], []>} : vector<256x32xbf16>, vector<32x8xbf16>, vector<256x8xf32> -> vector<256x8xf32>
    %c0_5 = arith.constant 0 : index
    %c0_6 = arith.constant 0 : index
    %6 = vector.load %arg3[%c0_5, %c0_6] : memref<1x8xf32, #tpu.memory_space<vmem>>, vector<1x8xf32>
    %7 = vector.broadcast %6 : vector<1x8xf32> to vector<256x8xf32>
    %8 = arith.mulf %5, %7 : vector<256x8xf32>
    %c0_7 = arith.constant 0 : index
    %c0_8 = arith.constant 0 : index
    %9 = vector.load %arg4[%c0_7, %c0_8] : memref<1x8xf32, #tpu.memory_space<vmem>>, vector<1x8xf32>
    %10 = vector.broadcast %9 : vector<1x8xf32> to vector<256x8xf32>
    %11 = arith.addf %8, %10 : vector<256x8xf32>
    %cst_9 = arith.constant 0.000000e+00 : f32
    %12 = vector.broadcast %cst_9 : f32 to vector<256x8xf32>
    %13 = arith.maximumf %11, %12 : vector<256x8xf32>
    %14 = vector.shape_cast %13 : vector<256x8xf32> to vector<16x16x8xf32>
    %cst_10 = arith.constant 0.000000e+00 : f32
    %15 = vector.broadcast %cst_10 : f32 to vector<16x1x8xf32>
    %16 = vector.extract_strided_slice %14 {offsets = [0, 0, 0], sizes = [16, 15, 8], strides = [1, 1, 1]} : vector<16x16x8xf32> to vector<16x15x8xf32>
    %17 = tpu.concatenate %15, %16 in 1 : vector<16x1x8xf32>, vector<16x15x8xf32> -> vector<16x16x8xf32>
    %18 = vector.extract_strided_slice %14 {offsets = [0, 1, 0], sizes = [16, 15, 8], strides = [1, 1, 1]} : vector<16x16x8xf32> to vector<16x15x8xf32>
    %19 = tpu.concatenate %18, %15 in 1 : vector<16x15x8xf32>, vector<16x1x8xf32> -> vector<16x16x8xf32>
    %cst_11 = arith.constant 0.000000e+00 : bf16
    %20 = vector.broadcast %cst_11 : bf16 to vector<3x16x8xbf16>
    %c0_12 = arith.constant 0 : index
    %c0_13 = arith.constant 0 : index
    %c0_14 = arith.constant 0 : index
    %21 = vector.load %arg12[%c0_12, %c0_13, %c0_14] : memref<3x288x8xbf16, #tpu.memory_space<vmem>>, vector<3x16x8xbf16>
    tpu.vector_store %arg12[%c0_12, %c0_13, %c0_14], %20 {strides = array<i32>} : memref<3x288x8xbf16, #tpu.memory_space<vmem>>, vector<3x16x8xbf16>,
    %c0_15 = arith.constant 0 : index
    %c272 = arith.constant 272 : index
    %c0_16 = arith.constant 0 : index
    %22 = vector.load %arg12[%c0_15, %c272, %c0_16] : memref<3x288x8xbf16, #tpu.memory_space<vmem>>, vector<3x16x8xbf16>
    tpu.vector_store %arg12[%c0_15, %c272, %c0_16], %20 {strides = array<i32>} : memref<3x288x8xbf16, #tpu.memory_space<vmem>>, vector<3x16x8xbf16>,
    %23 = vector.shape_cast %17 : vector<16x16x8xf32> to vector<256x8xf32>
    %24 = arith.truncf %23 : vector<256x8xf32> to vector<256x8xbf16>
    %c0_17 = arith.constant 0 : index
    %c16 = arith.constant 16 : index
    %c0_18 = arith.constant 0 : index
    %25 = vector.load %arg12[%c0_17, %c16, %c0_18] : memref<3x288x8xbf16, #tpu.memory_space<vmem>>, vector<1x256x8xbf16>
    %26 = vector.shape_cast %25 : vector<1x256x8xbf16> to vector<256x8xbf16>
    %27 = vector.shape_cast %24 : vector<256x8xbf16> to vector<1x256x8xbf16>
    tpu.vector_store %arg12[%c0_17, %c16, %c0_18], %27 {strides = array<i32>} : memref<3x288x8xbf16, #tpu.memory_space<vmem>>, vector<1x256x8xbf16>,
    %28 = arith.truncf %13 : vector<256x8xf32> to vector<256x8xbf16>
    %c1 = arith.constant 1 : index
    %c16_19 = arith.constant 16 : index
    %c0_20 = arith.constant 0 : index
    %29 = vector.load %arg12[%c1, %c16_19, %c0_20] : memref<3x288x8xbf16, #tpu.memory_space<vmem>>, vector<1x256x8xbf16>
    %30 = vector.shape_cast %29 : vector<1x256x8xbf16> to vector<256x8xbf16>
    %31 = vector.shape_cast %28 : vector<256x8xbf16> to vector<1x256x8xbf16>
    tpu.vector_store %arg12[%c1, %c16_19, %c0_20], %31 {strides = array<i32>} : memref<3x288x8xbf16, #tpu.memory_space<vmem>>, vector<1x256x8xbf16>,
    %32 = vector.shape_cast %19 : vector<16x16x8xf32> to vector<256x8xf32>
    %33 = arith.truncf %32 : vector<256x8xf32> to vector<256x8xbf16>
    %c2 = arith.constant 2 : index
    %c16_21 = arith.constant 16 : index
    %c0_22 = arith.constant 0 : index
    %34 = vector.load %arg12[%c2, %c16_21, %c0_22] : memref<3x288x8xbf16, #tpu.memory_space<vmem>>, vector<1x256x8xbf16>
    %35 = vector.shape_cast %34 : vector<1x256x8xbf16> to vector<256x8xbf16>
    %36 = vector.shape_cast %33 : vector<256x8xbf16> to vector<1x256x8xbf16>
    tpu.vector_store %arg12[%c2, %c16_21, %c0_22], %36 {strides = array<i32>} : memref<3x288x8xbf16, #tpu.memory_space<vmem>>, vector<1x256x8xbf16>,
    %cst_23 = arith.constant 0.000000e+00 : f32
    %37 = vector.broadcast %cst_23 : f32 to vector<256x8xf32>
    %c0_24 = arith.constant 0 : index
    %c0_25 = arith.constant 0 : index
    %c0_26 = arith.constant 0 : index
    %38 = vector.load %arg12[%c0_24, %c0_25, %c0_26] : memref<3x288x8xbf16, #tpu.memory_space<vmem>>, vector<1x256x8xbf16>
    %39 = vector.shape_cast %38 : vector<1x256x8xbf16> to vector<256x8xbf16>
    %c0_27 = arith.constant 0 : index
    %c0_28 = arith.constant 0 : index
    %c0_29 = arith.constant 0 : index
    %c0_30 = arith.constant 0 : index
    %40 = vector.load %arg5[%c0_27, %c0_28, %c0_29, %c0_30] : memref<3x3x8x8xbf16, #tpu.memory_space<vmem>>, vector<1x1x8x8xbf16>
    %41 = vector.shape_cast %40 : vector<1x1x8x8xbf16> to vector<8x8xbf16>
    %cst_31 = arith.constant dense<0.000000e+00> : vector<256x8xf32>
    %42 = tpu.matmul %39, %41, %cst_31 {dimension_numbers = #tpu.dot_dimension_numbers<[1], [0], [0], [1], [0, 0, 1, 1], [], []>} : vector<256x8xbf16>, vector<8x8xbf16>, vector<256x8xf32> -> vector<256x8xf32>
    %43 = arith.addf %37, %42 : vector<256x8xf32>
    %c1_32 = arith.constant 1 : index
    %c0_33 = arith.constant 0 : index
    %c0_34 = arith.constant 0 : index
    %44 = vector.load %arg12[%c1_32, %c0_33, %c0_34] : memref<3x288x8xbf16, #tpu.memory_space<vmem>>, vector<1x256x8xbf16>
    %45 = vector.shape_cast %44 : vector<1x256x8xbf16> to vector<256x8xbf16>
    %c0_35 = arith.constant 0 : index
    %c1_36 = arith.constant 1 : index
    %c0_37 = arith.constant 0 : index
    %c0_38 = arith.constant 0 : index
    %46 = vector.load %arg5[%c0_35, %c1_36, %c0_37, %c0_38] : memref<3x3x8x8xbf16, #tpu.memory_space<vmem>>, vector<1x1x8x8xbf16>
    %47 = vector.shape_cast %46 : vector<1x1x8x8xbf16> to vector<8x8xbf16>
    %cst_39 = arith.constant dense<0.000000e+00> : vector<256x8xf32>
    %48 = tpu.matmul %45, %47, %cst_39 {dimension_numbers = #tpu.dot_dimension_numbers<[1], [0], [0], [1], [0, 0, 1, 1], [], []>} : vector<256x8xbf16>, vector<8x8xbf16>, vector<256x8xf32> -> vector<256x8xf32>
    %49 = arith.addf %43, %48 : vector<256x8xf32>
    %c2_40 = arith.constant 2 : index
    %c0_41 = arith.constant 0 : index
    %c0_42 = arith.constant 0 : index
    %50 = vector.load %arg12[%c2_40, %c0_41, %c0_42] : memref<3x288x8xbf16, #tpu.memory_space<vmem>>, vector<1x256x8xbf16>
    %51 = vector.shape_cast %50 : vector<1x256x8xbf16> to vector<256x8xbf16>
    %c0_43 = arith.constant 0 : index
    %c2_44 = arith.constant 2 : index
    %c0_45 = arith.constant 0 : index
    %c0_46 = arith.constant 0 : index
    %52 = vector.load %arg5[%c0_43, %c2_44, %c0_45, %c0_46] : memref<3x3x8x8xbf16, #tpu.memory_space<vmem>>, vector<1x1x8x8xbf16>
    %53 = vector.shape_cast %52 : vector<1x1x8x8xbf16> to vector<8x8xbf16>
    %cst_47 = arith.constant dense<0.000000e+00> : vector<256x8xf32>
    %54 = tpu.matmul %51, %53, %cst_47 {dimension_numbers = #tpu.dot_dimension_numbers<[1], [0], [0], [1], [0, 0, 1, 1], [], []>} : vector<256x8xbf16>, vector<8x8xbf16>, vector<256x8xf32> -> vector<256x8xf32>
    %55 = arith.addf %49, %54 : vector<256x8xf32>
    %c0_48 = arith.constant 0 : index
    %c16_49 = arith.constant 16 : index
    %c0_50 = arith.constant 0 : index
    %56 = vector.load %arg12[%c0_48, %c16_49, %c0_50] : memref<3x288x8xbf16, #tpu.memory_space<vmem>>, vector<1x256x8xbf16>
    %57 = vector.shape_cast %56 : vector<1x256x8xbf16> to vector<256x8xbf16>
    %c1_51 = arith.constant 1 : index
    %c0_52 = arith.constant 0 : index
    %c0_53 = arith.constant 0 : index
    %c0_54 = arith.constant 0 : index
    %58 = vector.load %arg5[%c1_51, %c0_52, %c0_53, %c0_54] : memref<3x3x8x8xbf16, #tpu.memory_space<vmem>>, vector<1x1x8x8xbf16>
    %59 = vector.shape_cast %58 : vector<1x1x8x8xbf16> to vector<8x8xbf16>
    %cst_55 = arith.constant dense<0.000000e+00> : vector<256x8xf32>
    %60 = tpu.matmul %57, %59, %cst_55 {dimension_numbers = #tpu.dot_dimension_numbers<[1], [0], [0], [1], [0, 0, 1, 1], [], []>} : vector<256x8xbf16>, vector<8x8xbf16>, vector<256x8xf32> -> vector<256x8xf32>
    %61 = arith.addf %55, %60 : vector<256x8xf32>
    %c1_56 = arith.constant 1 : index
    %c16_57 = arith.constant 16 : index
    %c0_58 = arith.constant 0 : index
    %62 = vector.load %arg12[%c1_56, %c16_57, %c0_58] : memref<3x288x8xbf16, #tpu.memory_space<vmem>>, vector<1x256x8xbf16>
    %63 = vector.shape_cast %62 : vector<1x256x8xbf16> to vector<256x8xbf16>
    %c1_59 = arith.constant 1 : index
    %c1_60 = arith.constant 1 : index
    %c0_61 = arith.constant 0 : index
    %c0_62 = arith.constant 0 : index
    %64 = vector.load %arg5[%c1_59, %c1_60, %c0_61, %c0_62] : memref<3x3x8x8xbf16, #tpu.memory_space<vmem>>, vector<1x1x8x8xbf16>
    %65 = vector.shape_cast %64 : vector<1x1x8x8xbf16> to vector<8x8xbf16>
    %cst_63 = arith.constant dense<0.000000e+00> : vector<256x8xf32>
    %66 = tpu.matmul %63, %65, %cst_63 {dimension_numbers = #tpu.dot_dimension_numbers<[1], [0], [0], [1], [0, 0, 1, 1], [], []>} : vector<256x8xbf16>, vector<8x8xbf16>, vector<256x8xf32> -> vector<256x8xf32>
    %67 = arith.addf %61, %66 : vector<256x8xf32>
    %c2_64 = arith.constant 2 : index
    %c16_65 = arith.constant 16 : index
    %c0_66 = arith.constant 0 : index
    %68 = vector.load %arg12[%c2_64, %c16_65, %c0_66] : memref<3x288x8xbf16, #tpu.memory_space<vmem>>, vector<1x256x8xbf16>
    %69 = vector.shape_cast %68 : vector<1x256x8xbf16> to vector<256x8xbf16>
    %c1_67 = arith.constant 1 : index
    %c2_68 = arith.constant 2 : index
    %c0_69 = arith.constant 0 : index
    %c0_70 = arith.constant 0 : index
    %70 = vector.load %arg5[%c1_67, %c2_68, %c0_69, %c0_70] : memref<3x3x8x8xbf16, #tpu.memory_space<vmem>>, vector<1x1x8x8xbf16>
    %71 = vector.shape_cast %70 : vector<1x1x8x8xbf16> to vector<8x8xbf16>
    %cst_71 = arith.constant dense<0.000000e+00> : vector<256x8xf32>
    %72 = tpu.matmul %69, %71, %cst_71 {dimension_numbers = #tpu.dot_dimension_numbers<[1], [0], [0], [1], [0, 0, 1, 1], [], []>} : vector<256x8xbf16>, vector<8x8xbf16>, vector<256x8xf32> -> vector<256x8xf32>
    %73 = arith.addf %67, %72 : vector<256x8xf32>
    %c0_72 = arith.constant 0 : index
    %c32 = arith.constant 32 : index
    %c0_73 = arith.constant 0 : index
    %74 = vector.load %arg12[%c0_72, %c32, %c0_73] : memref<3x288x8xbf16, #tpu.memory_space<vmem>>, vector<1x256x8xbf16>
    %75 = vector.shape_cast %74 : vector<1x256x8xbf16> to vector<256x8xbf16>
    %c2_74 = arith.constant 2 : index
    %c0_75 = arith.constant 0 : index
    %c0_76 = arith.constant 0 : index
    %c0_77 = arith.constant 0 : index
    %76 = vector.load %arg5[%c2_74, %c0_75, %c0_76, %c0_77] : memref<3x3x8x8xbf16, #tpu.memory_space<vmem>>, vector<1x1x8x8xbf16>
    %77 = vector.shape_cast %76 : vector<1x1x8x8xbf16> to vector<8x8xbf16>
    %cst_78 = arith.constant dense<0.000000e+00> : vector<256x8xf32>
    %78 = tpu.matmul %75, %77, %cst_78 {dimension_numbers = #tpu.dot_dimension_numbers<[1], [0], [0], [1], [0, 0, 1, 1], [], []>} : vector<256x8xbf16>, vector<8x8xbf16>, vector<256x8xf32> -> vector<256x8xf32>
    %79 = arith.addf %73, %78 : vector<256x8xf32>
    %c1_79 = arith.constant 1 : index
    %c32_80 = arith.constant 32 : index
    %c0_81 = arith.constant 0 : index
    %80 = vector.load %arg12[%c1_79, %c32_80, %c0_81] : memref<3x288x8xbf16, #tpu.memory_space<vmem>>, vector<1x256x8xbf16>
    %81 = vector.shape_cast %80 : vector<1x256x8xbf16> to vector<256x8xbf16>
    %c2_82 = arith.constant 2 : index
    %c1_83 = arith.constant 1 : index
    %c0_84 = arith.constant 0 : index
    %c0_85 = arith.constant 0 : index
    %82 = vector.load %arg5[%c2_82, %c1_83, %c0_84, %c0_85] : memref<3x3x8x8xbf16, #tpu.memory_space<vmem>>, vector<1x1x8x8xbf16>
    %83 = vector.shape_cast %82 : vector<1x1x8x8xbf16> to vector<8x8xbf16>
    %cst_86 = arith.constant dense<0.000000e+00> : vector<256x8xf32>
    %84 = tpu.matmul %81, %83, %cst_86 {dimension_numbers = #tpu.dot_dimension_numbers<[1], [0], [0], [1], [0, 0, 1, 1], [], []>} : vector<256x8xbf16>, vector<8x8xbf16>, vector<256x8xf32> -> vector<256x8xf32>
    %85 = arith.addf %79, %84 : vector<256x8xf32>
    %c2_87 = arith.constant 2 : index
    %c32_88 = arith.constant 32 : index
    %c0_89 = arith.constant 0 : index
    %86 = vector.load %arg12[%c2_87, %c32_88, %c0_89] : memref<3x288x8xbf16, #tpu.memory_space<vmem>>, vector<1x256x8xbf16>
    %87 = vector.shape_cast %86 : vector<1x256x8xbf16> to vector<256x8xbf16>
    %c2_90 = arith.constant 2 : index
    %c2_91 = arith.constant 2 : index
    %c0_92 = arith.constant 0 : index
    %c0_93 = arith.constant 0 : index
    %88 = vector.load %arg5[%c2_90, %c2_91, %c0_92, %c0_93] : memref<3x3x8x8xbf16, #tpu.memory_space<vmem>>, vector<1x1x8x8xbf16>
    %89 = vector.shape_cast %88 : vector<1x1x8x8xbf16> to vector<8x8xbf16>
    %cst_94 = arith.constant dense<0.000000e+00> : vector<256x8xf32>
    %90 = tpu.matmul %87, %89, %cst_94 {dimension_numbers = #tpu.dot_dimension_numbers<[1], [0], [0], [1], [0, 0, 1, 1], [], []>} : vector<256x8xbf16>, vector<8x8xbf16>, vector<256x8xf32> -> vector<256x8xf32>
    %91 = arith.addf %85, %90 : vector<256x8xf32>
    %c0_95 = arith.constant 0 : index
    %c0_96 = arith.constant 0 : index
    %92 = vector.load %arg6[%c0_95, %c0_96] : memref<1x8xf32, #tpu.memory_space<vmem>>, vector<1x8xf32>
    %93 = vector.broadcast %92 : vector<1x8xf32> to vector<256x8xf32>
    %94 = arith.mulf %91, %93 : vector<256x8xf32>
    %c0_97 = arith.constant 0 : index
    %c0_98 = arith.constant 0 : index
    %95 = vector.load %arg7[%c0_97, %c0_98] : memref<1x8xf32, #tpu.memory_space<vmem>>, vector<1x8xf32>
    %96 = vector.broadcast %95 : vector<1x8xf32> to vector<256x8xf32>
    %97 = arith.addf %94, %96 : vector<256x8xf32>
    %cst_99 = arith.constant 0.000000e+00 : f32
    %98 = vector.broadcast %cst_99 : f32 to vector<256x8xf32>
    %99 = arith.maximumf %97, %98 : vector<256x8xf32>
    %100 = arith.truncf %99 : vector<256x8xf32> to vector<256x8xbf16>
    %c0_100 = arith.constant 0 : index
    %c0_101 = arith.constant 0 : index
    %101 = vector.load %arg8[%c0_100, %c0_101] : memref<8x32xbf16, #tpu.memory_space<vmem>>, vector<8x32xbf16>
    %cst_102 = arith.constant dense<0.000000e+00> : vector<256x32xf32>
    %102 = tpu.matmul %100, %101, %cst_102 {dimension_numbers = #tpu.dot_dimension_numbers<[1], [0], [0], [1], [0, 0, 1, 1], [], []>} : vector<256x8xbf16>, vector<8x32xbf16>, vector<256x32xf32> -> vector<256x32xf32>
    %c0_103 = arith.constant 0 : index
    %c0_104 = arith.constant 0 : index
    %103 = vector.load %arg9[%c0_103, %c0_104] : memref<1x32xf32, #tpu.memory_space<vmem>>, vector<1x32xf32>
    %104 = vector.broadcast %103 : vector<1x32xf32> to vector<256x32xf32>
    %105 = arith.mulf %102, %104 : vector<256x32xf32>
    %c0_105 = arith.constant 0 : index
    %c0_106 = arith.constant 0 : index
    %106 = vector.load %arg10[%c0_105, %c0_106] : memref<1x32xf32, #tpu.memory_space<vmem>>, vector<1x32xf32>
    %107 = vector.broadcast %106 : vector<1x32xf32> to vector<256x32xf32>
    %108 = arith.addf %105, %107 : vector<256x32xf32>
    %c0_107 = arith.constant 0 : index
    %c0_108 = arith.constant 0 : index
    %c0_109 = arith.constant 0 : index
    %c0_110 = arith.constant 0 : index
    %109 = vector.load %arg1[%c0_107, %c0_108, %c0_109, %c0_110] : memref<1x16x16x32xf32, #tpu.memory_space<vmem>>, vector<1x16x16x32xf32>
    %110 = vector.shape_cast %109 : vector<1x16x16x32xf32> to vector<16x16x32xf32>
    %111 = vector.shape_cast %110 : vector<16x16x32xf32> to vector<256x32xf32>
    %112 = arith.addf %108, %111 : vector<256x32xf32>
    %cst_111 = arith.constant 0.000000e+00 : f32
    %113 = vector.broadcast %cst_111 : f32 to vector<256x32xf32>
    %114 = arith.maximumf %112, %113 : vector<256x32xf32>
    %115 = vector.shape_cast %114 : vector<256x32xf32> to vector<16x16x32xf32>
    %c0_112 = arith.constant 0 : index
    %c0_113 = arith.constant 0 : index
    %c0_114 = arith.constant 0 : index
    %c0_115 = arith.constant 0 : index
    %116 = vector.load %arg11[%c0_112, %c0_113, %c0_114, %c0_115] : memref<1x16x16x32xf32, #tpu.memory_space<vmem>>, vector<1x16x16x32xf32>
    %117 = vector.shape_cast %116 : vector<1x16x16x32xf32> to vector<16x16x32xf32>
    %118 = vector.shape_cast %115 : vector<16x16x32xf32> to vector<1x16x16x32xf32>
    tpu.vector_store %arg11[%c0_112, %c0_113, %c0_114, %c0_115], %118 {strides = array<i32>} : memref<1x16x16x32xf32, #tpu.memory_space<vmem>>, vector<1x16x16x32xf32>,
    return
  }
  func.func @transform_0(%arg0: i32) -> (i32, i32, i32, i32) {
    %c0_i32 = arith.constant 0 : i32
    %c0_i32_0 = arith.constant 0 : i32
    %c0_i32_1 = arith.constant 0 : i32
    %c0_i32_2 = arith.constant 0 : i32
    return %arg0, %c0_i32, %c0_i32_0, %c0_i32_1 : i32, i32, i32, i32
  }
  func.func @transform_1(%arg0: i32) -> (i32, i32) {
    %c0_i32 = arith.constant 0 : i32
    %c0_i32_0 = arith.constant 0 : i32
    %c0_i32_1 = arith.constant 0 : i32
    return %c0_i32, %c0_i32_0 : i32, i32
  }
  func.func @transform_2(%arg0: i32) -> (i32, i32) {
    %c0_i32 = arith.constant 0 : i32
    %c0_i32_0 = arith.constant 0 : i32
    %c0_i32_1 = arith.constant 0 : i32
    return %c0_i32, %c0_i32_0 : i32, i32
  }
  func.func @transform_3(%arg0: i32) -> (i32, i32) {
    %c0_i32 = arith.constant 0 : i32
    %c0_i32_0 = arith.constant 0 : i32
    %c0_i32_1 = arith.constant 0 : i32
    return %c0_i32, %c0_i32_0 : i32, i32
  }
  func.func @transform_4(%arg0: i32) -> (i32, i32, i32, i32) {
    %c0_i32 = arith.constant 0 : i32
    %c0_i32_0 = arith.constant 0 : i32
    %c0_i32_1 = arith.constant 0 : i32
    %c0_i32_2 = arith.constant 0 : i32
    %c0_i32_3 = arith.constant 0 : i32
    return %c0_i32, %c0_i32_0, %c0_i32_1, %c0_i32_2 : i32, i32, i32, i32
  }
  func.func @transform_5(%arg0: i32) -> (i32, i32) {
    %c0_i32 = arith.constant 0 : i32
    %c0_i32_0 = arith.constant 0 : i32
    %c0_i32_1 = arith.constant 0 : i32
    return %c0_i32, %c0_i32_0 : i32, i32
  }
  func.func @transform_6(%arg0: i32) -> (i32, i32) {
    %c0_i32 = arith.constant 0 : i32
    %c0_i32_0 = arith.constant 0 : i32
    %c0_i32_1 = arith.constant 0 : i32
    return %c0_i32, %c0_i32_0 : i32, i32
  }
  func.func @transform_7(%arg0: i32) -> (i32, i32) {
    %c0_i32 = arith.constant 0 : i32
    %c0_i32_0 = arith.constant 0 : i32
    %c0_i32_1 = arith.constant 0 : i32
    return %c0_i32, %c0_i32_0 : i32, i32
  }
  func.func @transform_8(%arg0: i32) -> (i32, i32) {
    %c0_i32 = arith.constant 0 : i32
    %c0_i32_0 = arith.constant 0 : i32
    %c0_i32_1 = arith.constant 0 : i32
    return %c0_i32, %c0_i32_0 : i32, i32
  }
  func.func @transform_9(%arg0: i32) -> (i32, i32) {
    %c0_i32 = arith.constant 0 : i32
    %c0_i32_0 = arith.constant 0 : i32
    %c0_i32_1 = arith.constant 0 : i32
    return %c0_i32, %c0_i32_0 : i32, i32
  }
  func.func @transform_10(%arg0: i32) -> (i32, i32, i32, i32) {
    %c0_i32 = arith.constant 0 : i32
    %c0_i32_0 = arith.constant 0 : i32
    %c0_i32_1 = arith.constant 0 : i32
    %c0_i32_2 = arith.constant 0 : i32
    return %arg0, %c0_i32, %c0_i32_0, %c0_i32_1 : i32, i32, i32, i32
  }
}

</mosaic_0001>

<bundles_post_ra>
// kernel: tpu_custom_call.1
= control target key start
LH: loop header
LB: loop body
LE: loop exit
PB: predicated region body
PF: predicated region fallthrough
CT: control target
= control target key end

     0   :  { %s8572_s0 = inlined_call_operand.hbm [shape: f32[2,16,16,32], index: 0, kind: input, shape index: {}]   ;;  %s8573_s1 = inlined_call_operand.vmem [shape: bf16[32,8], index: 1, kind: input, shape index: {}]   ;;  %s8574_s2 = inlined_call_operand.vmem [shape: f32[1,8], index: 2, kind: input, shape index: {}]   ;;  %s8575_s3 = inlined_call_operand.vmem [shape: f32[1,8], index: 3, kind: input, shape index: {}]   ;;  %s8576_s4 = inlined_call_operand.hbm [shape: bf16[3,3,8,8], index: 4, kind: input, shape index: {}]   ;;  %s8577_s5 = inlined_call_operand.vmem [shape: f32[1,8], index: 5, kind: input, shape index: {}]   ;;  %s8578_s6 = inlined_call_operand.vmem [shape: f32[1,8], index: 6, kind: input, shape index: {}]   ;;  %s8579_s7 = inlined_call_operand.vmem [shape: bf16[8,32], index: 7, kind: input, shape index: {}]   ;;  %s8580_s8 = inlined_call_operand.vmem [shape: f32[1,32], index: 8, kind: input, shape index: {}]   ;;  %s8581_s9 = inlined_call_operand.vmem [shape: f32[1,32], index: 9, kind: input, shape index: {}]   ;;  %s8582_s10 = inlined_call_operand.hbm [shape: f32[2,16,16,32], index: 10, kind: output, shape index: {}]  }
   0x1   :  { %8591 = sst [smem:[#allocation31_spill]] %s8576_s4 }
   0x2   :  { %15 = vsyncpa [#allocation4], 0 }
   0x3   :  { %17 = vsyncpa [#allocation4 + $0x1], 0 }
   0x4   :  { %18 = vsyncpa [#allocation7], 0 }
   0x5   :  { %19 = vsyncpa [#allocation5], 0 }
   0x6   :  { %21 = vsyncpa [#allocation5 + $0x1], 0  ;;  %s6816_s13 = smov 0   ;;  %s6818_s14 = smov 0  }
   0x7   :  { %s6820_s15 = smov 0   ;;  %s6822_s16 = smov 0  }
   0x8 LB: > { %8592 = sst [smem:[#allocation12_spill]] %s6737_s13  ;;  %s6837_s17 = sadd.s32 4294967295, %s6749_s16   ;;  %s6749_s16 = sphi %s6822_s16, %s8672_s16   ;;  %s6745_s15 = sphi %s6820_s15, %s8675_s15   ;;  %s6741_s14 = sphi %s6818_s14, %s8674_s14   ;;  %s6737_s13 = sphi %s6816_s13, %s8673_s13  }
   0x9   : > { %s5300_s18 = sadd.s32 4294967294, %s6749_s16   ;;  %p47_p0 = scmp.ne.s32.totalorder %s6741_s14, %s6737_s13 }
   0xa   : > { %p8587_p1 = scmp.eq.s32.totalorder %s6837_s17, 0  ;;  %p266_p3 = scmp.eq.s32.totalorder %s5300_s18, 1 }
   0xb   : > { %p5301_p5 = scmp.ge.s32.totalorder %s6749_s16, 1  ;;  %p273_p7 = scmp.lt.s32.totalorder %s6749_s16, 3 }
   0xc   : > { %p6846_p4 = por %p8587_p1, %p47_p0  ;;  %p6851_p6 = por %p266_p3, %p47_p0 }
   0xd   : > { %p6856_p8 = pnand %p5301_p5, %p273_p7  ;;  %s6751_s22 = smov [#allocation6]  }
   0xe   : > { %s8593_s19 = scalar_select %p6846_p4, 1, 0 }
   0xf   : > { %s8594_s20 = scalar_select %p6851_p6, 1, 0 }
  0x10   : > { %s8596_s21 = scalar_select %p6856_p8, 1, 0 }
  0x11   : > { %8595 = sst [smem:[#allocation13_spill]] %s8594_s20  ;;  %s294_s23 = sshll.u32 %s6751_s22, 4  ;;  %s295_s23 = int_to_ptr.vmem [resolvable:$true] %s294_s23 }
  0x12   : > { %p6423_p9 = pneg %p6856_p8  ;;  %s6870_s25 = sadd.s32 1, %s6749_s16  }
  0x13   : > { %8598 = sst [smem:[#allocation14_spill]] %s6870_s25  ;;  %s34_s26 = sadd.s32 1, %s6745_s15 }
  0x14   : > { %p6865_p11 = pnand %p6423_p9, %p8587_p1  ;;  %s31_s27 = ssub.s32 %s6749_s16, %s6870_s25 }
  0x15   : > { %s6638_s28 = scalar_lea.vmem %s295_s23, 576  ;;  %p6646_p5 = scmp.lt.s32.totalorder %s295_s23, %s295_s23 }
  0x16   : > { %p6629_p12 = pneg %p6865_p11  ;;  %p6639_p13 = scmp.ne.s32.totalorder %s295_s23, %s6638_s28 }
  0x17   : > { %p6647_p7 = scmp.lt.s32.totalorder %s6638_s28, %s6638_s28 }
  0x18   : > { %p6641_p0 = pnand %p6639_p13, %p6629_p12 }
  0x19   : > { %p6648_p10 = por %p6647_p7, %p6646_p5 }
  0x1a   : > { %p6642_p3 = pneg %p6641_p0 }
  0x1c   : > { %p6649_p2 = pnand %p6648_p10, %p6642_p3 }
  0x1e   : > { %6652 = shalt.err (!%p6649_p2)
}
  0x1f   : > { %s6752_s29 = smov 64   ;;  %s6753_s30 = smov 4  }
  0x20   : > { %s8599_s4 = sld [smem:[#allocation31_spill]]  ;;  %p32_p9 = scmp.eq.s32.totalorder %s31_s27, 0 }
  0x21   : > { %p41_p12 = scmp.ne.s32.totalorder %s6745_s15, %s6741_s14  ;;  %p42_p10 = scmp.eq.s32.totalorder %s6749_s16, 0 }
  0x22   : > { %p6436_p2 = scmp.lt.s32.totalorder %s6749_s16, 2  ;;  %p8600_p0 = scmp.eq.s32.totalorder %s6837_s17, 1 }
  0x23   : > { %s6887_s18 = scalar_select %p32_p9, %s6745_s15, %s34_s26  }
  0x24   : > { %p43_p13 = por %p42_p10, %p41_p12  ;;  %p6891_p3 = por %p8600_p0, %p41_p12 }
  0x25   : > { %s323_s28 = sand.u32 1, %s6745_s15   ;;  %s5740_s25 = sshll.u32 %s6749_s16, 12 }
  0x26   : > { %6426 = dma.hbm_to_vmem [thread:$0]  (!%p6865_p11), %s8599_s4, 576, %s295_s23, [#allocation7], %s6752_s29, %s6752_s29, %s6753_s30  }
  0x27   : > { %s8601_s22 = scalar_select %p6891_p3, 1, 0 }
  0x28   : > { %s5304_s20 = sshll.u32 %s323_s28, 8  ;;  %s6900_s11 = scalar_lea.hbm %s8572_s0, %s5740_s25 }
  0x29   : > { %s327_s23 = scalar_lea.vmem [#allocation3], %s5304_s20  ;;  %p6902_p11 = pnand %p6436_p2, %p43_p13 }
  0x2a   : > { %s334_s26 = sshll.u32 %s327_s23, 4  ;;  %s6908_s29 = scalar_lea.sflag [#allocation4], %s323_s28  ;;  %s6906_s26 = int_to_ptr.vmem [resolvable:$true] %s334_s26 }
  0x2b   : > { %s6653_s30 = scalar_lea.hbm %s6900_s11, 4096  ;;  %p6655_p7 = pneg %p6902_p11 }
  0x2c   : > { %p6654_p5 = scmp.ne.s32.totalorder %s6900_s11, %s6653_s30  ;;  %s6658_s20 = scalar_lea.hbm %s8572_s0, 8192 }
  0x2d   : > { %p6659_p10 = scmp.lt.s32.totalorder %s6900_s11, %s8572_s0  ;;  %p6660_p2 = scmp.lt.s32.totalorder %s6658_s20, %s6653_s30 }
  0x2e   : > { %p6656_p9 = pnand %p6655_p7, %p6654_p5 }
  0x2f   : > { %p6661_p13 = por %p6660_p2, %p6659_p10 }
  0x30   : > { %p6657_p12 = pneg %p6656_p9 }
  0x32   : > { %p6662_p0 = pnand %p6661_p13, %p6657_p12 }
  0x34   : > { %6665 = shalt.err (!%p6662_p0)
}
  0x35   : > { %s6666_s28 = scalar_lea.vmem %s6906_s26, 4096  ;;  %s6754_s23 = smov [#allocation3]  }
  0x36   : > { %p6667_p1 = scmp.ne.s32.totalorder %s6906_s26, %s6666_s28  ;;  %s6671_s4 = sshll.u32 %s6754_s23, 4  ;;  %s6672_s4 = int_to_ptr.vmem [resolvable:$false] %s6671_s4 }
  0x37   : > { %s6673_s13 = scalar_lea.vmem %s6672_s4, 8192  ;;  %p6674_p9 = scmp.lt.s32.totalorder %s6906_s26, %s6672_s4 }
  0x38   : > { %p6669_p6 = pnand %p6667_p1, %p6655_p7  ;;  %p6675_p3 = scmp.lt.s32.totalorder %s6673_s13, %s6666_s28 }
  0x3a   : > { %p6670_p5 = pneg %p6669_p6  ;;  %p6676_p4 = por %p6675_p3, %p6674_p9 }
  0x3c   : > { %p6677_p8 = pnand %p6676_p4, %p6670_p5 }
  0x3e   : > { %6680 = shalt.err (!%p6677_p8)
}
  0x3f   : > { %s6755_s30 = smov 128   ;;  %s6756_s25 = smov 8  }
  0x40   : > { %6430 = dma.hbm_to_vmem [thread:$0]  (!%p6902_p11), %s6900_s11, 4096, %s6906_s26, %s6908_s29, %s6755_s30, %s6755_s30, %s6756_s25  }
  0x41   : > { %p8603_p1 = scmp.ne.s32.totalorder %s8596_s21, 0 }
  0x43   : > { %346 = sbr.rel (%p8603_p1) target bundleno = 1066 (0x42a), region = 60 }
  0x48   : > { %s6932_s20 = sand.u32 1, %s6741_s14   ;;  %p8604_p4 = scmp.ne.s32.totalorder %s8593_s19, 0 }
  0x49   : > { %s5308_s4 = sshll.u32 %s6932_s20, 8  ;;  %s349_s12 = scalar_lea.sflag [#allocation4], %s6932_s20 }
  0x4a   : > { %s6938_s24 = scalar_lea.vmem [#allocation3], %s5308_s4 }
  0x4b   : > { %6724 = dma.done.wait (%p8604_p4), %s349_s12, 4096  }
  0x4c   : > { %6726 = vsyncadd (%p8604_p4), %s349_s12, 4294963200  ;;  %p8605_p6 = scmp.eq.s32.totalorder %s6837_s17, 0 }
  0x4e   : > { %6728 = dma.done.wait (%p8605_p6), [#allocation7], 576   ;;  %p8606_p8 = pmov %p8605_p6 }
  0x4f   : > { %v6479_v0 = vld [vmem:[%s8573_s1 + $0x8] sm:$0xff]   ;;  %v6480_v1 = vld [vmem:[%s8573_s1] sm:$0xff]   ;;  %v394_v2 = vld [vmem:[%s6938_s24] sm:$0xff]  ;;  %vm458_vm0 = vcmask 261120   ;;  %vm1695_vm1 = vcmask 1043456   ;;  %vm1004_vm2 = vcmask 60416  }
  0x50   : > { %6730 = vsyncadd (%p8606_p8), [#allocation7], 4294966720  ;;  %6026 = vmatprep.subr.bf16.mxu0 %v6479_v0  ;;  %v395_v3 = vld [vmem:[%s6938_s24 + $0x8] sm:$0xff]  ;;  %v396_v5 = vld [vmem:[%s6938_s24 + $0x10] sm:$0xff]  ;;  %v6757_v52 = vmov 0   ;;  %vm1646_vm3 = vcmask 64512  }
  0x51   : > { %6027 = vmatpush3.bf16.msra.mxu0 %v6479_v0  ;;  %v426_v4 = vpack.c.bf16 %v395_v3, %v394_v2  ;;  %v397_v6 = vld [vmem:[%s6938_s24 + $0x18] sm:$0xff]  ;;  %v398_v7 = vld [vmem:[%s6938_s24 + $0x20] sm:$0xff]  ;;  %v399_v8 = vld [vmem:[%s6938_s24 + $0x28] sm:$0xff]  ;;  %1007 = vst.msk [vmem:[#allocation2 + $0x90] sm:$0xf] %vm1004_vm2, %v6757_v52  ;;  %vm810_vm4 = vcmask 1040384  }
  0x52   : > { %6028 = vmatprep.subr.bf16.mxu0 %v6480_v1  ;;  %v427_v9 = vpack.c.bf16 %v397_v6, %v396_v5  ;;  %v428_v10 = vpack.c.bf16 %v399_v8, %v398_v7  ;;  %v400_v11 = vld [vmem:[%s6938_s24 + $0x30] sm:$0xff]  ;;  %v401_v12 = vld [vmem:[%s6938_s24 + $0x38] sm:$0xff]  ;;  %v402_v13 = vld [vmem:[%s6938_s24 + $0x40] sm:$0xff]  ;;  %1008 = vst.msk [vmem:[#allocation2 + $0x94] sm:$0xf] %vm1004_vm2, %v6757_v52  ;;  %vm907_vm5 = vcmask 1046528  }
  0x53   : > { %6030 = vmatprep.mubr.msk.bf16.mxu0 %vm458_vm0, %v426_v4  ;;  %v403_v14 = vld [vmem:[%s6938_s24 + $0x48] sm:$0xff]  ;;  %v429_v15 = vpack.c.bf16 %v401_v12, %v400_v11  ;;  %v404_v17 = vld [vmem:[%s6938_s24 + $0x50] sm:$0xff]  ;;  %v405_v18 = vld [vmem:[%s6938_s24 + $0x58] sm:$0xff]  ;;  %1005 = vst.msk [vmem:[#allocation2] sm:$0xf] %vm1004_vm2, %v6757_v52  ;;  %s8371_s25 = scalar_lea.vmem [#allocation8], %s5308_s4 }
  0x54   : > { %v430_v16 = vpack.c.bf16 %v403_v14, %v402_v13  ;;  %v406_v19 = vld [vmem:[%s6938_s24 + $0x60] sm:$0xff]  ;;  %v407_v20 = vld [vmem:[%s6938_s24 + $0x68] sm:$0xff]  ;;  %v431_v21 = vpack.c.bf16 %v405_v18, %v404_v17  ;;  %v408_v23 = vld [vmem:[%s6938_s24 + $0x70] sm:$0xff]  ;;  %1006 = vst.msk [vmem:[#allocation2 + $0x4] sm:$0xf] %vm1004_vm2, %v6757_v52  ;;  %s5837_s4 = sshll.u32 %s6837_s17, 12 }
  0x55   : > { %6029 = vmatpush3.bf16.msra.mxu0 %v6480_v1  ;;  %v432_v22 = vpack.c.bf16 %v407_v20, %v406_v19  ;;  %v409_v24 = vld [vmem:[%s6938_s24 + $0x78] sm:$0xff]  ;;  %v410_v25 = vld [vmem:[%s6938_s24 + $0x80] sm:$0xff]  ;;  %v411_v26 = vld [vmem:[%s6938_s24 + $0x88] sm:$0xff]  ;;  %1009 = vst.msk [vmem:[#allocation2 + $0x120] sm:$0xf] %vm1004_vm2, %v6757_v52  ;;  %s5217_s12 = sshll.u32 %s8371_s25, 4  ;;  %s8523_s26 = scalar_lea.hbm %s8582_s10, %s5837_s4  ;;  %s8525_s12 = int_to_ptr.vmem [resolvable:$true] %s5217_s12 }
  0x56   : > { %v433_v27 = vpack.c.bf16 %v409_v24, %v408_v23  ;;  %v434_v28 = vpack.c.bf16 %v411_v26, %v410_v25  ;;  %v412_v29 = vld [vmem:[%s6938_s24 + $0x90] sm:$0xff]  ;;  %v413_v30 = vld [vmem:[%s6938_s24 + $0x98] sm:$0xff]  ;;  %v414_v31 = vld [vmem:[%s6938_s24 + $0xa0] sm:$0xff]  ;;  %1010 = vst.msk [vmem:[#allocation2 + $0x124] sm:$0xf] %vm1004_vm2, %v6757_v52  ;;  %s5204_s17 = scalar_lea.sflag [#allocation5], %s6932_s20 }
  0x57   : > { %v415_v32 = vld [vmem:[%s6938_s24 + $0xa8] sm:$0xff]  ;;  %v435_v33 = vpack.c.bf16 %v413_v30, %v412_v29  ;;  %v416_v35 = vld [vmem:[%s6938_s24 + $0xb0] sm:$0xff]  ;;  %v417_v36 = vld [vmem:[%s6938_s24 + $0xb8] sm:$0xff]  ;;  %1011 = vst.msk [vmem:[#allocation2 + $0x88] sm:$0xf] %vm1004_vm2, %v6757_v52  ;;  %p8667_p11 = scmp.ne.s32.totalorder %s8601_s22, 0 }
  0x58   : > { %6031 = vmatmul.mubr.msk.bf16.vlgmr.msra.gmra.mxu0 %vm458_vm0, %v427_v9  ;;  %v436_v34 = vpack.c.bf16 %v415_v32, %v414_v31  ;;  %v418_v37 = vld [vmem:[%s6938_s24 + $0xc0] sm:$0xff]  ;;  %v419_v38 = vld [vmem:[%s6938_s24 + $0xc8] sm:$0xff]  ;;  %v437_v39 = vpack.c.bf16 %v417_v36, %v416_v35  ;;  %v420_v41 = vld [vmem:[%s6938_s24 + $0xd0] sm:$0xff]  ;;  %1012 = vst.msk [vmem:[#allocation2 + $0x8c] sm:$0xf] %vm1004_vm2, %v6757_v52  ;;  %s6758_s27 = smov [#allocation8]  }
  0x59   : > { %6034 = vmatprep.mubr.msk.bf16.mxu0 %vm458_vm0, %v428_v10  ;;  %v438_v40 = vpack.c.bf16 %v419_v38, %v418_v37  ;;  %v421_v42 = vld [vmem:[%s6938_s24 + $0xd8] sm:$0xff]  ;;  %v422_v43 = vld [vmem:[%s6938_s24 + $0xe0] sm:$0xff]  ;;  %v423_v44 = vld [vmem:[%s6938_s24 + $0xe8] sm:$0xff]  ;;  %1013 = vst.msk [vmem:[#allocation2 + $0x118] sm:$0xf] %vm1004_vm2, %v6757_v52  ;;  %s6685_s19 = sshll.u32 %s6758_s27, 4  ;;  %s6686_s19 = int_to_ptr.vmem [resolvable:$false] %s6685_s19 }
  0x5a   : > { %v439_v45 = vpack.c.bf16 %v421_v42, %v420_v41  ;;  %v440_v46 = vpack.c.bf16 %v423_v44, %v422_v43  ;;  %v424_v47 = vld [vmem:[%s6938_s24 + $0xf0] sm:$0xff]  ;;  %v425_v48 = vld [vmem:[%s6938_s24 + $0xf8] sm:$0xff]  ;;  %v1565_v50 = vld [vmem:[#allocation6 + $0x4] sm:$0xf]  ;;  %1014 = vst.msk [vmem:[#allocation2 + $0x11c] sm:$0xf] %vm1004_vm2, %v6757_v52  ;;  %p6688_p10 = scmp.lt.s32.totalorder %s8525_s12, %s6686_s19 }
  0x5b   : > { %v441_v49 = vpack.c.bf16 %v425_v48, %v424_v47  ;;  %6404 = vmatprep.subr.msk.bf16.mxu0 %vm1695_vm1, %v1565_v50  ;;  %v1697_v51 = vsel %vm1695_vm1, %v1565_v50, 0  ;;  %6405 = vmatprep.subr.msk.bf16.mxu1 %vm1695_vm1, %v1565_v50  ;;  %1015 = vst.msk [vmem:[#allocation2 + $0x1a8] sm:$0xf] %vm1004_vm2, %v6757_v52  ;;  %1016 = vst.msk [vmem:[#allocation2 + $0x1ac] sm:$0xf] %vm1004_vm2, %v6757_v52  ;;  %v6481_v53 = vld [vmem:[#allocation2 + $0x90] sm:$0xff]  }
  0x5c   : > { %6063 = vmatpush3.bf16.msra.mxu0 %v1697_v51  ;;  %6403 = vmatpush3.bf16.msra.mxu1 %v1697_v51  ;;  %v2185_v54 = vld [vmem:[#allocation6 + $0x8] sm:$0xf]  ;;  %v1531_v55 = vld [vmem:[#allocation6] sm:$0xf]  ;;  %v7023_v56 = vld [vmem:[%s8574_s2] ss:$0 sm:$0xff] }
  0x5d   : > { %6407 = vmatprep.subr.msk.bf16.mxu0 %vm1695_vm1, %v2185_v54  ;;  %6406 = vmatprep.subr.msk.bf16.mxu1 %vm1695_vm1, %v1531_v55  ;;  %v7028_v58 = vld [vmem:[%s8575_s3] ss:$0 sm:$0xff]  ;;  %v7040_v13 = vsel %vm1695_vm1, %v2185_v54, 0  ;;  %s6687_s29 = scalar_lea.vmem %s6686_s19, 8192 }
  0x5e   : > { %v7059_v41 = vld [vmem:[#allocation6 + $0x10] sm:$0xf] }
  0x60   : > { %6035 = vmatmul.mubr.msk.bf16.gmra.mxu0 %vm458_vm0, %v429_v15 }
  0x61   : > { %6038 = vmatprep.mubr.msk.bf16.mxu0 %vm458_vm0, %v430_v16 }
  0x68   : > { %6039 = vmatmul.mubr.msk.bf16.gmra.mxu0 %vm458_vm0, %v431_v21 }
  0x69   : > { %6042 = vmatprep.mubr.msk.bf16.mxu0 %vm458_vm0, %v432_v22  ;;  %v7048_v22 = vsel %vm1695_vm1, %v1531_v55, 0 }
  0x70   : > { %6043 = vmatmul.mubr.msk.bf16.gmra.mxu0 %vm458_vm0, %v433_v27 }
  0x71   : > { %6046 = vmatprep.mubr.msk.bf16.mxu0 %vm458_vm0, %v434_v28 }
  0x78   : > { %6047 = vmatmul.mubr.msk.bf16.gmra.mxu0 %vm458_vm0, %v435_v33 }
  0x79   : > { %6050 = vmatprep.mubr.msk.bf16.mxu0 %vm458_vm0, %v436_v34 }
  0x80   : > { %6051 = vmatmul.mubr.msk.bf16.gmra.mxu0 %vm458_vm0, %v437_v39 }
  0x81   : > { %6054 = vmatprep.mubr.msk.bf16.mxu0 %vm458_vm0, %v438_v40 }
  0x88   : > { %6055 = vmatmul.mubr.msk.bf16.gmra.mxu0 %vm458_vm0, %v439_v45 }
  0x89   : > { %6058 = vmatprep.mubr.msk.bf16.mxu0 %vm458_vm0, %v440_v46 }
  0x90   : > { %6059 = vmatmul.mubr.msk.bf16.gmra.mxu0 %vm458_vm0, %v441_v49 }
  0x91   : > { %6064 = vmatprep.mubr.msk.bf16.mxu0 %vm1646_vm3, %v6481_v53 }
 0x118   : > { %v6032_v57 = vpop.f32.mrf.mxu0 }
 0x119   : > { %v677_v59 = vmul.f32 %v6032_v57, %v7023_v56 }
 0x11a   : > { %v541_v60 = vpop.f32.mrf.mxu0 }
 0x11b   : > { %v716_v61 = vadd.f32 %v7028_v58, %v677_v59  ;;  %v675_v62 = vmul.f32 %v7023_v56, %v541_v60 }
 0x11c   : > { %v6033_v63 = vpop.f32.mrf.mxu0 }
 0x11d   : > { %v748_v0 = vmax.f32 %v716_v61, 0.0  ;;  %v714_v1 = vadd.f32 %v7028_v58, %v675_v62  ;;  %v678_v2 = vmul.f32 %v6033_v63, %v7023_v56  ;;  %v7075_v61 = vsel %vm1695_vm1, %v7059_v41, 0 }
 0x11e   : > { %v544_v3 = vpop.f32.mrf.mxu0 }
 0x11f   : > { %v814_v4 = vrot.slane %v748_v0, 7  ;;  %v5775_v5 = vpack.c.bf16 %v748_v0, %v748_v0  ;;  %v746_v6 = vmax.f32 %v714_v1, 0.0  ;;  %v717_v7 = vadd.f32 %v7028_v58, %v678_v2 }
 0x120   : > { %v676_v8 = vmul.f32 %v7023_v56, %v544_v3  ;;  %v6036_v9 = vpop.f32.mrf.mxu0  ;;  %v911_v19 = vrot.slane %v748_v0, 1 }
 0x121   : > { %v892_v10 = vsel %vm810_vm4, 0.0, %v814_v4  ;;  %1308 = vst.msk [vmem:[#allocation2 + $0xa0] sm:$0xf] %vm1004_vm2, %v5775_v5  ;;  %v811_v11 = vrot.slane %v746_v6, 7  ;;  %v5773_v12 = vpack.c.bf16 %v746_v6, %v746_v6  ;;  %v749_v15 = vmax.f32 %v717_v7, 0.0 }
 0x122   : > { %v5743_v14 = vpack.c.bf16 %v892_v10, %v892_v10  ;;  %v715_v16 = vadd.f32 %v7028_v58, %v676_v8  ;;  %v681_v17 = vmul.f32 %v6036_v9, %v7023_v56  ;;  %v557_v18 = vpop.f32.mrf.mxu0  ;;  %v908_v32 = vrot.slane %v746_v6, 1 }
 0x123   : > { %v891_v20 = vsel %vm810_vm4, 0.0, %v811_v11  ;;  %1306 = vst.msk [vmem:[#allocation2 + $0x98] sm:$0xf] %vm1004_vm2, %v5773_v12  ;;  %v679_v21 = vmul.f32 %v7023_v56, %v557_v18  ;;  %v815_v24 = vrot.slane %v749_v15, 7  ;;  %v912_v25 = vrot.slane %v749_v15, 1 }
 0x124   : > { %1147 = vst.msk [vmem:[#allocation2 + $0x10] sm:$0xf] %vm1004_vm2, %v5743_v14  ;;  %v5741_v23 = vpack.c.bf16 %v891_v20, %v891_v20  ;;  %v5776_v26 = vpack.c.bf16 %v749_v15, %v749_v15  ;;  %v6037_v27 = vpop.f32.mrf.mxu0  ;;  %v747_v28 = vmax.f32 %v715_v16, 0.0  ;;  %v720_v29 = vadd.f32 %v7028_v58, %v681_v17 }
 0x125   : > { %v718_v30 = vadd.f32 %v7028_v58, %v679_v21  ;;  %v682_v31 = vmul.f32 %v6037_v27, %v7023_v56  ;;  %v816_v33 = vsel %vm810_vm4, %v814_v4, %v815_v24  ;;  %v913_v34 = vsel %vm907_vm5, %v911_v19, %v912_v25 }
 0x126   : > { %1145 = vst.msk [vmem:[#allocation2 + $0x8] sm:$0xf] %vm1004_vm2, %v5741_v23  ;;  %v989_v35 = vsel %vm907_vm5, %v912_v25, 0.0  ;;  %1309 = vst.msk [vmem:[#allocation2 + $0xa4] sm:$0xf] %vm1004_vm2, %v5776_v26  ;;  %v560_v36 = vpop.f32.mrf.mxu0  ;;  %v5744_v37 = vpack.c.bf16 %v816_v33, %v816_v33  ;;  %v5807_v38 = vpack.c.bf16 %v913_v34, %v913_v34  ;;  %v812_v40 = vrot.slane %v747_v28, 7 }
 0x127   : > { %v5808_v39 = vpack.c.bf16 %v989_v35, %v989_v35  ;;  %v909_v42 = vrot.slane %v747_v28, 1  ;;  %v5774_v43 = vpack.c.bf16 %v747_v28, %v747_v28  ;;  %v752_v44 = vmax.f32 %v720_v29, 0.0 }
 0x128   : > { %v7061_v45 = vmax.f32 %v718_v30, 0.0  ;;  %v6040_v46 = vpop.f32.mrf.mxu0  ;;  %1148 = vst.msk [vmem:[#allocation2 + $0x14] sm:$0xf] %vm1004_vm2, %v5744_v37  ;;  %1469 = vst.msk [vmem:[#allocation2 + $0x130] sm:$0xf] %vm1004_vm2, %v5807_v38  ;;  %v813_v47 = vsel %vm810_vm4, %v811_v11, %v812_v40  ;;  %v721_v48 = vadd.f32 %v7028_v58, %v682_v31  ;;  %v680_v49 = vmul.f32 %v7023_v56, %v560_v36 }
 0x129   : > { %1470 = vst.msk [vmem:[#allocation2 + $0x134] sm:$0xf] %vm1004_vm2, %v5808_v39  ;;  %v685_v50 = vmul.f32 %v6040_v46, %v7023_v56  ;;  %v910_v51 = vsel %vm907_vm5, %v908_v32, %v909_v42  ;;  %v988_v52 = vsel %vm907_vm5, %v909_v42, 0.0  ;;  %v5742_v53 = vpack.c.bf16 %v813_v47, %v813_v47  ;;  %1307 = vst.msk [vmem:[#allocation2 + $0x9c] sm:$0xf] %vm1004_vm2, %v5774_v43 }
 0x12a   : > { %v820_v54 = vrot.slane %v752_v44, 7  ;;  %v573_v55 = vpop.f32.mrf.mxu0  ;;  %v5805_v57 = vpack.c.bf16 %v910_v51, %v910_v51  ;;  %v5806_v59 = vpack.c.bf16 %v988_v52, %v988_v52  ;;  %v5779_v60 = vpack.c.bf16 %v752_v44, %v752_v44 }
 0x12b   : > { %1146 = vst.msk [vmem:[#allocation2 + $0xc] sm:$0xf] %vm1004_vm2, %v5742_v53  ;;  %v917_v63 = vrot.slane %v752_v44, 1  ;;  %v817_v0 = vrot.slane %v7061_v45, 7  ;;  %v5777_v1 = vpack.c.bf16 %v7061_v45, %v7061_v45  ;;  %v753_v4 = vmax.f32 %v721_v48, 0.0 }
 0x12c   : > { %v894_v62 = vsel %vm810_vm4, 0.0, %v820_v54  ;;  %v6041_v2 = vpop.f32.mrf.mxu0  ;;  %1467 = vst.msk [vmem:[#allocation2 + $0x128] sm:$0xf] %vm1004_vm2, %v5805_v57  ;;  %1468 = vst.msk [vmem:[#allocation2 + $0x12c] sm:$0xf] %vm1004_vm2, %v5806_v59  ;;  %v719_v5 = vadd.f32 %v7028_v58, %v680_v49  ;;  %v724_v6 = vadd.f32 %v7028_v58, %v685_v50  ;;  %v914_v8 = vrot.slane %v7061_v45, 1 }
 0x12d   : > { %v5747_v3 = vpack.c.bf16 %v894_v62, %v894_v62  ;;  %1312 = vst.msk [vmem:[#allocation2 + $0xb0] sm:$0xf] %vm1004_vm2, %v5779_v60  ;;  %v893_v7 = vsel %vm810_vm4, 0.0, %v817_v0  ;;  %1310 = vst.msk [vmem:[#allocation2 + $0xa8] sm:$0xf] %vm1004_vm2, %v5777_v1  ;;  %v683_v9 = vmul.f32 %v7023_v56, %v573_v55  ;;  %v686_v10 = vmul.f32 %v6041_v2, %v7023_v56  ;;  %v6483_v33 = vld [vmem:[#allocation2 + $0xa0] sm:$0xff]  }
 0x12e   : > { %v576_v11 = vpop.f32.mrf.mxu0  ;;  %v5745_v12 = vpack.c.bf16 %v893_v7, %v893_v7  ;;  %v821_v14 = vrot.slane %v753_v4, 7  ;;  %v918_v15 = vrot.slane %v753_v4, 1  ;;  %v5780_v16 = vpack.c.bf16 %v753_v4, %v753_v4 }
 0x12f   : > { %1151 = vst.msk [vmem:[#allocation2 + $0x20] sm:$0xf] %vm1004_vm2, %v5747_v3  ;;  %v751_v17 = vmax.f32 %v719_v5, 0.0  ;;  %v756_v18 = vmax.f32 %v724_v6, 0.0  ;;  %v722_v19 = vadd.f32 %v7028_v58, %v683_v9  ;;  %v725_v20 = vadd.f32 %v7028_v58, %v686_v10 }
 0x130   : > { %v6044_v21 = vpop.f32.mrf.mxu0  ;;  %1149 = vst.msk [vmem:[#allocation2 + $0x18] sm:$0xf] %vm1004_vm2, %v5745_v12  ;;  %v822_v23 = vsel %vm810_vm4, %v820_v54, %v821_v14  ;;  %v919_v24 = vsel %vm907_vm5, %v917_v63, %v918_v15  ;;  %v991_v25 = vsel %vm907_vm5, %v918_v15, 0.0  ;;  %1313 = vst.msk [vmem:[#allocation2 + $0xb4] sm:$0xf] %vm1004_vm2, %v5780_v16  ;;  %v684_v26 = vmul.f32 %v7023_v56, %v576_v11  ;;  %v6482_v27 = vld [vmem:[#allocation2 + $0x98] sm:$0xff]  }
 0x131   : > { %v5748_v28 = vpack.c.bf16 %v822_v23, %v822_v23  ;;  %v5811_v29 = vpack.c.bf16 %v919_v24, %v919_v24  ;;  %v5812_v30 = vpack.c.bf16 %v991_v25, %v991_v25  ;;  %v818_v31 = vrot.slane %v751_v17, 7  ;;  %6065 = vmatmul.mubr.msk.bf16.vlgmr.msra.gmra.mxu0 %vm1646_vm3, %v6482_v27 }
 0x132   : > { %v589_v32 = vpop.f32.mrf.mxu0  ;;  %v915_v34 = vrot.slane %v751_v17, 1  ;;  %v5778_v35 = vpack.c.bf16 %v751_v17, %v751_v17  ;;  %v826_v36 = vrot.slane %v756_v18, 7  ;;  %v923_v37 = vrot.slane %v756_v18, 1  ;;  %6068 = vmatprep.mubr.msk.bf16.mxu0 %vm1646_vm3, %v6483_v33  ;;  %6131 = vmatpush3.bf16.msra.mxu0 %v7040_v13 }
 0x133   : > { %1152 = vst.msk [vmem:[#allocation2 + $0x24] sm:$0xf] %vm1004_vm2, %v5748_v28  ;;  %1473 = vst.msk [vmem:[#allocation2 + $0x140] sm:$0xf] %vm1004_vm2, %v5811_v29  ;;  %v819_v38 = vsel %vm810_vm4, %v817_v0, %v818_v31  ;;  %v5783_v39 = vpack.c.bf16 %v756_v18, %v756_v18  ;;  %v7106_v40 = vmax.f32 %v722_v19, 0.0  ;;  %v757_v42 = vmax.f32 %v725_v20, 0.0  ;;  %6409 = vmatprep.subr.msk.bf16.mxu0 %vm1695_vm1, %v7059_v41 }
 0x134   : > { %1474 = vst.msk [vmem:[#allocation2 + $0x144] sm:$0xf] %vm1004_vm2, %v5812_v30  ;;  %v6045_v43 = vpop.f32.mrf.mxu0  ;;  %v916_v44 = vsel %vm907_vm5, %v914_v8, %v915_v34  ;;  %v990_v45 = vsel %vm907_vm5, %v915_v34, 0.0  ;;  %v5746_v46 = vpack.c.bf16 %v819_v38, %v819_v38  ;;  %1311 = vst.msk [vmem:[#allocation2 + $0xac] sm:$0xf] %vm1004_vm2, %v5778_v35  ;;  %v896_v47 = vsel %vm810_vm4, 0.0, %v826_v36 }
 0x135   : > { %v5809_v48 = vpack.c.bf16 %v916_v44, %v916_v44  ;;  %v5810_v49 = vpack.c.bf16 %v990_v45, %v990_v45  ;;  %v5751_v50 = vpack.c.bf16 %v896_v47, %v896_v47  ;;  %1316 = vst.msk [vmem:[#allocation2 + $0xc0] sm:$0xf] %vm1004_vm2, %v5783_v39  ;;  %v823_v51 = vrot.slane %v7106_v40, 7 }
 0x136   : > { %v592_v13 = vpop.f32.mrf.mxu0  ;;  %1150 = vst.msk [vmem:[#allocation2 + $0x1c] sm:$0xf] %vm1004_vm2, %v5746_v46  ;;  %v920_v52 = vrot.slane %v7106_v40, 1  ;;  %v5781_v53 = vpack.c.bf16 %v7106_v40, %v7106_v40  ;;  %v827_v54 = vrot.slane %v757_v42, 7  ;;  %v924_v55 = vrot.slane %v757_v42, 1 }
 0x137   : > { %1471 = vst.msk [vmem:[#allocation2 + $0x138] sm:$0xf] %vm1004_vm2, %v5809_v48  ;;  %1472 = vst.msk [vmem:[#allocation2 + $0x13c] sm:$0xf] %vm1004_vm2, %v5810_v49  ;;  %v895_v41 = vsel %vm810_vm4, 0.0, %v823_v51  ;;  %v5784_v57 = vpack.c.bf16 %v757_v42, %v757_v42  ;;  %v723_v59 = vadd.f32 %v7028_v58, %v684_v26  ;;  %v689_v60 = vmul.f32 %v6044_v21, %v7023_v56  ;;  %v6485_v24 = vld [vmem:[#allocation2 + $0xb0] sm:$0xff]  }
 0x138   : > { %1155 = vst.msk [vmem:[#allocation2 + $0x30] sm:$0xf] %vm1004_vm2, %v5751_v50  ;;  %v6048_v62 = vpop.f32.mrf.mxu0  ;;  %v5749_v63 = vpack.c.bf16 %v895_v41, %v895_v41  ;;  %1314 = vst.msk [vmem:[#allocation2 + $0xb8] sm:$0xf] %vm1004_vm2, %v5781_v53  ;;  %v828_v0 = vsel %vm810_vm4, %v826_v36, %v827_v54  ;;  %v925_v1 = vsel %vm907_vm5, %v923_v37, %v924_v55  ;;  %v993_v2 = vsel %vm907_vm5, %v924_v55, 0.0 }
 0x139   : > { %v5752_v3 = vpack.c.bf16 %v828_v0, %v828_v0  ;;  %1317 = vst.msk [vmem:[#allocation2 + $0xc4] sm:$0xf] %vm1004_vm2, %v5784_v57  ;;  %v5815_v4 = vpack.c.bf16 %v925_v1, %v925_v1  ;;  %v5816_v5 = vpack.c.bf16 %v993_v2, %v993_v2  ;;  %v755_v6 = vmax.f32 %v723_v59, 0.0  ;;  %v6488_v59 = vld [vmem:[#allocation2 + $0x120] sm:$0xff]  }
 0x13a   : > { %v605_v7 = vpop.f32.mrf.mxu0  ;;  %1153 = vst.msk [vmem:[#allocation2 + $0x28] sm:$0xf] %vm1004_vm2, %v5749_v63  ;;  %v728_v8 = vadd.f32 %v7028_v58, %v689_v60  ;;  %v687_v9 = vmul.f32 %v7023_v56, %v589_v32  ;;  %v690_v10 = vmul.f32 %v6045_v43, %v7023_v56  ;;  %v688_v11 = vmul.f32 %v7023_v56, %v592_v13 }
 0x13b   : > { %1156 = vst.msk [vmem:[#allocation2 + $0x34] sm:$0xf] %vm1004_vm2, %v5752_v3  ;;  %1477 = vst.msk [vmem:[#allocation2 + $0x150] sm:$0xf] %vm1004_vm2, %v5815_v4  ;;  %v824_v12 = vrot.slane %v755_v6, 7  ;;  %v921_v14 = vrot.slane %v755_v6, 1  ;;  %v5782_v15 = vpack.c.bf16 %v755_v6, %v755_v6  ;;  %v693_v16 = vmul.f32 %v6048_v62, %v7023_v56 }
 0x13c   : > { %1478 = vst.msk [vmem:[#allocation2 + $0x154] sm:$0xf] %vm1004_vm2, %v5816_v5  ;;  %v6484_v17 = vld [vmem:[#allocation2 + $0xa8] sm:$0xff]   ;;  %v7142_v18 = vpop.f32.mrf.mxu0  ;;  %v760_v19 = vmax.f32 %v728_v8, 0.0  ;;  %v726_v20 = vadd.f32 %v7028_v58, %v687_v9  ;;  %v729_v21 = vadd.f32 %v7028_v58, %v690_v10  ;;  %v727_v23 = vadd.f32 %v7028_v58, %v688_v11 }
 0x13d   : > { %v825_v25 = vsel %vm810_vm4, %v823_v51, %v824_v12  ;;  %v922_v26 = vsel %vm907_vm5, %v920_v52, %v921_v14  ;;  %v992_v27 = vsel %vm907_vm5, %v921_v14, 0.0  ;;  %1315 = vst.msk [vmem:[#allocation2 + $0xbc] sm:$0xf] %vm1004_vm2, %v5782_v15  ;;  %v732_v28 = vadd.f32 %v7028_v58, %v693_v16  ;;  %6069 = vmatmul.mubr.msk.bf16.gmra.mxu0 %vm1646_vm3, %v6484_v17 }
 0x13e   : > { %v7153_v29 = vpop.f32.mrf.mxu0  ;;  %v5750_v30 = vpack.c.bf16 %v825_v25, %v825_v25  ;;  %v5813_v31 = vpack.c.bf16 %v922_v26, %v922_v26  ;;  %v5814_v32 = vpack.c.bf16 %v992_v27, %v992_v27  ;;  %v832_v33 = vrot.slane %v760_v19, 7  ;;  %6072 = vmatprep.mubr.msk.bf16.mxu0 %vm1646_vm3, %v6485_v24 }
 0x13f   : > { %v929_v34 = vrot.slane %v760_v19, 1  ;;  %v5787_v35 = vpack.c.bf16 %v760_v19, %v760_v19  ;;  %v758_v36 = vmax.f32 %v726_v20, 0.0  ;;  %v761_v37 = vmax.f32 %v729_v21, 0.0 }
 0x140   : > { %v7156_v38 = vpop.f32.mrf.mxu0  ;;  %1154 = vst.msk [vmem:[#allocation2 + $0x2c] sm:$0xf] %vm1004_vm2, %v5750_v30  ;;  %1475 = vst.msk [vmem:[#allocation2 + $0x148] sm:$0xf] %vm1004_vm2, %v5813_v31  ;;  %v898_v39 = vsel %vm810_vm4, 0.0, %v832_v33  ;;  %v759_v40 = vmax.f32 %v727_v23, 0.0  ;;  %v691_v43 = vmul.f32 %v7023_v56, %v605_v7  ;;  %v694_v20 = vmul.f32 %v7142_v18, %v7023_v56 }
 0x141   : > { %1476 = vst.msk [vmem:[#allocation2 + $0x14c] sm:$0xf] %vm1004_vm2, %v5814_v32  ;;  %v7162_v42 = vmax.f32 %v732_v28, 0.0  ;;  %v6486_v44 = vld [vmem:[#allocation2 + $0xc0] sm:$0xff]   ;;  %v5755_v45 = vpack.c.bf16 %v898_v39, %v898_v39  ;;  %1320 = vst.msk [vmem:[#allocation2 + $0xd0] sm:$0xf] %vm1004_vm2, %v5787_v35  ;;  %v5785_v48 = vpack.c.bf16 %v758_v36, %v758_v36  ;;  %v5788_v13 = vpack.c.bf16 %v761_v37, %v761_v37 }
 0x142   : > { %v829_v46 = vrot.slane %v758_v36, 7  ;;  %v926_v47 = vrot.slane %v758_v36, 1  ;;  %v621_v49 = vpop.f32.mrf.mxu0  ;;  %v833_v50 = vrot.slane %v761_v37, 7  ;;  %v930_v51 = vrot.slane %v761_v37, 1  ;;  %6076 = vmatprep.mubr.msk.bf16.mxu1 %vm1646_vm3, %v6486_v44  ;;  %v6490_v31 = vld [vmem:[#allocation2 + $0x128] sm:$0xff]  }
 0x143   : > { %v830_v52 = vrot.slane %v759_v40, 7  ;;  %1159 = vst.msk [vmem:[#allocation2 + $0x40] sm:$0xf] %vm1004_vm2, %v5755_v45  ;;  %1318 = vst.msk [vmem:[#allocation2 + $0xc8] sm:$0xf] %vm1004_vm2, %v5785_v48  ;;  %v927_v54 = vrot.slane %v759_v40, 1  ;;  %v5786_v55 = vpack.c.bf16 %v759_v40, %v759_v40  ;;  %v5791_v17 = vpack.c.bf16 %v7162_v42, %v7162_v42 }
 0x144   : > { %v897_v53 = vsel %vm810_vm4, 0.0, %v829_v46  ;;  %v838_v41 = vrot.slane %v7162_v42, 7  ;;  %v6053_v57 = vpop.f32.mrf.mxu0  ;;  %v834_v62 = vsel %vm810_vm4, %v832_v33, %v833_v50  ;;  %v931_v63 = vsel %vm907_vm5, %v929_v34, %v930_v51  ;;  %1321 = vst.msk [vmem:[#allocation2 + $0xd4] sm:$0xf] %vm1004_vm2, %v5788_v13  ;;  %v6487_v1 = vld [vmem:[#allocation2 + $0xb8] sm:$0xff]  }
 0x145   : > { %v5753_v60 = vpack.c.bf16 %v897_v53, %v897_v53  ;;  %v995_v0 = vsel %vm907_vm5, %v930_v51, 0.0  ;;  %v5756_v2 = vpack.c.bf16 %v834_v62, %v834_v62  ;;  %v5819_v3 = vpack.c.bf16 %v931_v63, %v931_v63  ;;  %1319 = vst.msk [vmem:[#allocation2 + $0xcc] sm:$0xf] %vm1004_vm2, %v5786_v55  ;;  %6073 = vmatmul.mubr.msk.bf16.gmra.mxu0 %vm1646_vm3, %v6487_v1  ;;  %v7219_v37 = vld [vmem:[#allocation6 + $0xc] sm:$0xf]  ;;  %v6492_v53 = vld [vmem:[#allocation2 + $0x130] sm:$0xff]  }
 0x146   : > { %v5820_v4 = vpack.c.bf16 %v995_v0, %v995_v0  ;;  %v831_v5 = vsel %vm810_vm4, %v829_v46, %v830_v52  ;;  %v624_v6 = vpop.f32.mrf.mxu0  ;;  %v928_v7 = vsel %vm907_vm5, %v926_v47, %v927_v54  ;;  %v994_v8 = vsel %vm907_vm5, %v927_v54, 0.0  ;;  %6132 = vmatprep.mubr.msk.bf16.mxu0 %vm1646_vm3, %v6488_v59  ;;  %1324 = vst.msk [vmem:[#allocation2 + $0xe0] sm:$0xf] %vm1004_vm2, %v5791_v17 }
 0x147   : > { %1157 = vst.msk [vmem:[#allocation2 + $0x38] sm:$0xf] %vm1004_vm2, %v5753_v60  ;;  %v5754_v9 = vpack.c.bf16 %v831_v5, %v831_v5  ;;  %v900_v10 = vsel %vm810_vm4, 0.0, %v838_v41  ;;  %1160 = vst.msk [vmem:[#allocation2 + $0x44] sm:$0xf] %vm1004_vm2, %v5756_v2  ;;  %v5817_v11 = vpack.c.bf16 %v928_v7, %v928_v7  ;;  %v5818_v12 = vpack.c.bf16 %v994_v8, %v994_v8 }
 0x148   : > { %1481 = vst.msk [vmem:[#allocation2 + $0x160] sm:$0xf] %vm1004_vm2, %v5819_v3  ;;  %1482 = vst.msk [vmem:[#allocation2 + $0x164] sm:$0xf] %vm1004_vm2, %v5820_v4  ;;  %v935_v14 = vrot.slane %v7162_v42, 1  ;;  %v5759_v15 = vpack.c.bf16 %v900_v10, %v900_v10  ;;  %v6056_v16 = vpop.f32.mrf.mxu0  ;;  %v730_v19 = vadd.f32 %v7028_v58, %v691_v43  ;;  %v692_v21 = vmul.f32 %v7023_v56, %v7153_v29 }
 0x149   : > { %1158 = vst.msk [vmem:[#allocation2 + $0x3c] sm:$0xf] %vm1004_vm2, %v5754_v9  ;;  %1479 = vst.msk [vmem:[#allocation2 + $0x158] sm:$0xf] %vm1004_vm2, %v5817_v11  ;;  %v697_v23 = vmul.f32 %v7156_v38, %v7023_v56  ;;  %v695_v24 = vmul.f32 %v7023_v56, %v621_v49  ;;  %v698_v25 = vmul.f32 %v6053_v57, %v7023_v56  ;;  %v6494_v11 = vld [vmem:[#allocation2 + $0x138] sm:$0xff]  }
 0x14a   : > { %1480 = vst.msk [vmem:[#allocation2 + $0x15c] sm:$0xf] %vm1004_vm2, %v5818_v12  ;;  %1163 = vst.msk [vmem:[#allocation2 + $0x50] sm:$0xf] %vm1004_vm2, %v5759_v15  ;;  %v696_v26 = vmul.f32 %v7023_v56, %v624_v6  ;;  %v7205_v27 = vpop.f32.mrf.mxu0  ;;  %v762_v18 = vmax.f32 %v730_v19, 0.0  ;;  %v733_v28 = vadd.f32 %v7028_v58, %v694_v20  ;;  %v731_v29 = vadd.f32 %v7028_v58, %v692_v21 }
 0x14b   : > { %v7211_v30 = vmul.f32 %v6056_v16, %v7023_v56  ;;  %v736_v32 = vadd.f32 %v7028_v58, %v697_v23  ;;  %v734_v33 = vadd.f32 %v7028_v58, %v695_v24  ;;  %v737_v34 = vadd.f32 %v7028_v58, %v698_v25  ;;  %v6491_v36 = vld [vmem:[#allocation2 + $0xd0] sm:$0xff]   ;;  %v6496_v23 = vld [vmem:[#allocation2 + $0x140] sm:$0xff]  }
 0x14c   : > { %v7217_v35 = vadd.f32 %v7028_v58, %v696_v26  ;;  %v835_v38 = vrot.slane %v762_v18, 7  ;;  %v932_v39 = vrot.slane %v762_v18, 1  ;;  %v5789_v40 = vpack.c.bf16 %v762_v18, %v762_v18  ;;  %v6489_v44 = vld [vmem:[#allocation2 + $0xc8] sm:$0xff]   ;;  %v7221_v45 = vpop.f32.mrf.mxu0 }
 0x14d   : > { %v765_v43 = vmax.f32 %v733_v28, 0.0  ;;  %v763_v46 = vmax.f32 %v731_v29, 0.0  ;;  %v7223_v47 = vmax.f32 %v736_v32, 0.0  ;;  %v7225_v48 = vmax.f32 %v734_v33, 0.0  ;;  %6077 = vmatmul.mubr.msk.bf16.vlgmr.msra.gmra.mxu1 %vm1646_vm3, %v6489_v44  ;;  %6133 = vmatmul.mubr.msk.bf16.vlgmr.msra.gmra.mxu0 %vm1646_vm3, %v6490_v31 }
 0x14e   : > { %v7227_v49 = vmax.f32 %v737_v34, 0.0  ;;  %v899_v50 = vsel %vm810_vm4, 0.0, %v835_v38  ;;  %1322 = vst.msk [vmem:[#allocation2 + $0xd8] sm:$0xf] %vm1004_vm2, %v5789_v40  ;;  %6097 = vmatpush3.bf16.msra.mxu1 %v7048_v22  ;;  %6080 = vmatprep.mubr.msk.bf16.mxu1 %vm1646_vm3, %v6491_v36  ;;  %v7243_v1 = vpop.f32.mrf.mxu0  ;;  %v767_v21 = vmax.f32 %v7217_v35, 0.0  ;;  %v740_v25 = vadd.f32 %v7028_v58, %v7211_v30 }
 0x14f   : > { %v839_v51 = vrot.slane %v765_v43, 7  ;;  %v936_v13 = vrot.slane %v765_v43, 1  ;;  %v5792_v52 = vpack.c.bf16 %v765_v43, %v765_v43  ;;  %v5757_v54 = vpack.c.bf16 %v899_v50, %v899_v50  ;;  %6136 = vmatprep.mubr.msk.bf16.mxu0 %vm1646_vm3, %v6492_v53  ;;  %6408 = vmatprep.subr.msk.bf16.mxu1 %vm1695_vm1, %v7219_v37 }
 0x150   : > { %v836_v55 = vrot.slane %v763_v46, 7  ;;  %v933_v57 = vrot.slane %v763_v46, 1  ;;  %v5790_v59 = vpack.c.bf16 %v763_v46, %v763_v46  ;;  %v844_v0 = vrot.slane %v7223_v47, 7  ;;  %6199 = vmatpush3.bf16.msra.mxu0 %v7075_v61  ;;  %v6060_v16 = vpop.f32.mrf.mxu0 }
 0x151   : > { %v840_v60 = vsel %vm810_vm4, %v838_v41, %v839_v51  ;;  %v937_v62 = vsel %vm907_vm5, %v935_v14, %v936_v13  ;;  %v997_v63 = vsel %vm907_vm5, %v936_v13, 0.0  ;;  %1325 = vst.msk [vmem:[#allocation2 + $0xe4] sm:$0xf] %vm1004_vm2, %v5792_v52  ;;  %1161 = vst.msk [vmem:[#allocation2 + $0x48] sm:$0xf] %vm1004_vm2, %v5757_v54  ;;  %v941_v9 = vrot.slane %v7223_v47, 1 }
 0x152   : > { %v5760_v22 = vpack.c.bf16 %v840_v60, %v840_v60  ;;  %v5823_v42 = vpack.c.bf16 %v937_v62, %v937_v62  ;;  %v5824_v41 = vpack.c.bf16 %v997_v63, %v997_v63  ;;  %v837_v2 = vsel %vm810_vm4, %v835_v38, %v836_v55  ;;  %1323 = vst.msk [vmem:[#allocation2 + $0xdc] sm:$0xf] %vm1004_vm2, %v5790_v59  ;;  %v653_v36 = vpop.f32.mrf.mxu0 }
 0x153   : > { %v934_v3 = vsel %vm907_vm5, %v932_v39, %v933_v57  ;;  %v996_v4 = vsel %vm907_vm5, %v933_v57, 0.0  ;;  %v5758_v5 = vpack.c.bf16 %v837_v2, %v837_v2  ;;  %v902_v6 = vsel %vm810_vm4, 0.0, %v844_v0  ;;  %v6498_v57 = vld [vmem:[#allocation2 + $0x148] sm:$0xff]  }
 0x154   : > { %1164 = vst.msk [vmem:[#allocation2 + $0x54] sm:$0xf] %vm1004_vm2, %v5760_v22  ;;  %1485 = vst.msk [vmem:[#allocation2 + $0x170] sm:$0xf] %vm1004_vm2, %v5823_v42  ;;  %v5821_v7 = vpack.c.bf16 %v934_v3, %v934_v3  ;;  %v5822_v8 = vpack.c.bf16 %v996_v4, %v996_v4  ;;  %v5763_v10 = vpack.c.bf16 %v902_v6, %v902_v6  ;;  %v841_v12 = vrot.slane %v7225_v48, 7  ;;  %v6061_v55 = vpop.f32.mrf.mxu0 }
 0x155   : > { %1486 = vst.msk [vmem:[#allocation2 + $0x174] sm:$0xf] %vm1004_vm2, %v5824_v41  ;;  %1162 = vst.msk [vmem:[#allocation2 + $0x4c] sm:$0xf] %vm1004_vm2, %v5758_v5  ;;  %v5795_v61 = vpack.c.bf16 %v7223_v47, %v7223_v47  ;;  %v938_v14 = vrot.slane %v7225_v48, 1  ;;  %v5793_v15 = vpack.c.bf16 %v7225_v48, %v7225_v48  ;;  %v845_v17 = vrot.slane %v7227_v49, 7  ;;  %6137 = vmatmul.mubr.msk.bf16.gmra.mxu0 %vm1646_vm3, %v6494_v11 }
 0x156   : > { %1483 = vst.msk [vmem:[#allocation2 + $0x168] sm:$0xf] %vm1004_vm2, %v5821_v7  ;;  %1484 = vst.msk [vmem:[#allocation2 + $0x16c] sm:$0xf] %vm1004_vm2, %v5822_v8  ;;  %v942_v19 = vrot.slane %v7227_v49, 1  ;;  %v5796_v20 = vpack.c.bf16 %v7227_v49, %v7227_v49  ;;  %v901_v24 = vsel %vm810_vm4, 0.0, %v841_v12  ;;  %v699_v26 = vmul.f32 %v7023_v56, %v7205_v27  ;;  %6140 = vmatprep.mubr.msk.bf16.mxu0 %vm1646_vm3, %v6496_v23 }
 0x157   : > { %1167 = vst.msk [vmem:[#allocation2 + $0x60] sm:$0xf] %vm1004_vm2, %v5763_v10  ;;  %1328 = vst.msk [vmem:[#allocation2 + $0xf0] sm:$0xf] %vm1004_vm2, %v5795_v61  ;;  %v702_v18 = vmul.f32 %v7221_v45, %v7023_v56  ;;  %v5761_v28 = vpack.c.bf16 %v901_v24, %v901_v24  ;;  %v846_v29 = vsel %vm810_vm4, %v844_v0, %v845_v17  ;;  %v842_v27 = vrot.slane %v767_v21, 7  ;;  %v6500_v0 = vld [vmem:[#allocation2 + $0x150] sm:$0xff]  }
 0x158   : > { %1326 = vst.msk [vmem:[#allocation2 + $0xe8] sm:$0xf] %vm1004_vm2, %v5793_v15  ;;  %v943_v31 = vsel %vm907_vm5, %v941_v9, %v942_v19  ;;  %v999_v32 = vsel %vm907_vm5, %v942_v19, 0.0  ;;  %1329 = vst.msk [vmem:[#allocation2 + $0xf4] sm:$0xf] %vm1004_vm2, %v5796_v20  ;;  %v5764_v30 = vpack.c.bf16 %v846_v29, %v846_v29  ;;  %v939_v38 = vrot.slane %v767_v21, 1 }
 0x159   : > { %v5827_v33 = vpack.c.bf16 %v943_v31, %v943_v31  ;;  %v5828_v34 = vpack.c.bf16 %v999_v32, %v999_v32  ;;  %v6493_v35 = vld [vmem:[#allocation2 + $0xd8] sm:$0xff]   ;;  %1165 = vst.msk [vmem:[#allocation2 + $0x58] sm:$0xf] %vm1004_vm2, %v5761_v28  ;;  %v5794_v39 = vpack.c.bf16 %v767_v21, %v767_v21  ;;  %v772_v40 = vmax.f32 %v740_v25, 0.0  ;;  %v6495_v44 = vld [vmem:[#allocation2 + $0xe0] sm:$0xff]  }
 0x15a   : > { %v738_v43 = vadd.f32 %v7028_v58, %v699_v26  ;;  %1168 = vst.msk [vmem:[#allocation2 + $0x64] sm:$0xf] %vm1004_vm2, %v5764_v30  ;;  %v843_v45 = vsel %vm810_vm4, %v841_v12, %v842_v27  ;;  %v741_v46 = vadd.f32 %v7028_v58, %v702_v18  ;;  %v700_v47 = vmul.f32 %v7023_v56, %v7243_v1  ;;  %v6502_v29 = vld [vmem:[#allocation2 + $0x158] sm:$0xff]   ;;  %v6504_v31 = vld [vmem:[#allocation2 + $0x160] sm:$0xff]   ;;  %v656_v27 = vpop.f32.mrf.mxu0 }
 0x15b   : > { %1489 = vst.msk [vmem:[#allocation2 + $0x180] sm:$0xf] %vm1004_vm2, %v5827_v33  ;;  %1490 = vst.msk [vmem:[#allocation2 + $0x184] sm:$0xf] %vm1004_vm2, %v5828_v34  ;;  %v705_v48 = vmul.f32 %v6060_v16, %v7023_v56  ;;  %6081 = vmatmul.mubr.msk.bf16.gmra.mxu1 %vm1646_vm3, %v6493_v35  ;;  %v940_v49 = vsel %vm907_vm5, %v938_v14, %v939_v38  ;;  %v998_v50 = vsel %vm907_vm5, %v939_v38, 0.0  ;;  %v850_v13 = vrot.slane %v772_v40, 7 }
 0x15c   : > { %v5762_v51 = vpack.c.bf16 %v843_v45, %v843_v45  ;;  %1327 = vst.msk [vmem:[#allocation2 + $0xec] sm:$0xf] %vm1004_vm2, %v5794_v39  ;;  %6084 = vmatprep.mubr.msk.bf16.mxu1 %vm1646_vm3, %v6495_v44  ;;  %v5825_v52 = vpack.c.bf16 %v940_v49, %v940_v49  ;;  %v5826_v53 = vpack.c.bf16 %v998_v50, %v998_v50  ;;  %v770_v60 = vmax.f32 %v738_v43, 0.0 }
 0x15d   : > { %v5799_v54 = vpack.c.bf16 %v772_v40, %v772_v40  ;;  %v904_v59 = vsel %vm810_vm4, 0.0, %v850_v13  ;;  %v773_v62 = vmax.f32 %v741_v46, 0.0  ;;  %v739_v63 = vadd.f32 %v7028_v58, %v700_v47  ;;  %6141 = vmatmul.mubr.msk.bf16.gmra.mxu0 %vm1646_vm3, %v6498_v57  ;;  %v6626_v46 = vld [vmem:[%s8574_s2] ss:$0 sm:$0xff] }
 0x15e   : > { %1166 = vst.msk [vmem:[#allocation2 + $0x5c] sm:$0xf] %vm1004_vm2, %v5762_v51  ;;  %1487 = vst.msk [vmem:[#allocation2 + $0x178] sm:$0xf] %vm1004_vm2, %v5825_v52  ;;  %v947_v1 = vrot.slane %v772_v40, 1  ;;  %v5767_v22 = vpack.c.bf16 %v904_v59, %v904_v59  ;;  %v744_v42 = vadd.f32 %v7028_v58, %v705_v48  ;;  %v703_v41 = vmul.f32 %v7023_v56, %v653_v36 }
 0x15f   : > { %1488 = vst.msk [vmem:[#allocation2 + $0x17c] sm:$0xf] %vm1004_vm2, %v5826_v53  ;;  %1332 = vst.msk [vmem:[#allocation2 + $0x100] sm:$0xf] %vm1004_vm2, %v5799_v54  ;;  %v847_v2 = vrot.slane %v770_v60, 7  ;;  %v5797_v3 = vpack.c.bf16 %v770_v60, %v770_v60  ;;  %v851_v4 = vrot.slane %v773_v62, 7  ;;  %v706_v5 = vmul.f32 %v6061_v55, %v7023_v56  ;;  %6144 = vmatprep.mubr.msk.bf16.mxu0 %vm1646_vm3, %v6500_v0 }
 0x160   : > { %1171 = vst.msk [vmem:[#allocation2 + $0x70] sm:$0xf] %vm1004_vm2, %v5767_v22  ;;  %v948_v6 = vrot.slane %v773_v62, 1  ;;  %v5800_v7 = vpack.c.bf16 %v773_v62, %v773_v62  ;;  %v771_v8 = vmax.f32 %v739_v63, 0.0  ;;  %v7315_v9 = vmax.f32 %v744_v42, 0.0  ;;  %v6499_v24 = vld [vmem:[#allocation2 + $0xf0] sm:$0xff]  }
 0x161   : > { %v903_v58 = vsel %vm810_vm4, 0.0, %v847_v2  ;;  %v944_v10 = vrot.slane %v770_v60, 1  ;;  %1330 = vst.msk [vmem:[#allocation2 + $0xf8] sm:$0xf] %vm1004_vm2, %v5797_v3  ;;  %v852_v11 = vsel %vm810_vm4, %v850_v13, %v851_v4  ;;  %v6625_v56 = vld [vmem:[%s8575_s3] ss:$0 sm:$0xff]  ;;  %v704_v47 = vmul.f32 %v6626_v46, %v656_v27 }
 0x162   : > { %v742_v61 = vadd.f32 %v6625_v56, %v703_v41  ;;  %v5765_v12 = vpack.c.bf16 %v903_v58, %v903_v58  ;;  %v949_v14 = vsel %vm907_vm5, %v947_v1, %v948_v6  ;;  %v1001_v15 = vsel %vm907_vm5, %v948_v6, 0.0  ;;  %1333 = vst.msk [vmem:[#allocation2 + $0x104] sm:$0xf] %vm1004_vm2, %v5800_v7  ;;  %v6507_v54 = vld [vmem:[#allocation2 + $0x170] sm:$0xff]   ;;  %v6506_v60 = vld [vmem:[#allocation2 + $0x168] sm:$0xff]   ;;  %v6530_v27 = vld [vmem:[#allocation2 + $0xc0] sm:$0xff]  }
 0x163   : > { %v5768_v16 = vpack.c.bf16 %v852_v11, %v852_v11  ;;  %v6497_v17 = vld [vmem:[#allocation2 + $0xe8] sm:$0xff]   ;;  %v5831_v19 = vpack.c.bf16 %v949_v14, %v949_v14  ;;  %v5832_v20 = vpack.c.bf16 %v1001_v15, %v1001_v15  ;;  %v848_v21 = vrot.slane %v771_v8, 7 }
 0x164   : > { %v945_v23 = vrot.slane %v771_v8, 1  ;;  %1169 = vst.msk [vmem:[#allocation2 + $0x68] sm:$0xf] %vm1004_vm2, %v5765_v12  ;;  %v5798_v25 = vpack.c.bf16 %v771_v8, %v771_v8  ;;  %v856_v26 = vrot.slane %v7315_v9, 7  ;;  %v5803_v18 = vpack.c.bf16 %v7315_v9, %v7315_v9  ;;  %6085 = vmatmul.mubr.msk.bf16.gmra.mxu1 %vm1646_vm3, %v6497_v17  ;;  %v6509_v17 = vld [vmem:[#allocation2 + $0x8] sm:$0xff]  }
 0x165   : > { %1172 = vst.msk [vmem:[#allocation2 + $0x74] sm:$0xf] %vm1004_vm2, %v5768_v16  ;;  %v745_v28 = vadd.f32 %v6625_v56, %v706_v5  ;;  %1493 = vst.msk [vmem:[#allocation2 + $0x190] sm:$0xf] %vm1004_vm2, %v5831_v19  ;;  %v849_v32 = vsel %vm810_vm4, %v847_v2, %v848_v21  ;;  %v774_v34 = vmax.f32 %v742_v61, 0.0  ;;  %6088 = vmatprep.mubr.msk.bf16.mxu1 %vm1646_vm3, %v6499_v24  ;;  %6145 = vmatmul.mubr.msk.bf16.gmra.mxu0 %vm1646_vm3, %v6502_v29  ;;  %v6512_v61 = vld [vmem:[#allocation2 + $0x180] sm:$0xff]  }
 0x166   : > { %1494 = vst.msk [vmem:[#allocation2 + $0x194] sm:$0xf] %vm1004_vm2, %v5832_v20  ;;  %v946_v30 = vsel %vm907_vm5, %v944_v10, %v945_v23  ;;  %v1000_v33 = vsel %vm907_vm5, %v945_v23, 0.0  ;;  %v5766_v35 = vpack.c.bf16 %v849_v32, %v849_v32  ;;  %1331 = vst.msk [vmem:[#allocation2 + $0xfc] sm:$0xf] %vm1004_vm2, %v5798_v25  ;;  %v906_v39 = vsel %vm810_vm4, 0.0, %v856_v26  ;;  %6148 = vmatprep.mubr.msk.bf16.mxu0 %vm1646_vm3, %v6504_v31 }
 0x167   : > { %v5829_v36 = vpack.c.bf16 %v946_v30, %v946_v30  ;;  %v5830_v38 = vpack.c.bf16 %v1000_v33, %v1000_v33  ;;  %1336 = vst.msk [vmem:[#allocation2 + $0x110] sm:$0xf] %vm1004_vm2, %v5803_v18  ;;  %v5771_v40 = vpack.c.bf16 %v906_v39, %v906_v39  ;;  %v853_v43 = vrot.slane %v774_v34, 7  ;;  %v3617_v2 = vld [vmem:[#allocation6 + $0x18] sm:$0xf]  ;;  %v6510_v11 = vld [vmem:[#allocation2 + $0x178] sm:$0xff]  }
 0x168   : > { %v5801_v44 = vpack.c.bf16 %v774_v34, %v774_v34  ;;  %1170 = vst.msk [vmem:[#allocation2 + $0x6c] sm:$0xf] %vm1004_vm2, %v5766_v35  ;;  %v777_v45 = vmax.f32 %v745_v28, 0.0  ;;  %v953_v48 = vrot.slane %v7315_v9, 1  ;;  %v743_v53 = vadd.f32 %v6625_v56, %v704_v47  ;;  %6411 = vmatprep.subr.msk.bf16.mxu0 %vm1695_vm1, %v3617_v2  ;;  %v6508_v56 = vld [vmem:[#allocation2] sm:$0xff]   ;;  %v6511_v16 = vld [vmem:[#allocation2 + $0x10] sm:$0xff]  }
 0x169   : > { %1491 = vst.msk [vmem:[#allocation2 + $0x188] sm:$0xf] %vm1004_vm2, %v5829_v36  ;;  %1492 = vst.msk [vmem:[#allocation2 + $0x18c] sm:$0xf] %vm1004_vm2, %v5830_v38  ;;  %v905_v49 = vsel %vm810_vm4, 0.0, %v853_v43  ;;  %v950_v42 = vrot.slane %v774_v34, 1 }
 0x16a   : > { %1175 = vst.msk [vmem:[#allocation2 + $0x80] sm:$0xf] %vm1004_vm2, %v5771_v40  ;;  %1334 = vst.msk [vmem:[#allocation2 + $0x108] sm:$0xf] %vm1004_vm2, %v5801_v44  ;;  %v5769_v50 = vpack.c.bf16 %v905_v49, %v905_v49  ;;  %v857_v51 = vrot.slane %v777_v45, 7  ;;  %v954_v13 = vrot.slane %v777_v45, 1  ;;  %v5804_v52 = vpack.c.bf16 %v777_v45, %v777_v45 }
 0x16b   : > { %v775_v1 = vmax.f32 %v743_v53, 0.0  ;;  %v6503_v41 = vld [vmem:[#allocation2 + $0x100] sm:$0xff]   ;;  %v2673_v19 = vsel %vm1695_vm1, %v7219_v37, 0  ;;  %v6520_v23 = vld [vmem:[#allocation2 + $0x98] sm:$0xff]   ;;  %v6524_v18 = vld [vmem:[#allocation2 + $0xa8] sm:$0xff]  }
 0x16c   : > { %1173 = vst.msk [vmem:[#allocation2 + $0x78] sm:$0xf] %vm1004_vm2, %v5769_v50  ;;  %v858_v55 = vsel %vm810_vm4, %v856_v26, %v857_v51  ;;  %v955_v57 = vsel %vm907_vm5, %v953_v48, %v954_v13  ;;  %v1003_v59 = vsel %vm907_vm5, %v954_v13, 0.0  ;;  %1337 = vst.msk [vmem:[#allocation2 + $0x114] sm:$0xf] %vm1004_vm2, %v5804_v52  ;;  %v6513_v24 = vld [vmem:[#allocation2 + $0x18] sm:$0xff]  }
 0x16d   : > { %v5772_v62 = vpack.c.bf16 %v858_v55, %v858_v55  ;;  %v5835_v63 = vpack.c.bf16 %v955_v57, %v955_v57  ;;  %v5836_v0 = vpack.c.bf16 %v1003_v59, %v1003_v59  ;;  %v6501_v22 = vld [vmem:[#allocation2 + $0xf8] sm:$0xff]   ;;  %6149 = vmatmul.mubr.msk.bf16.gmra.mxu0 %vm1646_vm3, %v6506_v60  ;;  %v854_v3 = vrot.slane %v775_v1, 7  ;;  %v6516_v15 = vld [vmem:[#allocation2 + $0x190] sm:$0xff]   ;;  %v7381_v20 = vld [vmem:[#allocation6 + $0x14] sm:$0xf] }
 0x16e   : > { %v951_v4 = vrot.slane %v775_v1, 1  ;;  %v5802_v5 = vpack.c.bf16 %v775_v1, %v775_v1  ;;  %6089 = vmatmul.mubr.msk.bf16.gmra.mxu1 %vm1646_vm3, %v6501_v22  ;;  %6152 = vmatprep.mubr.msk.bf16.mxu0 %vm1646_vm3, %v6507_v54  ;;  %v6515_v25 = vld [vmem:[#allocation2 + $0x20] sm:$0xff]   ;;  %v3747_v26 = vsel %vm1695_vm1, %v3617_v2, 0  ;;  %v6517_v28 = vld [vmem:[#allocation2 + $0x28] sm:$0xff]   ;;  %v6519_v29 = vld [vmem:[#allocation2 + $0x30] sm:$0xff]   ;;  %v3389_v55 = vsel %vm1695_vm1, %v7381_v20, 0 }
 0x16f   : > { %1176 = vst.msk [vmem:[#allocation2 + $0x84] sm:$0xf] %vm1004_vm2, %v5772_v62  ;;  %1497 = vst.msk [vmem:[#allocation2 + $0x1a0] sm:$0xf] %vm1004_vm2, %v5835_v63  ;;  %6092 = vmatprep.mubr.msk.bf16.mxu1 %vm1646_vm3, %v6503_v41  ;;  %v855_v6 = vsel %vm810_vm4, %v853_v43, %v854_v3  ;;  %v6522_v37 = vld [vmem:[#allocation2 + $0xa0] sm:$0xff]   ;;  %v6526_v32 = vld [vmem:[#allocation2 + $0xb0] sm:$0xff]  }
 0x170   : > { %1498 = vst.msk [vmem:[#allocation2 + $0x1a4] sm:$0xf] %vm1004_vm2, %v5836_v0  ;;  %v952_v7 = vsel %vm907_vm5, %v950_v42, %v951_v4  ;;  %v1002_v8 = vsel %vm907_vm5, %v951_v4, 0.0  ;;  %1335 = vst.msk [vmem:[#allocation2 + $0x10c] sm:$0xf] %vm1004_vm2, %v5802_v5  ;;  %v5770_v9 = vpack.c.bf16 %v855_v6, %v855_v6  ;;  %v6514_v14 = vld [vmem:[#allocation2 + $0x188] sm:$0xff]  }
 0x171   : > { %v5833_v58 = vpack.c.bf16 %v952_v7, %v952_v7  ;;  %v5834_v10 = vpack.c.bf16 %v1002_v8, %v1002_v8  ;;  %v7394_v31 = vld [vmem:[#allocation6 + $0x20] sm:$0xf]  ;;  %v6528_v30 = vld [vmem:[#allocation2 + $0xb8] sm:$0xff]   ;;  %v6523_v34 = vld [vmem:[#allocation2 + $0x40] sm:$0xff]  }
 0x172   : > { %1174 = vst.msk [vmem:[#allocation2 + $0x7c] sm:$0xf] %vm1004_vm2, %v5770_v9  ;;  %v6521_v33 = vld [vmem:[#allocation2 + $0x38] sm:$0xff]   ;;  %v6532_v35 = vld [vmem:[#allocation2 + $0xc8] sm:$0xff]   ;;  %v6527_v38 = vld [vmem:[#allocation2 + $0x50] sm:$0xff]   ;;  %v4463_v22 = vsel %vm1695_vm1, %v7394_v31, 0 }
 0x173   : > { %1495 = vst.msk [vmem:[#allocation2 + $0x198] sm:$0xf] %vm1004_vm2, %v5833_v58  ;;  %1496 = vst.msk [vmem:[#allocation2 + $0x19c] sm:$0xf] %vm1004_vm2, %v5834_v10  ;;  %v6525_v36 = vld [vmem:[#allocation2 + $0x48] sm:$0xff]   ;;  %v6534_v39 = vld [vmem:[#allocation2 + $0xd0] sm:$0xff]  }
 0x174   : > { %v6536_v40 = vld [vmem:[#allocation2 + $0xd8] sm:$0xff]   ;;  %v6531_v44 = vld [vmem:[#allocation2 + $0x60] sm:$0xff]   ;;  %v6540_v46 = vld [vmem:[#allocation2 + $0xe8] sm:$0xff]  }
 0x175   : > { %6153 = vmatmul.mubr.msk.bf16.gmra.mxu0 %vm1646_vm3, %v6510_v11  ;;  %v6529_v43 = vld [vmem:[#allocation2 + $0x58] sm:$0xff]   ;;  %v6538_v45 = vld [vmem:[#allocation2 + $0xe0] sm:$0xff]   ;;  %v6533_v47 = vld [vmem:[#allocation2 + $0x68] sm:$0xff]  }
 0x176   : > { %6156 = vmatprep.mubr.msk.bf16.mxu0 %vm1646_vm3, %v6512_v61  ;;  %v6535_v48 = vld [vmem:[#allocation2 + $0x70] sm:$0xff]   ;;  %v6544_v50 = vld [vmem:[#allocation2 + $0xf8] sm:$0xff]   ;;  %v6539_v13 = vld [vmem:[#allocation2 + $0x8] sm:$0xff]  }
 0x177   : > { %v6505_v12 = vld [vmem:[#allocation2 + $0x108] sm:$0xff]   ;;  %v6542_v49 = vld [vmem:[#allocation2 + $0xf0] sm:$0xff]   ;;  %v6546_v52 = vld [vmem:[#allocation2 + $0x100] sm:$0xff]  }
 0x178   : > { %6093 = vmatmul.mubr.msk.bf16.gmra.mxu1 %vm1646_vm3, %v6505_v12  ;;  %v6548_v53 = vld [vmem:[#allocation2 + $0x108] sm:$0xff]   ;;  %v6541_v54 = vld [vmem:[#allocation2 + $0x10] sm:$0xff]   ;;  %v6543_v57 = vld [vmem:[#allocation2 + $0x18] sm:$0xff]  }
 0x179   : > { %6098 = vmatprep.mubr.msk.bf16.mxu1 %vm1646_vm3, %v6508_v56  ;;  %v6537_v51 = vld [vmem:[#allocation2 + $0x78] sm:$0xff]   ;;  %v7424_v59 = vld [vmem:[#allocation6 + $0x1c] sm:$0xf]  ;;  %v6550_v60 = vld [vmem:[#allocation2 + $0x110] sm:$0xff]  }
 0x17a   : > { %v6518_v21 = vld [vmem:[#allocation2 + $0x198] sm:$0xff]   ;;  %v6552_v62 = vld [vmem:[#allocation2 + $0x10] sm:$0xff]   ;;  %v6545_v63 = vld [vmem:[#allocation2 + $0x20] sm:$0xff]  }
 0x17b   : > { %v6547_v0 = vld [vmem:[#allocation2 + $0x28] sm:$0xff]   ;;  %v6554_v1 = vld [vmem:[#allocation2 + $0x18] sm:$0xff]   ;;  %v6556_v42 = vld [vmem:[#allocation2 + $0x20] sm:$0xff]  }
 0x17c   : > { %v6549_v41 = vld [vmem:[#allocation2 + $0x30] sm:$0xff]   ;;  %v6551_v2 = vld [vmem:[#allocation2 + $0x38] sm:$0xff]   ;;  %v6558_v3 = vld [vmem:[#allocation2 + $0x28] sm:$0xff]  }
 0x17d   : > { %6157 = vmatmul.mubr.msk.bf16.gmra.mxu0 %vm1646_vm3, %v6514_v14  ;;  %v6560_v4 = vld [vmem:[#allocation2 + $0x30] sm:$0xff]   ;;  %v6553_v5 = vld [vmem:[#allocation2 + $0x40] sm:$0xff]   ;;  %v6555_v6 = vld [vmem:[#allocation2 + $0x48] sm:$0xff]  }
 0x17e   : > { %6160 = vmatprep.mubr.msk.bf16.mxu0 %vm1646_vm3, %v6516_v15  ;;  %v6562_v7 = vld [vmem:[#allocation2 + $0x38] sm:$0xff]   ;;  %v6564_v8 = vld [vmem:[#allocation2 + $0x40] sm:$0xff]   ;;  %v6557_v9 = vld [vmem:[#allocation2 + $0x50] sm:$0xff]  }
 0x17f   : > { %v6559_v58 = vld [vmem:[#allocation2 + $0x58] sm:$0xff]   ;;  %v6566_v10 = vld [vmem:[#allocation2 + $0x48] sm:$0xff]   ;;  %v6568_v11 = vld [vmem:[#allocation2 + $0x50] sm:$0xff]  }
 0x180   : > { %6099 = vmatmul.mubr.msk.bf16.vlgmr.msra.gmra.mxu1 %vm1646_vm3, %v6509_v17  ;;  %v6561_v56 = vld [vmem:[#allocation2 + $0x60] sm:$0xff]   ;;  %v6563_v61 = vld [vmem:[#allocation2 + $0x68] sm:$0xff]   ;;  %v6570_v12 = vld [vmem:[#allocation2 + $0x58] sm:$0xff]  }
 0x181   : > { %6165 = vmatpush3.bf16.msra.mxu1 %v2673_v19  ;;  %6102 = vmatprep.mubr.msk.bf16.mxu1 %vm1646_vm3, %v6511_v16  ;;  %v6572_v14 = vld [vmem:[#allocation2 + $0x60] sm:$0xff]   ;;  %v6565_v15 = vld [vmem:[#allocation2 + $0x70] sm:$0xff]   ;;  %v6567_v16 = vld [vmem:[#allocation2 + $0x78] sm:$0xff]  }
 0x182   : > { %6410 = vmatprep.subr.msk.bf16.mxu1 %vm1695_vm1, %v7381_v20  ;;  %v6574_v19 = vld [vmem:[#allocation2 + $0x68] sm:$0xff]  }
 0x185   : > { %6161 = vmatmul.mubr.msk.bf16.gmra.mxu0 %vm1646_vm3, %v6518_v21  ;;  %v6576_v21 = vld [vmem:[#allocation2 + $0x70] sm:$0xff]  }
 0x186   : > { %6200 = vmatprep.mubr.msk.bf16.mxu0 %vm1646_vm3, %v6520_v23 }
 0x188   : > { %6103 = vmatmul.mubr.msk.bf16.gmra.mxu1 %vm1646_vm3, %v6513_v24  ;;  %v6569_v24 = vld [vmem:[#allocation2 + $0x80] sm:$0xff]  }
 0x189   : > { %6106 = vmatprep.mubr.msk.bf16.mxu1 %vm1646_vm3, %v6515_v25  ;;  %v6571_v25 = vld [vmem:[#allocation2 + $0x128] sm:$0xff]  }
 0x18d   : > { %6201 = vmatmul.mubr.msk.bf16.vlgmr.msra.gmra.mxu0 %vm1646_vm3, %v6522_v37 }
 0x18e   : > { %6204 = vmatprep.mubr.msk.bf16.mxu0 %vm1646_vm3, %v6524_v18  ;;  %6267 = vmatpush3.bf16.msra.mxu0 %v3747_v26  ;;  %v6578_v26 = vld [vmem:[#allocation2 + $0x78] sm:$0xff]  }
 0x18f   : > { %6413 = vmatprep.subr.msk.bf16.mxu0 %vm1695_vm1, %v7394_v31  ;;  %v6573_v31 = vld [vmem:[#allocation2 + $0x130] sm:$0xff]  }
 0x190   : > { %6107 = vmatmul.mubr.msk.bf16.gmra.mxu1 %vm1646_vm3, %v6517_v28  ;;  %v6580_v28 = vld [vmem:[#allocation2 + $0x80] sm:$0xff]  }
 0x191   : > { %6110 = vmatprep.mubr.msk.bf16.mxu1 %vm1646_vm3, %v6519_v29 }
 0x195   : > { %6205 = vmatmul.mubr.msk.bf16.gmra.mxu0 %vm1646_vm3, %v6526_v32  ;;  %v4105_v32 = vsel %vm1695_vm1, %v7424_v59, 0 }
 0x196   : > { %6208 = vmatprep.mubr.msk.bf16.mxu0 %vm1646_vm3, %v6528_v30  ;;  %v6575_v30 = vld [vmem:[#allocation2 + $0x138] sm:$0xff]  }
 0x198   : > { %6111 = vmatmul.mubr.msk.bf16.gmra.mxu1 %vm1646_vm3, %v6521_v33 }
 0x199   : > { %6114 = vmatprep.mubr.msk.bf16.mxu1 %vm1646_vm3, %v6523_v34  ;;  %v6582_v34 = vld [vmem:[#allocation2 + $0x88] sm:$0xff]  }
 0x19d   : > { %6209 = vmatmul.mubr.msk.bf16.gmra.mxu0 %vm1646_vm3, %v6530_v27 }
 0x19e   : > { %6212 = vmatprep.mubr.msk.bf16.mxu0 %vm1646_vm3, %v6532_v35  ;;  %v6584_v35 = vld [vmem:[#allocation2 + $0x130] sm:$0xff]  }
 0x1a0   : > { %6115 = vmatmul.mubr.msk.bf16.gmra.mxu1 %vm1646_vm3, %v6525_v36 }
 0x1a1   : > { %6118 = vmatprep.mubr.msk.bf16.mxu1 %vm1646_vm3, %v6527_v38  ;;  %v6577_v38 = vld [vmem:[#allocation2 + $0x140] sm:$0xff]  }
 0x1a5   : > { %6213 = vmatmul.mubr.msk.bf16.gmra.mxu0 %vm1646_vm3, %v6534_v39 }
 0x1a6   : > { %6216 = vmatprep.mubr.msk.bf16.mxu0 %vm1646_vm3, %v6536_v40  ;;  %v6579_v40 = vld [vmem:[#allocation2 + $0x148] sm:$0xff]  }
 0x1a8   : > { %6119 = vmatmul.mubr.msk.bf16.gmra.mxu1 %vm1646_vm3, %v6529_v43 }
 0x1a9   : > { %6122 = vmatprep.mubr.msk.bf16.mxu1 %vm1646_vm3, %v6531_v44 }
 0x1ad   : > { %6217 = vmatmul.mubr.msk.bf16.gmra.mxu0 %vm1646_vm3, %v6538_v45  ;;  %v6586_v45 = vld [vmem:[#allocation2 + $0x138] sm:$0xff]  }
 0x1ae   : > { %6220 = vmatprep.mubr.msk.bf16.mxu0 %vm1646_vm3, %v6540_v46  ;;  %v6588_v46 = vld [vmem:[#allocation2 + $0x140] sm:$0xff]  }
 0x1b0   : > { %6123 = vmatmul.mubr.msk.bf16.gmra.mxu1 %vm1646_vm3, %v6533_v47 }
 0x1b1   : > { %6126 = vmatprep.mubr.msk.bf16.mxu1 %vm1646_vm3, %v6535_v48 }
 0x1b5   : > { %6221 = vmatmul.mubr.msk.bf16.gmra.mxu0 %vm1646_vm3, %v6542_v49  ;;  %v6581_v49 = vld [vmem:[#allocation2 + $0x150] sm:$0xff]  }
 0x1b6   : > { %6224 = vmatprep.mubr.msk.bf16.mxu0 %vm1646_vm3, %v6544_v50 }
 0x1b8   : > { %6127 = vmatmul.mubr.msk.bf16.gmra.mxu1 %vm1646_vm3, %v6537_v51 }
 0x1b9   : > { %6166 = vmatprep.mubr.msk.bf16.mxu1 %vm1646_vm3, %v6539_v13  ;;  %v6583_v13 = vld [vmem:[#allocation2 + $0x158] sm:$0xff]  }
 0x1bd   : > { %6225 = vmatmul.mubr.msk.bf16.gmra.mxu0 %vm1646_vm3, %v6546_v52 }
 0x1be   : > { %6228 = vmatprep.mubr.msk.bf16.mxu0 %vm1646_vm3, %v6548_v53 }
 0x1c0   : > { %6167 = vmatmul.mubr.msk.bf16.vlgmr.msra.gmra.mxu1 %vm1646_vm3, %v6541_v54 }
 0x1c1   : > { %6233 = vmatpush3.bf16.msra.mxu1 %v3389_v55  ;;  %6170 = vmatprep.mubr.msk.bf16.mxu1 %vm1646_vm3, %v6543_v57  ;;  %v6590_v55 = vld [vmem:[#allocation2 + $0x148] sm:$0xff]   ;;  %v6592_v57 = vld [vmem:[#allocation2 + $0x150] sm:$0xff]  }
 0x1c2   : > { %6412 = vmatprep.subr.msk.bf16.mxu1 %vm1695_vm1, %v7424_v59 }
 0x1c5   : > { %6229 = vmatmul.mubr.msk.bf16.gmra.mxu0 %vm1646_vm3, %v6550_v60 }
 0x1c6   : > { %6268 = vmatprep.mubr.msk.bf16.mxu0 %vm1646_vm3, %v6552_v62  ;;  %v6585_v62 = vld [vmem:[#allocation2 + $0x160] sm:$0xff]  }
 0x1c8   : > { %6171 = vmatmul.mubr.msk.bf16.gmra.mxu1 %vm1646_vm3, %v6545_v63 }
 0x1c9   : > { %6174 = vmatprep.mubr.msk.bf16.mxu1 %vm1646_vm3, %v6547_v0  ;;  %v6587_v0 = vld [vmem:[#allocation2 + $0x168] sm:$0xff]  }
 0x1cd   : > { %6269 = vmatmul.mubr.msk.bf16.vlgmr.msra.gmra.mxu0 %vm1646_vm3, %v6554_v1 }
 0x1ce   : > { %6272 = vmatprep.mubr.msk.bf16.mxu0 %vm1646_vm3, %v6556_v42  ;;  %6335 = vmatpush3.bf16.msra.mxu0 %v4463_v22 }
 0x1d0   : > { %6175 = vmatmul.mubr.msk.bf16.gmra.mxu1 %vm1646_vm3, %v6549_v41 }
 0x1d1   : > { %6178 = vmatprep.mubr.msk.bf16.mxu1 %vm1646_vm3, %v6551_v2  ;;  %v6594_v2 = vld [vmem:[#allocation2 + $0x158] sm:$0xff]  }
 0x1d5   : > { %6273 = vmatmul.mubr.msk.bf16.gmra.mxu0 %vm1646_vm3, %v6558_v3  ;;  %v6596_v3 = vld [vmem:[#allocation2 + $0x160] sm:$0xff]  }
 0x1d6   : > { %6276 = vmatprep.mubr.msk.bf16.mxu0 %vm1646_vm3, %v6560_v4 }
 0x1d8   : > { %6179 = vmatmul.mubr.msk.bf16.gmra.mxu1 %vm1646_vm3, %v6553_v5 }
 0x1d9   : > { %6182 = vmatprep.mubr.msk.bf16.mxu1 %vm1646_vm3, %v6555_v6  ;;  %v6589_v6 = vld [vmem:[#allocation2 + $0x170] sm:$0xff]  }
 0x1dd   : > { %6277 = vmatmul.mubr.msk.bf16.gmra.mxu0 %vm1646_vm3, %v6562_v7 }
 0x1de   : > { %6280 = vmatprep.mubr.msk.bf16.mxu0 %vm1646_vm3, %v6564_v8 }
 0x1e0   : > { %6183 = vmatmul.mubr.msk.bf16.gmra.mxu1 %vm1646_vm3, %v6557_v9  ;;  %v6591_v9 = vld [vmem:[#allocation2 + $0x178] sm:$0xff]  }
 0x1e1   : > { %6186 = vmatprep.mubr.msk.bf16.mxu1 %vm1646_vm3, %v6559_v58 }
 0x1e5   : > { %6281 = vmatmul.mubr.msk.bf16.gmra.mxu0 %vm1646_vm3, %v6566_v10 }
 0x1e6   : > { %6284 = vmatprep.mubr.msk.bf16.mxu0 %vm1646_vm3, %v6568_v11 }
 0x1e8   : > { %6187 = vmatmul.mubr.msk.bf16.gmra.mxu1 %vm1646_vm3, %v6561_v56  ;;  %v6598_v56 = vld [vmem:[#allocation2 + $0x168] sm:$0xff]  }
 0x1e9   : > { %6190 = vmatprep.mubr.msk.bf16.mxu1 %vm1646_vm3, %v6563_v61  ;;  %v6600_v61 = vld [vmem:[#allocation2 + $0x170] sm:$0xff]  }
 0x1ed   : > { %6285 = vmatmul.mubr.msk.bf16.gmra.mxu0 %vm1646_vm3, %v6570_v12 }
 0x1ee   : > { %6288 = vmatprep.mubr.msk.bf16.mxu0 %vm1646_vm3, %v6572_v14 }
 0x1f0   : > { %6191 = vmatmul.mubr.msk.bf16.gmra.mxu1 %vm1646_vm3, %v6565_v15  ;;  %v6593_v15 = vld [vmem:[#allocation2 + $0x180] sm:$0xff]  }
 0x1f1   : > { %v7455_v17 = vpop.f32.mrf.mxu0  ;;  %6194 = vmatprep.mubr.msk.bf16.mxu1 %vm1646_vm3, %v6567_v16 }
 0x1f3   : > { %v7458_v20 = vpop.f32.mrf.mxu0 }
 0x1f5   : > { %6289 = vmatmul.mubr.msk.bf16.gmra.mxu0 %vm1646_vm3, %v6574_v19  ;;  %v7461_v23 = vpop.f32.mrf.mxu0 }
 0x1f6   : > { %6292 = vmatprep.mubr.msk.bf16.mxu0 %vm1646_vm3, %v6576_v21  ;;  %v6595_v21 = vld [vmem:[#allocation2 + $0x188] sm:$0xff]  }
 0x1f7   : > { %v7464_v37 = vpop.f32.mrf.mxu0 }
 0x1f8   : > { %6195 = vmatmul.mubr.msk.bf16.gmra.mxu1 %vm1646_vm3, %v6569_v24 }
 0x1f9   : > { %6234 = vmatprep.mubr.msk.bf16.mxu1 %vm1646_vm3, %v6571_v25 }
 0x1fd   : > { %v7468_v18 = vpop.f32.mrf.mxu0  ;;  %6293 = vmatmul.mubr.msk.bf16.gmra.mxu0 %vm1646_vm3, %v6578_v26 }
 0x1fe   : > { %6296 = vmatprep.mubr.msk.bf16.mxu0 %vm1646_vm3, %v6580_v28  ;;  %v6602_v28 = vld [vmem:[#allocation2 + $0x178] sm:$0xff]  }
 0x1ff   : > { %v7472_v29 = vpop.f32.mrf.mxu0 }
 0x200   : > { %6235 = vmatmul.mubr.msk.bf16.vlgmr.msra.gmra.mxu1 %vm1646_vm3, %v6573_v31  ;;  %v6604_v31 = vld [vmem:[#allocation2 + $0x180] sm:$0xff]  }
 0x201   : > { %v7476_v33 = vpop.f32.mrf.mxu0  ;;  %6301 = vmatpush3.bf16.msra.mxu1 %v4105_v32  ;;  %6238 = vmatprep.mubr.msk.bf16.mxu1 %vm1646_vm3, %v6575_v30 }
 0x203   : > { %v7480_v27 = vpop.f32.mrf.mxu0 }
 0x205   : > { %v7482_v36 = vpop.f32.mrf.mxu0  ;;  %6297 = vmatmul.mubr.msk.bf16.gmra.mxu0 %vm1646_vm3, %v6582_v34  ;;  %v6597_v34 = vld [vmem:[#allocation2 + $0x190] sm:$0xff]  }
 0x206   : > { %6336 = vmatprep.mubr.msk.bf16.mxu0 %vm1646_vm3, %v6584_v35 }
 0x207   : > { %v7486_v39 = vpop.f32.mrf.mxu0 }
 0x208   : > { %6239 = vmatmul.mubr.msk.bf16.gmra.mxu1 %vm1646_vm3, %v6577_v38  ;;  %v6599_v38 = vld [vmem:[#allocation2 + $0x198] sm:$0xff]  }
 0x209   : > { %v7489_v43 = vpop.f32.mrf.mxu0  ;;  %6242 = vmatprep.mubr.msk.bf16.mxu1 %vm1646_vm3, %v6579_v40 }
 0x20b   : > { %v7492_v44 = vpop.f32.mrf.mxu0 }
 0x20d   : > { %v7494_v47 = vpop.f32.mrf.mxu1  ;;  %v7496_v48 = vpop.f32.mrf.mxu0  ;;  %6337 = vmatmul.mubr.msk.bf16.vlgmr.msra.gmra.mxu0 %vm1646_vm3, %v6586_v45 }
 0x20e   : > { %6340 = vmatprep.mubr.msk.bf16.mxu0 %vm1646_vm3, %v6588_v46 }
 0x20f   : > { %v7500_v50 = vpop.f32.mrf.mxu1  ;;  %v7502_v51 = vpop.f32.mrf.mxu0 }
 0x210   : > { %6243 = vmatmul.mubr.msk.bf16.gmra.mxu1 %vm1646_vm3, %v6581_v49 }
 0x211   : > { %v7505_v52 = vpop.f32.mrf.mxu1  ;;  %v7507_v53 = vpop.f32.mrf.mxu0  ;;  %6246 = vmatprep.mubr.msk.bf16.mxu1 %vm1646_vm3, %v6583_v13  ;;  %v6606_v13 = vld [vmem:[#allocation2 + $0x188] sm:$0xff]  }
 0x213   : > { %v7510_v54 = vpop.f32.mrf.mxu0  ;;  %v7512_v59 = vpop.f32.mrf.mxu1 }
 0x215   : > { %v7514_v60 = vpop.f32.mrf.mxu0  ;;  %6341 = vmatmul.mubr.msk.bf16.gmra.mxu0 %vm1646_vm3, %v6590_v55  ;;  %v6608_v55 = vld [vmem:[#allocation2 + $0x190] sm:$0xff]  }
 0x216   : > { %6344 = vmatprep.mubr.msk.bf16.mxu0 %vm1646_vm3, %v6592_v57 }
 0x217   : > { %v7518_v63 = vpop.f32.mrf.mxu0 }
 0x218   : > { %6247 = vmatmul.mubr.msk.bf16.gmra.mxu1 %vm1646_vm3, %v6585_v62 }
 0x219   : > { %v7523_v22 = vpop.f32.mrf.mxu0  ;;  %6250 = vmatprep.mubr.msk.bf16.mxu1 %vm1646_vm3, %v6587_v0  ;;  %v6601_v0 = vld [vmem:[#allocation2 + $0x1a0] sm:$0xff]  }
 0x21b   : > { %v7521_v1 = vpop.f32.mrf.mxu1  ;;  %v7528_v41 = vpop.f32.mrf.mxu0 }
 0x21d   : > { %v7526_v42 = vpop.f32.mrf.mxu1  ;;  %v7532_v5 = vpop.f32.mrf.mxu0  ;;  %6345 = vmatmul.mubr.msk.bf16.gmra.mxu0 %vm1646_vm3, %v6594_v2 }
 0x21e   : > { %6348 = vmatprep.mubr.msk.bf16.mxu0 %vm1646_vm3, %v6596_v3  ;;  %v6603_v3 = vld [vmem:[#allocation2 + $0xa0] sm:$0xff]  }
 0x21f   : > { %v7530_v4 = vpop.f32.mrf.mxu1  ;;  %v7538_v8 = vpop.f32.mrf.mxu0 }
 0x220   : > { %6251 = vmatmul.mubr.msk.bf16.gmra.mxu1 %vm1646_vm3, %v6589_v6 }
 0x221   : > { %v7536_v7 = vpop.f32.mrf.mxu1  ;;  %v7541_v58 = vpop.f32.mrf.mxu0  ;;  %6254 = vmatprep.mubr.msk.bf16.mxu1 %vm1646_vm3, %v6591_v9 }
 0x222   : > { %8607 = vst [vmem:[#allocation15_spill] sm:$0xff] %v7536_v7 }
 0x223   : > { %v7546_v11 = vpop.f32.mrf.mxu0 }
 0x224   : > { %v7544_v10 = vpop.f32.mrf.mxu1 }
 0x225   : > { %v7550_v14 = vpop.f32.mrf.mxu0  ;;  %6349 = vmatmul.mubr.msk.bf16.gmra.mxu0 %vm1646_vm3, %v6598_v56 }
 0x226   : > { %v7548_v12 = vpop.f32.mrf.mxu1  ;;  %6352 = vmatprep.mubr.msk.bf16.mxu0 %vm1646_vm3, %v6600_v61 }
 0x227   : > { %v7556_v19 = vpop.f32.mrf.mxu0 }
 0x228   : > { %v7554_v16 = vpop.f32.mrf.mxu1  ;;  %6255 = vmatmul.mubr.msk.bf16.gmra.mxu1 %vm1646_vm3, %v6593_v15  ;;  %v6610_v15 = vld [vmem:[#allocation2 + $0x198] sm:$0xff]  }
 0x229   : > { %v7559_v24 = vpop.f32.mrf.mxu0  ;;  %6258 = vmatprep.mubr.msk.bf16.mxu1 %vm1646_vm3, %v6595_v21  ;;  %v6612_v21 = vld [vmem:[#allocation2 + $0x1a0] sm:$0xff]  }
 0x22a   : > { %v7562_v25 = vpop.f32.mrf.mxu1 }
 0x22b   : > { %8608 = vst [vmem:[#allocation16_spill] sm:$0xff] %v7562_v25  ;;  %v7564_v26 = vpop.f32.mrf.mxu0 }
 0x22d   : > { %v7566_v32 = vpop.f32.mrf.mxu0  ;;  %6353 = vmatmul.mubr.msk.bf16.gmra.mxu0 %vm1646_vm3, %v6602_v28 }
 0x22e   : > { %v7569_v30 = vpop.f32.mrf.mxu1  ;;  %6356 = vmatprep.mubr.msk.bf16.mxu0 %vm1646_vm3, %v6604_v31 }
 0x22f   : > { %v7572_v35 = vpop.f32.mrf.mxu0 }
 0x230   : > { %v7574_v40 = vpop.f32.mrf.mxu1  ;;  %6259 = vmatmul.mubr.msk.bf16.gmra.mxu1 %vm1646_vm3, %v6597_v34 }
 0x231   : > { %v7577_v45 = vpop.f32.mrf.mxu0  ;;  %6262 = vmatprep.mubr.msk.bf16.mxu1 %vm1646_vm3, %v6599_v38  ;;  %v6605_v38 = vld [vmem:[#allocation2 + $0xa8] sm:$0xff]  }
 0x232   : > { %v7580_v46 = vpop.f32.mrf.mxu1 }
 0x233   : > { %v7582_v49 = vpop.f32.mrf.mxu0 }
 0x234   : > { %8609 = vst [vmem:[#allocation17_spill] sm:$0xff] %v7582_v49  ;;  %v7584_v57 = vpop.f32.mrf.mxu1 }
 0x235   : > { %v7586_v62 = vpop.f32.mrf.mxu0  ;;  %6357 = vmatmul.mubr.msk.bf16.gmra.mxu0 %vm1646_vm3, %v6606_v13 }
 0x236   : > { %6360 = vmatprep.mubr.msk.bf16.mxu0 %vm1646_vm3, %v6608_v55  ;;  %v6607_v55 = vld [vmem:[#allocation2 + $0xb0] sm:$0xff]  }
 0x237   : > { %v7590_v2 = vpop.f32.mrf.mxu0 }
 0x238   : > { %v7592_v6 = vpop.f32.mrf.mxu1  ;;  %6263 = vmatmul.mubr.msk.bf16.gmra.mxu1 %vm1646_vm3, %v6601_v0 }
 0x239   : > { %v7595_v9 = vpop.f32.mrf.mxu0  ;;  %6302 = vmatprep.mubr.msk.bf16.mxu1 %vm1646_vm3, %v6603_v3 }
 0x23a   : > { %v7598_v56 = vpop.f32.mrf.mxu1 }
 0x23b   : > { %8610 = vst [vmem:[#allocation18_spill] sm:$0xff] %v7598_v56  ;;  %v7600_v61 = vpop.f32.mrf.mxu0 }
 0x23c   : > { %8611 = vst [vmem:[#allocation19_spill] sm:$0xff] %v7600_v61  ;;  %v7602_v28 = vpop.f32.mrf.mxu1  ;;  %v6623_v61 = vld [vmem:[#allocation2 + $0x1a8] sm:$0xff]  }
 0x23d   : > { %8612 = vst [vmem:[#allocation20_spill] sm:$0xff] %v7602_v28  ;;  %v7604_v31 = vpop.f32.mrf.mxu0  ;;  %6361 = vmatmul.mubr.msk.bf16.gmra.mxu0 %vm1646_vm3, %v6610_v15 }
 0x23e   : > { %6364 = vmatprep.mubr.msk.bf16.mxu0 %vm1646_vm3, %v6612_v21  ;;  %v7608_v34 = vpop.f32.mrf.mxu1 }
 0x23f   : > { %8613 = vst [vmem:[#allocation21_spill] sm:$0xff] %v7608_v34  ;;  %v7610_v13 = vpop.f32.mrf.mxu0 }
 0x240   : > { %v6100_v0 = vpop.f32.mrf.mxu1  ;;  %6303 = vmatmul.mubr.msk.bf16.vlgmr.msra.gmra.mxu1 %vm1646_vm3, %v6605_v38 }
 0x241   : > { %v7613_v3 = vpop.f32.mrf.mxu0  ;;  %v2034_v25 = vadd.f32 %v6100_v0, %v7455_v17  ;;  %6306 = vmatprep.mubr.msk.bf16.mxu1 %vm1646_vm3, %v6607_v55  ;;  %v6609_v55 = vld [vmem:[#allocation2 + $0xb8] sm:$0xff]  }
 0x242   : > { %v2025_v49 = vpop.f32.mrf.mxu1 }
 0x243   : > { %v7617_v15 = vpop.f32.mrf.mxu0  ;;  %v2026_v21 = vadd.f32 %v2025_v49, %v7458_v20  ;;  %v7621_v7 = vadd.f32 %v7496_v48, %v2034_v25  ;;  %v6611_v20 = vld [vmem:[#allocation2 + $0xc0] sm:$0xff]  }
 0x244   : > { %8614 = vst [vmem:[#allocation22_spill] sm:$0xff] %v7617_v15  ;;  %v6101_v34 = vpop.f32.mrf.mxu1 }
 0x245   : > { %v7623_v28 = vpop.f32.mrf.mxu0  ;;  %6365 = vmatmul.mubr.msk.bf16.gmra.mxu0 %vm1646_vm3, %v6623_v61  ;;  %v2037_v38 = vadd.f32 %v6101_v34, %v7461_v23  ;;  %v7628_v56 = vadd.f32 %v7502_v51, %v2026_v21 }
 0x246   : > { %v2028_v17 = vpop.f32.mrf.mxu1 }
 0x247   : > { %v7630_v0 = vpop.f32.mrf.mxu0  ;;  %v2029_v15 = vadd.f32 %v2028_v17, %v7464_v37  ;;  %v7634_v48 = vadd.f32 %v7507_v53, %v2037_v38 }
 0x248   : > { %v6104_v25 = vpop.f32.mrf.mxu1  ;;  %6307 = vmatmul.mubr.msk.bf16.gmra.mxu1 %vm1646_vm3, %v6609_v55 }
 0x249   : > { %v7637_v49 = vpop.f32.mrf.mxu0  ;;  %v2050_v23 = vadd.f32 %v6104_v25, %v7468_v18  ;;  %6310 = vmatprep.mubr.msk.bf16.mxu1 %vm1646_vm3, %v6611_v20  ;;  %v7642_v51 = vadd.f32 %v7510_v54, %v2029_v15  ;;  %v6613_v20 = vld [vmem:[#allocation2 + $0xc8] sm:$0xff]   ;;  %v6614_v25 = vld [vmem:[#allocation2 + $0xd0] sm:$0xff]  }
 0x24a   : > { %v2041_v61 = vpop.f32.mrf.mxu1 }
 0x24b   : > { %v7644_v34 = vpop.f32.mrf.mxu0  ;;  %v2042_v37 = vadd.f32 %v2041_v61, %v7472_v29  ;;  %v7648_v53 = vadd.f32 %v7514_v60, %v2050_v23 }
 0x24c   : > { %v6105_v21 = vpop.f32.mrf.mxu1 }
 0x24d   : > { %v7650_v38 = vpop.f32.mrf.mxu0  ;;  %v2053_v17 = vadd.f32 %v6105_v21, %v7476_v33  ;;  %v7654_v18 = vadd.f32 %v7518_v63, %v2042_v37  ;;  %v4784_v21 = vld [vmem:[%s8579_s7] sm:$0xf] }
 0x24e   : > { %v2044_v55 = vpop.f32.mrf.mxu1  ;;  %6414 = vmatprep.subr.msk.bf16.mxu1 %vm1695_vm1, %v4784_v21 }
 0x24f   : > { %v7656_v54 = vpop.f32.mrf.mxu0  ;;  %v2045_v15 = vadd.f32 %v2044_v55, %v7480_v27  ;;  %v7660_v29 = vadd.f32 %v7523_v22, %v2053_v17 }
 0x250   : > { %v6108_v60 = vpop.f32.mrf.mxu1  ;;  %6311 = vmatmul.mubr.msk.bf16.gmra.mxu1 %vm1646_vm3, %v6613_v20  ;;  %v4834_v20 = vsel %vm1695_vm1, %v4784_v21, 0 }
 0x251   : > { %v7663_v23 = vpop.f32.mrf.mxu0  ;;  %v2066_v33 = vadd.f32 %v6108_v60, %v7482_v36  ;;  %6314 = vmatprep.mubr.msk.bf16.mxu1 %vm1646_vm3, %v6614_v25  ;;  %v7668_v63 = vadd.f32 %v7528_v41, %v2045_v15  ;;  %v6615_v15 = vld [vmem:[#allocation2 + $0xd8] sm:$0xff]   ;;  %6369 = vmatpush3.bf16.msra.mxu1 %v4834_v20  ;;  %v6616_v60 = vld [vmem:[#allocation2 + $0xe0] sm:$0xff]  }
 0x252   : > { %v2057_v61 = vpop.f32.mrf.mxu1 }
 0x253   : > { %v7670_v37 = vpop.f32.mrf.mxu0  ;;  %v2058_v27 = vadd.f32 %v2057_v61, %v7486_v39  ;;  %v7674_v22 = vadd.f32 %v7532_v5, %v2066_v33 }
 0x254   : > { %v6109_v17 = vpop.f32.mrf.mxu1 }
 0x255   : > { %v7679_v55 = vpop.f32.mrf.mxu0  ;;  %v2069_v36 = vadd.f32 %v6109_v17, %v7489_v43  ;;  %v7684_v41 = vadd.f32 %v7538_v8, %v2058_v27 }
 0x256   : > { %v2060_v39 = vpop.f32.mrf.mxu1 }
 0x257   : > { %v7687_v5 = vpop.f32.mrf.mxu0  ;;  %v2061_v25 = vadd.f32 %v2060_v39, %v7492_v44  ;;  %v7691_v33 = vadd.f32 %v7541_v58, %v2069_v36 }
 0x258   : > { %v6112_v61 = vpop.f32.mrf.mxu1  ;;  %6315 = vmatmul.mubr.msk.bf16.gmra.mxu1 %vm1646_vm3, %v6615_v15 }
 0x259   : > { %v7694_v43 = vpop.f32.mrf.mxu0  ;;  %v2082_v8 = vadd.f32 %v6112_v61, %v7494_v47  ;;  %6318 = vmatprep.mubr.msk.bf16.mxu1 %vm1646_vm3, %v6616_v60  ;;  %v7699_v27 = vadd.f32 %v7546_v11, %v2061_v25  ;;  %v6617_v60 = vld [vmem:[#allocation2 + $0xe8] sm:$0xff]   ;;  %v6618_v61 = vld [vmem:[#allocation2 + $0xf0] sm:$0xff]  }
 0x25a   : > { %v2073_v21 = vpop.f32.mrf.mxu1 }
 0x25b   : > { %v7701_v17 = vpop.f32.mrf.mxu0  ;;  %v2074_v44 = vadd.f32 %v2073_v21, %v7500_v50  ;;  %v7705_v58 = vadd.f32 %v7550_v14, %v2082_v8 }
 0x25c   : > { %v6113_v36 = vpop.f32.mrf.mxu1 }
 0x25d   : > { %v7707_v20 = vpop.f32.mrf.mxu0  ;;  %v2085_v39 = vadd.f32 %v6113_v36, %v7505_v52  ;;  %v7711_v47 = vadd.f32 %v7556_v19, %v2074_v44 }
 0x25e   : > { %v2076_v15 = vpop.f32.mrf.mxu1 }
 0x25f   : > { %v7713_v11 = vpop.f32.mrf.mxu0  ;;  %v2077_v25 = vadd.f32 %v2076_v15, %v7512_v59  ;;  %v7717_v50 = vadd.f32 %v7559_v24, %v2085_v39 }
 0x260   : > { %v6116_v14 = vpop.f32.mrf.mxu1  ;;  %6319 = vmatmul.mubr.msk.bf16.gmra.mxu1 %vm1646_vm3, %v6617_v60 }
 0x261   : > { %v7720_v8 = vpop.f32.mrf.mxu0  ;;  %v2098_v52 = vadd.f32 %v6116_v14, %v7521_v1  ;;  %6322 = vmatprep.mubr.msk.bf16.mxu1 %vm1646_vm3, %v6618_v61  ;;  %v7725_v19 = vadd.f32 %v7564_v26, %v2077_v25  ;;  %v6619_v26 = vld [vmem:[#allocation2 + $0xf8] sm:$0xff]   ;;  %v6620_v61 = vld [vmem:[#allocation2 + $0x100] sm:$0xff]  }
 0x262   : > { %v2089_v21 = vpop.f32.mrf.mxu1 }
 0x263   : > { %v7727_v44 = vpop.f32.mrf.mxu0  ;;  %v2090_v59 = vadd.f32 %v2089_v21, %v7526_v42  ;;  %v7731_v24 = vadd.f32 %v7566_v32, %v2098_v52 }
 0x264   : > { %v6117_v36 = vpop.f32.mrf.mxu1 }
 0x265   : > { %v7733_v39 = vpop.f32.mrf.mxu0  ;;  %v2101_v15 = vadd.f32 %v6117_v36, %v7530_v4  ;;  %v7737_v1 = vadd.f32 %v7572_v35, %v2090_v59 }
 0x266   : > { %v7739_v60 = vpop.f32.mrf.mxu1 }
 0x267   : > { %8615 = vst [vmem:[#allocation23_spill] sm:$0xff] %v7737_v1  ;;  %v7741_v25 = vpop.f32.mrf.mxu0  ;;  %v7744_v14 = vadd.f32 %v7577_v45, %v2101_v15 }
 0x268   : > { %v6120_v42 = vpop.f32.mrf.mxu1  ;;  %6323 = vmatmul.mubr.msk.bf16.gmra.mxu1 %vm1646_vm3, %v6619_v26 }
 0x269   : > { %8616 = vst [vmem:[#allocation24_spill] sm:$0xff] %v7744_v14  ;;  %v7747_v32 = vpop.f32.mrf.mxu0  ;;  %v2114_v52 = vadd.f32 %v6120_v42, %v7544_v10  ;;  %6326 = vmatprep.mubr.msk.bf16.mxu1 %vm1646_vm3, %v6620_v61  ;;  %v6621_v10 = vld [vmem:[#allocation2 + $0x108] sm:$0xff]   ;;  %v6622_v42 = vld [vmem:[#allocation2 + $0x110] sm:$0xff]  }
 0x26a   : > { %v2105_v4 = vpop.f32.mrf.mxu1 }
 0x26b   : > { %v7751_v35 = vpop.f32.mrf.mxu0  ;;  %v2106_v21 = vadd.f32 %v2105_v4, %v7548_v12  ;;  %v7755_v59 = vadd.f32 %v7586_v62, %v2114_v52 }
 0x26c   : > { %v6121_v36 = vpop.f32.mrf.mxu1 }
 0x26d   : > { %v7757_v45 = vpop.f32.mrf.mxu0  ;;  %v2117_v15 = vadd.f32 %v6121_v36, %v7554_v16  ;;  %v7761_v26 = vadd.f32 %v7590_v2, %v2106_v21 }
 0x26e   : > { %v7763_v14 = vpop.f32.mrf.mxu1 }
 0x26f   : > { %8617 = vst [vmem:[#allocation25_spill] sm:$0xff] %v7761_v26  ;;  %v7765_v61 = vpop.f32.mrf.mxu0  ;;  %v7768_v1 = vadd.f32 %v7595_v9, %v2117_v15  ;;  %v6624_v9 = vld [vmem:[#allocation2 + $0x118] sm:$0xff]  }
 0x270   : > { %v6124_v12 = vpop.f32.mrf.mxu1  ;;  %6327 = vmatmul.mubr.msk.bf16.gmra.mxu1 %vm1646_vm3, %v6621_v10 }
 0x271   : > { %8618 = vst [vmem:[#allocation26_spill] sm:$0xff] %v7768_v1  ;;  %v7771_v62 = vpop.f32.mrf.mxu0  ;;  %v2130_v52 = vadd.f32 %v6124_v12, %v7569_v30  ;;  %6330 = vmatprep.mubr.msk.bf16.mxu1 %vm1646_vm3, %v6622_v42 }
 0x272   : > { %v2121_v16 = vpop.f32.mrf.mxu1 }
 0x273   : > { %v7775_v2 = vpop.f32.mrf.mxu0  ;;  %v2122_v4 = vadd.f32 %v2121_v16, %v7574_v40  ;;  %v7779_v21 = vadd.f32 %v7604_v31, %v2130_v52  ;;  %v8621_v16 = vld [vmem:[#allocation22_spill] sm:$0xff] }
 0x274   : > { %v6125_v36 = vpop.f32.mrf.mxu1 }
 0x275   : > { %v7781_v15 = vpop.f32.mrf.mxu0  ;;  %v2133_v10 = vadd.f32 %v6125_v36, %v7580_v46  ;;  %v7785_v1 = vadd.f32 %v7610_v13, %v2122_v4  ;;  %v8623_v36 = vld [vmem:[#allocation18_spill] sm:$0xff] }
 0x276   : > { %v2124_v30 = vpop.f32.mrf.mxu1 }
 0x277   : > { %8619 = vst [vmem:[#allocation27_spill] sm:$0xff] %v7785_v1  ;;  %v7787_v12 = vpop.f32.mrf.mxu0  ;;  %v2125_v42 = vadd.f32 %v2124_v30, %v7584_v57  ;;  %v7791_v26 = vadd.f32 %v7613_v3, %v2133_v10  ;;  %v8624_v30 = vld [vmem:[#allocation20_spill] sm:$0xff] }
 0x278   : > { %v6128_v40 = vpop.f32.mrf.mxu1  ;;  %6331 = vmatmul.mubr.msk.bf16.gmra.mxu1 %vm1646_vm3, %v6624_v9 }
 0x279   : > { %8620 = vst [vmem:[#allocation28_spill] sm:$0xff] %v7791_v26  ;;  %v7794_v31 = vpop.f32.mrf.mxu0  ;;  %v2146_v52 = vadd.f32 %v6128_v40, %v7592_v6  ;;  %v7798_v46 = vadd.f32 %v8621_v16, %v2125_v42  ;;  %v8625_v42 = vld [vmem:[#allocation21_spill] sm:$0xff] }
 0x27a   : > { %v2137_v13 = vpop.f32.mrf.mxu1 }
 0x27b   : > { %8622 = vst [vmem:[#allocation22_spill] sm:$0xff] %v7798_v46  ;;  %v7800_v4 = vpop.f32.mrf.mxu0  ;;  %v2138_v1 = vadd.f32 %v2137_v13, %v8623_v36  ;;  %v7804_v57 = vadd.f32 %v7623_v28, %v2146_v52 }
 0x27c   : > { %v6129_v3 = vpop.f32.mrf.mxu1 }
 0x27d   : > { %v7806_v10 = vpop.f32.mrf.mxu0  ;;  %v2149_v9 = vadd.f32 %v6129_v3, %v8624_v30  ;;  %v7810_v26 = vadd.f32 %v7630_v0, %v2138_v1 }
 0x27e   : > { %v2140_v6 = vpop.f32.mrf.mxu1 }
 0x27f   : > { %v7812_v40 = vpop.f32.mrf.mxu0  ;;  %v2141_v16 = vadd.f32 %v2140_v6, %v8625_v42  ;;  %v7816_v46 = vadd.f32 %v7637_v49, %v2149_v9 }
 0x280   : > { %v6168_v13 = vpop.f32.mrf.mxu1 }
 0x281   : > { %v7818_v36 = vpop.f32.mrf.mxu0  ;;  %v2838_v28 = vadd.f32 %v6168_v13, %v7621_v7  ;;  %v7822_v52 = vadd.f32 %v7644_v34, %v2141_v16 }
 0x282   : > { %v2709_v3 = vpop.f32.mrf.mxu1 }
 0x283   : > { %v7824_v30 = vpop.f32.mrf.mxu0  ;;  %v2836_v0 = vadd.f32 %v2709_v3, %v7628_v56  ;;  %v7828_v1 = vadd.f32 %v7650_v38, %v2838_v28 }
 0x284   : > { %v6169_v6 = vpop.f32.mrf.mxu1 }
 0x285   : > { %v7830_v42 = vpop.f32.mrf.mxu0  ;;  %v2839_v49 = vadd.f32 %v6169_v6, %v7634_v48  ;;  %v7834_v9 = vadd.f32 %v7656_v54, %v2836_v0 }
 0x286   : > { %v2712_v7 = vpop.f32.mrf.mxu1 }
 0x287   : > { %v7836_v13 = vpop.f32.mrf.mxu0  ;;  %v2837_v34 = vadd.f32 %v2712_v7, %v7642_v51  ;;  %v7840_v16 = vadd.f32 %v7663_v23, %v2839_v49 }
 0x288   : > { %v6172_v56 = vpop.f32.mrf.mxu1 }
 0x289   : > { %v7842_v3 = vpop.f32.mrf.mxu0  ;;  %v2842_v38 = vadd.f32 %v6172_v56, %v7648_v53  ;;  %v7846_v28 = vadd.f32 %v7670_v37, %v2837_v34 }
 0x28a   : > { %v2725_v48 = vpop.f32.mrf.mxu1 }
 0x28b   : > { %v7848_v6 = vpop.f32.mrf.mxu0  ;;  %v2840_v54 = vadd.f32 %v2725_v48, %v7654_v18  ;;  %v7852_v0 = vadd.f32 %v7679_v55, %v2842_v38 }
 0x28c   : > { %v6173_v51 = vpop.f32.mrf.mxu1 }
 0x28d   : > { %v7854_v7 = vpop.f32.mrf.mxu0  ;;  %v2843_v23 = vadd.f32 %v6173_v51, %v7660_v29  ;;  %v7858_v49 = vadd.f32 %v7687_v5, %v2840_v54 }
 0x28e   : > { %v2728_v53 = vpop.f32.mrf.mxu1 }
 0x28f   : > { %v7860_v56 = vpop.f32.mrf.mxu0  ;;  %v2841_v37 = vadd.f32 %v2728_v53, %v7668_v63  ;;  %v7864_v34 = vadd.f32 %v7694_v43, %v2843_v23 }
 0x290   : > { %v6176_v18 = vpop.f32.mrf.mxu1 }
 0x291   : > { %v7866_v48 = vpop.f32.mrf.mxu0  ;;  %v2846_v55 = vadd.f32 %v6176_v18, %v7674_v22  ;;  %v7870_v38 = vadd.f32 %v7701_v17, %v2841_v37 }
 0x292   : > { %v2741_v29 = vpop.f32.mrf.mxu1 }
 0x293   : > { %8626 = vst [vmem:[#allocation18_spill] sm:$0xff] %v7870_v38  ;;  %v7872_v51 = vpop.f32.mrf.mxu0  ;;  %v2844_v5 = vadd.f32 %v2741_v29, %v7684_v41  ;;  %v7876_v54 = vadd.f32 %v7707_v20, %v2846_v55 }
 0x294   : > { %8627 = vst [vmem:[#allocation20_spill] sm:$0xff] %v7872_v51  ;;  %v6177_v63 = vpop.f32.mrf.mxu1  ;;  %v8635_v51 = vld [vmem:[#allocation17_spill] sm:$0xff] }
 0x295   : > { %v7878_v53 = vpop.f32.mrf.mxu0  ;;  %v2847_v43 = vadd.f32 %v6177_v63, %v7691_v33  ;;  %v7882_v23 = vadd.f32 %v7713_v11, %v2844_v5 }
 0x296   : > { %v2744_v22 = vpop.f32.mrf.mxu1 }
 0x297   : > { %v7884_v18 = vpop.f32.mrf.mxu0  ;;  %v2845_v17 = vadd.f32 %v2744_v22, %v7699_v27  ;;  %v7888_v37 = vadd.f32 %v7720_v8, %v2847_v43 }
 0x298   : > { %v6180_v41 = vpop.f32.mrf.mxu1 }
 0x299   : > { %v7890_v29 = vpop.f32.mrf.mxu0  ;;  %v2850_v20 = vadd.f32 %v6180_v41, %v7705_v58  ;;  %v7894_v55 = vadd.f32 %v7727_v44, %v2845_v17 }
 0x29a   : > { %v2757_v33 = vpop.f32.mrf.mxu1 }
 0x29b   : > { %8628 = vst [vmem:[#allocation21_spill] sm:$0xff] %v7894_v55  ;;  %v7896_v63 = vpop.f32.mrf.mxu0  ;;  %v2848_v11 = vadd.f32 %v2757_v33, %v7711_v47  ;;  %v7900_v5 = vadd.f32 %v7733_v39, %v2850_v20  ;;  %v8630_v39 = vld [vmem:[#allocation15_spill] sm:$0xff] }
 0x29c   : > { %8629 = vst [vmem:[#allocation29_spill] sm:$0xff] %v7896_v63  ;;  %v6181_v27 = vpop.f32.mrf.mxu1  ;;  %v2093_v20 = vadd.f32 %v7739_v60, %v8630_v39 }
 0x29d   : > { %v7902_v22 = vpop.f32.mrf.mxu0  ;;  %v2851_v8 = vadd.f32 %v6181_v27, %v7717_v50  ;;  %v7906_v43 = vadd.f32 %v7741_v25, %v2848_v11  ;;  %v8633_v27 = vld [vmem:[#allocation23_spill] sm:$0xff] }
 0x29e   : > { %v2760_v58 = vpop.f32.mrf.mxu1  ;;  %v2495_v60 = vadd.f32 %v8635_v51, %v2093_v20  ;;  %v8637_v20 = vld [vmem:[#allocation25_spill] sm:$0xff] }
 0x29f   : > { %v7908_v41 = vpop.f32.mrf.mxu0  ;;  %v2849_v44 = vadd.f32 %v2760_v58, %v7725_v19  ;;  %v7912_v17 = vadd.f32 %v7747_v32, %v2851_v8  ;;  %v8634_v58 = vld [vmem:[#allocation24_spill] sm:$0xff] }
 0x2a0   : > { %v6184_v47 = vpop.f32.mrf.mxu1 }
 0x2a1   : > { %v7914_v33 = vpop.f32.mrf.mxu0  ;;  %v2854_v55 = vadd.f32 %v6184_v47, %v7731_v24  ;;  %v7920_v50 = vadd.f32 %v7751_v35, %v2849_v44 }
 0x2a2   : > { %v2773_v25 = vpop.f32.mrf.mxu1 }
 0x2a3   : > { %8631 = vst [vmem:[#allocation15_spill] sm:$0xff] %v7920_v50  ;;  %v7922_v11 = vpop.f32.mrf.mxu0  ;;  %v2852_v63 = vadd.f32 %v2773_v25, %v8633_v27  ;;  %v7926_v19 = vadd.f32 %v7757_v45, %v2854_v55  ;;  %v8636_v55 = vld [vmem:[#allocation16_spill] sm:$0xff] }
 0x2a4   : > { %8632 = vst [vmem:[#allocation30_spill] sm:$0xff] %v7922_v11  ;;  %v6185_v32 = vpop.f32.mrf.mxu1  ;;  %v2109_v27 = vadd.f32 %v7763_v14, %v8636_v55  ;;  %v8639_v11 = vld [vmem:[#allocation19_spill] sm:$0xff] }
 0x2a5   : > { %v7928_v8 = vpop.f32.mrf.mxu0  ;;  %v2855_v38 = vadd.f32 %v6185_v32, %v8634_v58  ;;  %v7933_v24 = vadd.f32 %v7765_v61, %v2852_v63 }
 0x2a6   : > { %v2776_v35 = vpop.f32.mrf.mxu1  ;;  %v2499_v14 = vadd.f32 %v8639_v11, %v2109_v27 }
 0x2a7   : > { %v7935_v44 = vpop.f32.mrf.mxu0  ;;  %v2853_v47 = vadd.f32 %v2776_v35, %v2495_v60  ;;  %v7938_v39 = vadd.f32 %v7771_v62, %v2855_v38  ;;  %v8638_v35 = vld [vmem:[#allocation26_spill] sm:$0xff] }
 0x2a8   : > { %v6188_v25 = vpop.f32.mrf.mxu1 }
 0x2a9   : > { %v7940_v45 = vpop.f32.mrf.mxu0  ;;  %v2858_v32 = vadd.f32 %v6188_v25, %v7755_v59  ;;  %v7946_v51 = vadd.f32 %v7775_v2, %v2853_v47 }
 0x2aa   : > { %v2789_v61 = vpop.f32.mrf.mxu1 }
 0x2ab   : > { %v7948_v63 = vpop.f32.mrf.mxu0  ;;  %v2856_v58 = vadd.f32 %v2789_v61, %v8637_v20  ;;  %v7952_v60 = vadd.f32 %v7781_v15, %v2858_v32 }
 0x2ac   : > { %v6189_v62 = vpop.f32.mrf.mxu1 }
 0x2ad   : > { %v7954_v38 = vpop.f32.mrf.mxu0  ;;  %v2859_v50 = vadd.f32 %v6189_v62, %v8638_v35  ;;  %v7959_v59 = vadd.f32 %v7787_v12, %v2856_v58  ;;  %v8642_v12 = vld [vmem:[#allocation27_spill] sm:$0xff] }
 0x2ae   : > { %v2792_v2 = vpop.f32.mrf.mxu1 }
 0x2af   : > { %v7961_v47 = vpop.f32.mrf.mxu0  ;;  %v2857_v25 = vadd.f32 %v2792_v2, %v2499_v14  ;;  %v7964_v55 = vadd.f32 %v7794_v31, %v2859_v50  ;;  %v8643_v31 = vld [vmem:[#allocation28_spill] sm:$0xff] }
 0x2b0   : > { %v6192_v61 = vpop.f32.mrf.mxu1 }
 0x2b1   : > { %v7966_v15 = vpop.f32.mrf.mxu0  ;;  %v2862_v32 = vadd.f32 %v6192_v61, %v7779_v21  ;;  %v7970_v20 = vadd.f32 %v7800_v4, %v2857_v25  ;;  %v8644_v4 = vld [vmem:[#allocation22_spill] sm:$0xff] }
 0x2b2   : > { %v2805_v62 = vpop.f32.mrf.mxu1 }
 0x2b3   : > { %8640 = vst [vmem:[#allocation23_spill] sm:$0xff] %v7970_v20  ;;  %v7972_v11 = vpop.f32.mrf.mxu0  ;;  %v2860_v27 = vadd.f32 %v2805_v62, %v8642_v12  ;;  %v7976_v58 = vadd.f32 %v7806_v10, %v2862_v32 }
 0x2b4   : > { %8641 = vst [vmem:[#allocation24_spill] sm:$0xff] %v7972_v11  ;;  %v6193_v35 = vpop.f32.mrf.mxu1 }
 0x2b5   : > { %v7978_v14 = vpop.f32.mrf.mxu0  ;;  %v2863_v50 = vadd.f32 %v6193_v35, %v8643_v31  ;;  %v7982_v2 = vadd.f32 %v7812_v40, %v2860_v27 }
 0x2b6   : > { %v2808_v21 = vpop.f32.mrf.mxu1 }
 0x2b7   : > { %v7984_v61 = vpop.f32.mrf.mxu0  ;;  %v2861_v25 = vadd.f32 %v2808_v21, %v8644_v4  ;;  %v7988_v20 = vadd.f32 %v7818_v36, %v2863_v50 }
 0x2b8   : > { %v6196_v62 = vpop.f32.mrf.mxu1 }
 0x2b9   : > { %v7990_v12 = vpop.f32.mrf.mxu0  ;;  %v2866_v10 = vadd.f32 %v6196_v62, %v7804_v57  ;;  %v7994_v32 = vadd.f32 %v7824_v30, %v2861_v25 }
 0x2ba   : > { %v2821_v35 = vpop.f32.mrf.mxu1 }
 0x2bb   : > { %8645 = vst [vmem:[#allocation17_spill] sm:$0xff] %v7994_v32  ;;  %v7996_v31 = vpop.f32.mrf.mxu0  ;;  %v2864_v40 = vadd.f32 %v2821_v35, %v7810_v26  ;;  %v8000_v27 = vadd.f32 %v7830_v42, %v2866_v10 }
 0x2bc   : > { %8646 = vst [vmem:[#allocation16_spill] sm:$0xff] %v7996_v31  ;;  %v6197_v21 = vpop.f32.mrf.mxu1 }
 0x2bd   : > { %v8002_v4 = vpop.f32.mrf.mxu0  ;;  %v2867_v36 = vadd.f32 %v6197_v21, %v7816_v46  ;;  %v8006_v50 = vadd.f32 %v7836_v13, %v2864_v40 }
 0x2be   : > { %v2824_v57 = vpop.f32.mrf.mxu1 }
 0x2bf   : > { %v8008_v62 = vpop.f32.mrf.mxu0  ;;  %v2865_v30 = vadd.f32 %v2824_v57, %v7822_v52  ;;  %v8012_v25 = vadd.f32 %v7842_v3, %v2867_v36 }
 0x2c0   : > { %v6236_v26 = vpop.f32.mrf.mxu1 }
 0x2c1   : > { %v8014_v35 = vpop.f32.mrf.mxu0  ;;  %v3554_v42 = vadd.f32 %v6236_v26, %v7828_v1  ;;  %v8018_v10 = vadd.f32 %v7848_v6, %v2865_v30 }
 0x2c2   : > { %v3425_v46 = vpop.f32.mrf.mxu1 }
 0x2c3   : > { %8647 = vst [vmem:[#allocation25_spill] sm:$0xff] %v8018_v10  ;;  %v8020_v21 = vpop.f32.mrf.mxu0  ;;  %v3552_v13 = vadd.f32 %v3425_v46, %v7834_v9  ;;  %v8024_v40 = vadd.f32 %v7854_v7, %v3554_v42 }
 0x2c4   : > { %8648 = vst [vmem:[#allocation26_spill] sm:$0xff] %v8020_v21  ;;  %v8026_v52 = vpop.f32.mrf.mxu1 }
 0x2c5   : > { %v8028_v3 = vpop.f32.mrf.mxu0  ;;  %v8031_v36 = vadd.f32 %v7860_v56, %v3552_v13 }
 0x2c6   : > { %v8033_v57 = vpop.f32.mrf.mxu1 }
 0x2c7   : > { %v8035_v1 = vpop.f32.mrf.mxu0 }
 0x2c8   : > { %v6240_v6 = vpop.f32.mrf.mxu1 }
 0x2c9   : > { %v8037_v30 = vpop.f32.mrf.mxu0  ;;  %v3558_v26 = vadd.f32 %v6240_v6, %v7852_v0 }
 0x2ca   : > { %v3441_v9 = vpop.f32.mrf.mxu1 }
 0x2cb   : > { %v8040_v46 = vpop.f32.mrf.mxu0  ;;  %v3556_v7 = vadd.f32 %v3441_v9, %v7858_v49  ;;  %v8044_v42 = vadd.f32 %v7878_v53, %v3558_v26 }
 0x2cc   : > { %8649 = vst [vmem:[#allocation19_spill] sm:$0xff] %v8040_v46  ;;  %v6241_v10 = vpop.f32.mrf.mxu1 }
 0x2cd   : > { %v8046_v56 = vpop.f32.mrf.mxu0  ;;  %v3559_v13 = vadd.f32 %v6241_v10, %v7864_v34  ;;  %v8050_v21 = vadd.f32 %v7884_v18, %v3556_v7 }
 0x2ce   : > { %v8052_v32 = vpop.f32.mrf.mxu1 }
 0x2cf   : > { %v8054_v31 = vpop.f32.mrf.mxu0  ;;  %v8057_v0 = vadd.f32 %v7890_v29, %v3559_v13 }
 0x2d0   : > { %v6244_v6 = vpop.f32.mrf.mxu1 }
 0x2d1   : > { %v8059_v49 = vpop.f32.mrf.mxu0  ;;  %v3562_v53 = vadd.f32 %v6244_v6, %v7876_v54 }
 0x2d2   : > { %v3457_v26 = vpop.f32.mrf.mxu1 }
 0x2d3   : > { %v3560_v9 = vadd.f32 %v3457_v26, %v7882_v23  ;;  %v8063_v46 = vpop.f32.mrf.mxu0  ;;  %v8066_v34 = vadd.f32 %v7902_v22, %v3562_v53 }
 0x2d4   : > { %v6245_v18 = vpop.f32.mrf.mxu1 }
 0x2d5   : > { %v3563_v10 = vadd.f32 %v6245_v18, %v7888_v37  ;;  %v8070_v7 = vadd.f32 %v7908_v41, %v3560_v9  ;;  %v8074_v13 = vpop.f32.mrf.mxu0 }
 0x2d6   : > { %v8072_v29 = vpop.f32.mrf.mxu1 }
 0x2d7   : > { %v8077_v54 = vadd.f32 %v7914_v33, %v3563_v10  ;;  %v8081_v53 = vpop.f32.mrf.mxu0 }
 0x2d8   : > { %v6248_v6 = vpop.f32.mrf.mxu1 }
 0x2d9   : > { %v3566_v23 = vadd.f32 %v6248_v6, %v7900_v5  ;;  %v8092_v33 = vpop.f32.mrf.mxu0 }
 0x2da   : > { %v3473_v26 = vpop.f32.mrf.mxu1 }
 0x2db   : > { %v3564_v22 = vadd.f32 %v3473_v26, %v7906_v43  ;;  %v8084_v37 = vadd.f32 %v7928_v8, %v3566_v23  ;;  %v8099_v23 = vpop.f32.mrf.mxu0 }
 0x2dc   : > { %v6249_v41 = vpop.f32.mrf.mxu1 }
 0x2dd   : > { %v3567_v9 = vadd.f32 %v6249_v41, %v7912_v17  ;;  %v8088_v18 = vadd.f32 %v7935_v44, %v3564_v22 }
 0x2de   : > { %v8090_v11 = vpop.f32.mrf.mxu1 }
 0x2df   : > { %v8095_v5 = vadd.f32 %v7940_v45, %v3567_v9  ;;  %v8110_v45 = vpop.f32.mrf.mxu0 }
 0x2e0   : > { %v6252_v10 = vpop.f32.mrf.mxu1 }
 0x2e1   : > { %v3570_v43 = vadd.f32 %v6252_v10, %v7926_v19 }
 0x2e2   : > { %v3489_v6 = vpop.f32.mrf.mxu1 }
 0x2e3   : > { %v3568_v8 = vadd.f32 %v3489_v6, %v7933_v24  ;;  %v8102_v17 = vadd.f32 %v7954_v38, %v3570_v43  ;;  %v8117_v43 = vpop.f32.mrf.mxu0 }
 0x2e4   : > { %v6253_v44 = vpop.f32.mrf.mxu1 }
 0x2e5   : > { %v3571_v26 = vadd.f32 %v6253_v44, %v7938_v39  ;;  %v8106_v22 = vadd.f32 %v7961_v47, %v3568_v8 }
 0x2e6   : > { %v8108_v41 = vpop.f32.mrf.mxu1 }
 0x2e7   : > { %v8113_v19 = vadd.f32 %v7966_v15, %v3571_v26  ;;  %v8128_v15 = vpop.f32.mrf.mxu0 }
 0x2e8   : > { %v6256_v9 = vpop.f32.mrf.mxu1 }
 0x2e9   : > { %v3574_v24 = vadd.f32 %v6256_v9, %v7952_v60 }
 0x2ea   : > { %v3505_v10 = vpop.f32.mrf.mxu1 }
 0x2eb   : > { %v3572_v38 = vadd.f32 %v3505_v10, %v7959_v59  ;;  %v8120_v39 = vadd.f32 %v7978_v14, %v3574_v24  ;;  %v8134_v10 = vpop.f32.mrf.mxu0 }
 0x2ec   : > { %v6257_v47 = vpop.f32.mrf.mxu1 }
 0x2ed   : > { %v3575_v6 = vadd.f32 %v6257_v47, %v7964_v55  ;;  %v8124_v8 = vadd.f32 %v7984_v61, %v3572_v38 }
 0x2ee   : > { %v8126_v44 = vpop.f32.mrf.mxu1 }
 0x2ef   : > { %v8131_v60 = vadd.f32 %v7990_v12, %v3575_v6  ;;  %v8146_v12 = vpop.f32.mrf.mxu0 }
 0x2f0   : > { %v6260_v26 = vpop.f32.mrf.mxu1 }
 0x2f1   : > { %v3578_v59 = vadd.f32 %v6260_v26, %v7976_v58 }
 0x2f2   : > { %v3521_v9 = vpop.f32.mrf.mxu1 }
 0x2f3   : > { %v3576_v14 = vadd.f32 %v3521_v9, %v7982_v2  ;;  %v8138_v55 = vadd.f32 %v8002_v4, %v3578_v59  ;;  %v8152_v9 = vpop.f32.mrf.mxu0 }
 0x2f4   : > { %v6261_v61 = vpop.f32.mrf.mxu1 }
 0x2f5   : > { %v3579_v24 = vadd.f32 %v6261_v61, %v7988_v20  ;;  %v8142_v38 = vadd.f32 %v8008_v62, %v3576_v14 }
 0x2f6   : > { %v8144_v47 = vpop.f32.mrf.mxu1 }
 0x2f7   : > { %v8149_v58 = vadd.f32 %v8014_v35, %v3579_v24  ;;  %v3555_v35 = vadd.f32 %v8026_v52, %v7840_v16 }
 0x2f8   : > { %v6264_v6 = vpop.f32.mrf.mxu1 }
 0x2f9   : > { %v3582_v26 = vadd.f32 %v6264_v6, %v8000_v27  ;;  %v8166_v27 = vpop.f32.mrf.mxu0 }
 0x2fa   : > { %v3537_v2 = vpop.f32.mrf.mxu1 }
 0x2fb   : > { %v3580_v4 = vadd.f32 %v3537_v2, %v8006_v50  ;;  %v8156_v20 = vadd.f32 %v8028_v3, %v3582_v26  ;;  %v3553_v3 = vadd.f32 %v8033_v57, %v7846_v28  ;;  %v8179_v26 = vpop.f32.mrf.mxu0  ;;  %v8188_v28 = vld [vmem:[%s8578_s6] ss:$0 sm:$0xff] }
 0x2fc   : > { %v6265_v62 = vpop.f32.mrf.mxu1 }
 0x2fd   : > { %v3583_v59 = vadd.f32 %v6265_v62, %v8012_v25  ;;  %v8160_v14 = vadd.f32 %v8035_v1, %v3580_v4  ;;  %v8177_v25 = vld [vmem:[%s8577_s5] ss:$0 sm:$0xff] }
 0x2fe   : > { %v8162_v61 = vpop.f32.mrf.mxu1  ;;  %v8652_v62 = vld [vmem:[#allocation20_spill] sm:$0xff] }
 0x2ff   : > { %8650 = vst [vmem:[#allocation27_spill] sm:$0xff] %v8160_v14  ;;  %v8169_v24 = vadd.f32 %v8037_v30, %v3583_v59  ;;  %v3913_v30 = vadd.f32 %v7866_v48, %v3555_v35  ;;  %v3911_v59 = vadd.f32 %v8652_v62, %v3553_v3  ;;  %v8653_v14 = vld [vmem:[#allocation18_spill] sm:$0xff] }
 0x300   : > { %v6304_v50 = vpop.f32.mrf.mxu1 }
 0x301   : > { %8651 = vst [vmem:[#allocation28_spill] sm:$0xff] %v8169_v24  ;;  %v4270_v6 = vadd.f32 %v6304_v50, %v8024_v40  ;;  %v8192_v24 = vpop.f32.mrf.mxu0 }
 0x302   : > { %v4141_v1 = vpop.f32.mrf.mxu1 }
 0x303   : > { %v4628_v16 = vadd.f32 %v8046_v56, %v4270_v6  ;;  %v4268_v52 = vadd.f32 %v4141_v1, %v8031_v36 }
 0x304   : > { %v6305_v2 = vpop.f32.mrf.mxu1 }
 0x305   : > { %v4667_v4 = vmul.f32 %v8177_v25, %v4628_v16  ;;  %v4626_v40 = vadd.f32 %v8054_v31, %v4268_v52  ;;  %v4271_v57 = vadd.f32 %v6305_v2, %v3913_v30  ;;  %v3557_v31 = vadd.f32 %v8052_v32, %v8653_v14  ;;  %v8203_v2 = vpop.f32.mrf.mxu0 }
 0x306   : > { %v4144_v50 = vpop.f32.mrf.mxu1 }
 0x307   : > { %v4665_v36 = vmul.f32 %v8177_v25, %v4626_v40  ;;  %v4629_v48 = vadd.f32 %v8059_v49, %v4271_v57  ;;  %v4269_v56 = vadd.f32 %v4144_v50, %v3911_v59  ;;  %v4706_v35 = vadd.f32 %v8188_v28, %v4667_v4 }
 0x308   : > { %v6308_v6 = vpop.f32.mrf.mxu1 }
 0x309   : > { %v4668_v1 = vmul.f32 %v8177_v25, %v4629_v48  ;;  %v4627_v16 = vadd.f32 %v8063_v46, %v4269_v56  ;;  %v4704_v3 = vadd.f32 %v8188_v28, %v4665_v36  ;;  %v4274_v52 = vadd.f32 %v6308_v6, %v8044_v42  ;;  %v8654_v48 = vld [vmem:[#allocation29_spill] sm:$0xff] }
 0x30a   : > { %v4157_v30 = vpop.f32.mrf.mxu1  ;;  %v4738_v57 = vmax.f32 %v4706_v35, 0.0  ;;  %v3915_v56 = vadd.f32 %v8654_v48, %v3557_v31 }
 0x30b   : > { %v4707_v49 = vadd.f32 %v8188_v28, %v4668_v1  ;;  %v4666_v40 = vmul.f32 %v8177_v25, %v4627_v16  ;;  %v4272_v4 = vadd.f32 %v4157_v30, %v8050_v21  ;;  %v4632_v62 = vadd.f32 %v8074_v13, %v4274_v52  ;;  %v8214_v1 = vpop.f32.mrf.mxu0 }
 0x30c   : > { %v6309_v46 = vpop.f32.mrf.mxu1  ;;  %v4736_v50 = vmax.f32 %v4704_v3, 0.0 }
 0x30d   : > { %v4739_v59 = vmax.f32 %v4707_v49, 0.0  ;;  %v4705_v32 = vadd.f32 %v8188_v28, %v4666_v40  ;;  %v4630_v14 = vadd.f32 %v8081_v53, %v4272_v4  ;;  %v4275_v42 = vadd.f32 %v6309_v46, %v8057_v0  ;;  %v8655_v40 = vld [vmem:[#allocation21_spill] sm:$0xff] }
 0x30e   : > { %v4671_v36 = vmul.f32 %v8177_v25, %v4632_v62  ;;  %v4160_v6 = vpop.f32.mrf.mxu1  ;;  %v3561_v31 = vadd.f32 %v8072_v29, %v8655_v40  ;;  %v8224_v62 = vpop.f32.mrf.mxu0 }
 0x30f   : > { %v4769_v21 = vpack.c.bf16 %v4739_v59, %v4738_v57  ;;  %v4737_v35 = vmax.f32 %v4705_v32, 0.0  ;;  %v4669_v13 = vmul.f32 %v8177_v25, %v4630_v14  ;;  %v4633_v16 = vadd.f32 %v8092_v33, %v4275_v42 }
 0x310   : > { %v4710_v52 = vadd.f32 %v8188_v28, %v4671_v36  ;;  %v4273_v30 = vadd.f32 %v4160_v6, %v3915_v56  ;;  %v6312_v53 = vpop.f32.mrf.mxu1  ;;  %v8238_v6 = vpop.f32.mrf.mxu0 }
 0x311   : > { %v4672_v0 = vmul.f32 %v8177_v25, %v4633_v16  ;;  %v4278_v3 = vadd.f32 %v6312_v53, %v8066_v34  ;;  %v4768_v49 = vpack.c.bf16 %v4737_v35, %v4736_v50  ;;  %v4708_v46 = vadd.f32 %v8188_v28, %v4669_v13 }
 0x312   : > { %v4631_v4 = vadd.f32 %v8099_v23, %v4273_v30  ;;  %v4173_v57 = vpop.f32.mrf.mxu1  ;;  %v4742_v34 = vmax.f32 %v4710_v52, 0.0 }
 0x313   : > { %v4711_v33 = vadd.f32 %v8188_v28, %v4672_v0  ;;  %v4636_v59 = vadd.f32 %v8110_v45, %v4278_v3  ;;  %v4276_v32 = vadd.f32 %v4173_v57, %v8070_v7  ;;  %6370 = vmatprep.mubr.msk.bf16.mxu1 %vm1646_vm3, %v4768_v49  ;;  %v8656_v45 = vld [vmem:[#allocation30_spill] sm:$0xff]  ;;  %v4740_v35 = vmax.f32 %v4708_v46, 0.0  ;;  %v8657_v3 = vld [vmem:[#allocation15_spill] sm:$0xff]  ;;  %v8248_v57 = vpop.f32.mrf.mxu0 }
 0x314   : > { %v4670_v14 = vmul.f32 %v8177_v25, %v4631_v4  ;;  %v6313_v42 = vpop.f32.mrf.mxu1  ;;  %6371 = vmatmul.mubr.msk.bf16.vlgmr.msra.gmra.mxu1 %vm1646_vm3, %v4769_v21  ;;  %v3919_v56 = vadd.f32 %v8656_v45, %v3561_v31  ;;  %v3565_v49 = vadd.f32 %v8090_v11, %v8657_v3 }
 0x315   : > { %v4743_v29 = vmax.f32 %v4711_v33, 0.0  ;;  %v4675_v23 = vmul.f32 %v8177_v25, %v4636_v59  ;;  %v4634_v50 = vadd.f32 %v8117_v43, %v4276_v32  ;;  %v4279_v36 = vadd.f32 %v6313_v42, %v8077_v54 }
 0x316   : > { %v4709_v48 = vadd.f32 %v8188_v28, %v4670_v14  ;;  %v4176_v7 = vpop.f32.mrf.mxu1 }
 0x317   : > { %v4771_v13 = vpack.c.bf16 %v4743_v29, %v4742_v34  ;;  %v4637_v16 = vadd.f32 %v8128_v15, %v4279_v36  ;;  %v4714_v21 = vadd.f32 %v8188_v28, %v4675_v23  ;;  %v4673_v30 = vmul.f32 %v8177_v25, %v4634_v50  ;;  %v8262_v23 = vpop.f32.mrf.mxu0 }
 0x318   : > { %v4741_v52 = vmax.f32 %v4709_v48, 0.0  ;;  %v4277_v53 = vadd.f32 %v4176_v7, %v3919_v56  ;;  %v6316_v43 = vpop.f32.mrf.mxu1 }
 0x319   : > { %v4676_v54 = vmul.f32 %v8177_v25, %v4637_v16  ;;  %v4282_v0 = vadd.f32 %v6316_v43, %v8084_v37  ;;  %v4746_v59 = vmax.f32 %v4714_v21, 0.0  ;;  %v4712_v32 = vadd.f32 %v8188_v28, %v4673_v30  ;;  %v4582_v30 = vpop.f32.mrf.mxu0 }
 0x31a   : > { %v4635_v40 = vadd.f32 %v8134_v10, %v4277_v53  ;;  %v4189_v31 = vpop.f32.mrf.mxu1  ;;  %v4770_v4 = vpack.c.bf16 %v4741_v52, %v4740_v35 }
 0x31b   : > { %v4715_v15 = vadd.f32 %v8188_v28, %v4676_v54  ;;  %v4640_v46 = vadd.f32 %v8146_v12, %v4282_v0  ;;  %v4280_v33 = vadd.f32 %v4189_v31, %v8088_v18  ;;  %v3923_v18 = vadd.f32 %v7948_v63, %v3565_v49 }
 0x31c   : > { %v4674_v37 = vmul.f32 %v8177_v25, %v4635_v40  ;;  %6374 = vmatprep.mubr.msk.bf16.mxu1 %vm1646_vm3, %v4770_v4  ;;  %v6317_v11 = vpop.f32.mrf.mxu1  ;;  %v4744_v45 = vmax.f32 %v4712_v32, 0.0  ;;  %v3569_v63 = vadd.f32 %v8108_v41, %v7946_v51  ;;  %v6362_v4 = vpop.f32.mrf.mxu0 }
 0x31d   : > { %v4747_v34 = vmax.f32 %v4715_v15, 0.0  ;;  %v4679_v10 = vmul.f32 %v8177_v25, %v4640_v46  ;;  %v4638_v14 = vadd.f32 %v8152_v9, %v4280_v33  ;;  %v4283_v42 = vadd.f32 %v6317_v11, %v8095_v5  ;;  %6375 = vmatmul.mubr.msk.bf16.gmra.mxu1 %vm1646_vm3, %v4771_v13 }
 0x31e   : > { %v4713_v12 = vadd.f32 %v8188_v28, %v4674_v37  ;;  %v4192_v29 = vpop.f32.mrf.mxu1 }
 0x31f   : > { %v4773_v50 = vpack.c.bf16 %v4747_v34, %v4746_v59  ;;  %v4677_v36 = vmul.f32 %v8177_v25, %v4638_v14  ;;  %v4641_v48 = vadd.f32 %v8166_v27, %v4283_v42  ;;  %v4718_v9 = vadd.f32 %v8188_v28, %v4679_v10  ;;  %v8659_v10 = vld [vmem:[#allocation23_spill] sm:$0xff] }
 0x320   : > { %v4745_v56 = vmax.f32 %v4713_v12, 0.0  ;;  %v4281_v7 = vadd.f32 %v4192_v29, %v3923_v18  ;;  %v6320_v5 = vpop.f32.mrf.mxu1  ;;  %v3573_v14 = vadd.f32 %v8126_v44, %v8659_v10  ;;  %v4595_v29 = vpop.f32.mrf.mxu0 }
 0x321   : > { %v4680_v35 = vmul.f32 %v8177_v25, %v4641_v48  ;;  %v4286_v13 = vadd.f32 %v6320_v5, %v8102_v17  ;;  %v4716_v27 = vadd.f32 %v8188_v28, %v4677_v36  ;;  %v4750_v0 = vmax.f32 %v4718_v9, 0.0 }
 0x322   : > { %v4639_v16 = vadd.f32 %v8179_v26, %v4281_v7  ;;  %v4205_v52 = vpop.f32.mrf.mxu1  ;;  %v4772_v21 = vpack.c.bf16 %v4745_v56, %v4744_v45 }
 0x323   : > { %v4719_v53 = vadd.f32 %v8188_v28, %v4680_v35  ;;  %v4644_v43 = vadd.f32 %v8192_v24, %v4286_v13  ;;  %v4284_v54 = vadd.f32 %v4205_v52, %v8106_v22  ;;  %v8658_v24 = vld [vmem:[#allocation24_spill] sm:$0xff]  ;;  %v4748_v15 = vmax.f32 %v4716_v27, 0.0  ;;  %v6363_v13 = vpop.f32.mrf.mxu0 }
 0x324   : > { %v4678_v3 = vmul.f32 %v8177_v25, %v4639_v16  ;;  %6378 = vmatprep.mubr.msk.bf16.mxu1 %vm1646_vm3, %v4772_v21  ;;  %v6321_v17 = vpop.f32.mrf.mxu1  ;;  %v3927_v31 = vadd.f32 %v8658_v24, %v3569_v63 }
 0x325   : > { %v4751_v51 = vmax.f32 %v4719_v53, 0.0  ;;  %v4683_v41 = vmul.f32 %v8177_v25, %v4644_v43  ;;  %v4642_v26 = vadd.f32 %v8203_v2, %v4284_v54  ;;  %v4287_v49 = vadd.f32 %v6321_v17, %v8113_v19  ;;  %6379 = vmatmul.mubr.msk.bf16.gmra.mxu1 %vm1646_vm3, %v4773_v50 }
 0x326   : > { %v4717_v40 = vadd.f32 %v8188_v28, %v4678_v3  ;;  %v4208_v22 = vpop.f32.mrf.mxu1 }
 0x327   : > { %v4775_v46 = vpack.c.bf16 %v4751_v51, %v4750_v0  ;;  %v4645_v33 = vadd.f32 %v8214_v1, %v4287_v49  ;;  %v4722_v32 = vadd.f32 %v8188_v28, %v4683_v41  ;;  %v4681_v37 = vmul.f32 %v8177_v25, %v4642_v26  ;;  %v8661_v0 = vld [vmem:[#allocation17_spill] sm:$0xff]  ;;  %v4598_v26 = vpop.f32.mrf.mxu0 }
 0x328   : > { %v4749_v59 = vmax.f32 %v4717_v40, 0.0  ;;  %v4285_v2 = vadd.f32 %v4208_v22, %v3927_v31  ;;  %v6324_v11 = vpop.f32.mrf.mxu1  ;;  %v3577_v3 = vadd.f32 %v8144_v47, %v8661_v0 }
 0x329   : > { %v4684_v19 = vmul.f32 %v8177_v25, %v4645_v33  ;;  %v4290_v34 = vadd.f32 %v6324_v11, %v8120_v39  ;;  %v4754_v48 = vmax.f32 %v4722_v32, 0.0  ;;  %v4720_v45 = vadd.f32 %v8188_v28, %v4681_v37  ;;  %v6366_v33 = vpop.f32.mrf.mxu0 }
 0x32a   : > { %v4643_v42 = vadd.f32 %v8224_v62, %v4285_v2  ;;  %v4221_v12 = vpop.f32.mrf.mxu1  ;;  %v4774_v18 = vpack.c.bf16 %v4749_v59, %v4748_v15 }
 0x32b   : > { %v4723_v1 = vadd.f32 %v8188_v28, %v4684_v19  ;;  %v4648_v50 = vadd.f32 %v8238_v6, %v4290_v34  ;;  %v4288_v36 = vadd.f32 %v4221_v12, %v8124_v8  ;;  %v8660_v8 = vld [vmem:[#allocation16_spill] sm:$0xff]  ;;  %v4752_v21 = vmax.f32 %v4720_v45, 0.0  ;;  %v4611_v12 = vpop.f32.mrf.mxu0 }
 0x32c   : > { %v4682_v56 = vmul.f32 %v8177_v25, %v4643_v42  ;;  %6382 = vmatprep.mubr.msk.bf16.mxu1 %vm1646_vm3, %v4774_v18  ;;  %v6325_v39 = vpop.f32.mrf.mxu1  ;;  %v3931_v5 = vadd.f32 %v8660_v8, %v3573_v14 }
 0x32d   : > { %v4755_v44 = vmax.f32 %v4723_v1, 0.0  ;;  %v4687_v62 = vmul.f32 %v8177_v25, %v4648_v50  ;;  %v4646_v9 = vadd.f32 %v8248_v57, %v4288_v36  ;;  %v4291_v7 = vadd.f32 %v6325_v39, %v8131_v60  ;;  %6383 = vmatmul.mubr.msk.bf16.gmra.mxu1 %vm1646_vm3, %v4775_v46  ;;  %v8664_v39 = vld [vmem:[#allocation27_spill] sm:$0xff] }
 0x32e   : > { %v4721_v6 = vadd.f32 %v8188_v28, %v4682_v56  ;;  %v4224_v35 = vpop.f32.mrf.mxu1 }
 0x32f   : > { %v4777_v63 = vpack.c.bf16 %v4755_v44, %v4754_v48  ;;  %v4685_v16 = vmul.f32 %v8177_v25, %v4646_v9  ;;  %v4649_v52 = vadd.f32 %v8262_v23, %v4291_v7  ;;  %v4726_v53 = vadd.f32 %v8188_v28, %v4687_v62 }
 0x330   : > { %v4753_v27 = vmax.f32 %v4721_v6, 0.0  ;;  %v4289_v57 = vadd.f32 %v4224_v35, %v3931_v5  ;;  %v6328_v43 = vpop.f32.mrf.mxu1  ;;  %v8665_v35 = vld [vmem:[#allocation28_spill] sm:$0xff] }
 0x331   : > { %v4688_v60 = vmul.f32 %v8177_v25, %v4649_v52  ;;  %v4294_v54 = vadd.f32 %v6328_v43, %v8138_v55  ;;  %v4724_v49 = vadd.f32 %v8188_v28, %v4685_v16  ;;  %v4758_v31 = vmax.f32 %v4726_v53, 0.0  ;;  %v8666_v16 = vld [vmem:[#allocation19_spill] sm:$0xff] }
 0x332   : > { %v4647_v17 = vadd.f32 %v4582_v30, %v4289_v57  ;;  %v4237_v51 = vpop.f32.mrf.mxu1  ;;  %v4776_v41 = vpack.c.bf16 %v4753_v27, %v4752_v21 }
 0x333   : > { %v4727_v23 = vadd.f32 %v8188_v28, %v4688_v60  ;;  %v4652_v40 = vadd.f32 %v6362_v4, %v4294_v54  ;;  %v4292_v24 = vadd.f32 %v4237_v51, %v8142_v38  ;;  %v8662_v4 = vld [vmem:[#allocation26_spill] sm:$0xff]  ;;  %v4756_v37 = vmax.f32 %v4724_v49, 0.0 }
 0x334   : > { %v4686_v22 = vmul.f32 %v8177_v25, %v4647_v17  ;;  %6386 = vmatprep.mubr.msk.bf16.mxu1 %vm1646_vm3, %v4776_v41  ;;  %v6329_v55 = vpop.f32.mrf.mxu1  ;;  %v3935_v32 = vadd.f32 %v8662_v4, %v3577_v3 }
 0x335   : > { %v4759_v15 = vmax.f32 %v4727_v23, 0.0  ;;  %v4691_v47 = vmul.f32 %v8177_v25, %v4652_v40  ;;  %v4650_v30 = vadd.f32 %v4595_v29, %v4292_v24  ;;  %v4295_v46 = vadd.f32 %v6329_v55, %v8149_v58  ;;  %6387 = vmatmul.mubr.msk.bf16.gmra.mxu1 %vm1646_vm3, %v4777_v63  ;;  %v8663_v29 = vld [vmem:[#allocation25_spill] sm:$0xff] }
 0x336   : > { %v4725_v59 = vadd.f32 %v8188_v28, %v4686_v22  ;;  %v4240_v38 = vpop.f32.mrf.mxu1  ;;  %v3581_v1 = vadd.f32 %v8162_v61, %v8663_v29  ;;  %v6367_v61 = vpop.f32.mrf.mxu0 }
 0x337   : > { %v4779_v2 = vpack.c.bf16 %v4759_v15, %v4758_v31  ;;  %v4653_v11 = vadd.f32 %v6363_v13, %v4295_v46  ;;  %v4730_v34 = vadd.f32 %v8188_v28, %v4691_v47  ;;  %v4689_v10 = vmul.f32 %v8177_v25, %v4650_v30  ;;  %v8356_v46 = vld [vmem:[%s8581_s9] ss:$0 sm:$0xff] }
 0x338   : > { %v4757_v19 = vmax.f32 %v4725_v59, 0.0  ;;  %v4293_v14 = vadd.f32 %v4240_v38, %v3935_v32  ;;  %v6332_v42 = vpop.f32.mrf.mxu1  ;;  %v3939_v52 = vadd.f32 %v8666_v16, %v3581_v1  ;;  %v4614_v3 = vpop.f32.mrf.mxu0  ;;  %v5075_v38 = vld [vmem:[%s6938_s24] sm:$0xff] }
 0x339   : > { %v4692_v58 = vmul.f32 %v8177_v25, %v4653_v11  ;;  %v4298_v18 = vadd.f32 %v6332_v42, %v8156_v20  ;;  %v4762_v62 = vmax.f32 %v4730_v34, 0.0  ;;  %v4728_v9 = vadd.f32 %v8188_v28, %v4689_v10  ;;  %v5078_v34 = vld [vmem:[%s6938_s24 + $0x18] sm:$0xff] }
 0x33a   : > { %v4651_v50 = vadd.f32 %v4598_v26, %v4293_v14  ;;  %v4253_v36 = vpop.f32.mrf.mxu1  ;;  %v4778_v48 = vpack.c.bf16 %v4757_v19, %v4756_v37 }
 0x33b   : > { %v4731_v45 = vadd.f32 %v8188_v28, %v4692_v58  ;;  %v4656_v56 = vadd.f32 %v6366_v33, %v4298_v18  ;;  %v4296_v44 = vadd.f32 %v4253_v36, %v8664_v39  ;;  %v4760_v57 = vmax.f32 %v4728_v9, 0.0  ;;  %v5077_v33 = vld [vmem:[%s6938_s24 + $0x10] sm:$0xff]  ;;  %v5076_v18 = vld [vmem:[%s6938_s24 + $0x8] sm:$0xff] }
 0x33c   : > { %v4690_v7 = vmul.f32 %v8177_v25, %v4651_v50  ;;  %6390 = vmatprep.mubr.msk.bf16.mxu1 %vm1646_vm3, %v4778_v48  ;;  %v6333_v6 = vpop.f32.mrf.mxu1  ;;  %v5081_v39 = vld [vmem:[%s6938_s24 + $0x30] sm:$0xff] }
 0x33d   : > { %v4763_v20 = vmax.f32 %v4731_v45, 0.0  ;;  %v4695_v8 = vmul.f32 %v8177_v25, %v4656_v56  ;;  %v4654_v5 = vadd.f32 %v4611_v12, %v4296_v44  ;;  %v4299_v13 = vadd.f32 %v6333_v6, %v8665_v35  ;;  %6391 = vmatmul.mubr.msk.bf16.gmra.mxu1 %vm1646_vm3, %v4779_v2  ;;  %v5079_v6 = vld [vmem:[%s6938_s24 + $0x20] sm:$0xff]  ;;  %v5082_v35 = vld [vmem:[%s6938_s24 + $0x38] sm:$0xff] }
 0x33e   : > { %v4729_v63 = vadd.f32 %v8188_v28, %v4690_v7  ;;  %v4256_v21 = vpop.f32.mrf.mxu1 }
 0x33f   : > { %v4781_v27 = vpack.c.bf16 %v4763_v20, %v4762_v62  ;;  %v4657_v53 = vadd.f32 %v6367_v61, %v4299_v13  ;;  %v4693_v60 = vmul.f32 %v8177_v25, %v4654_v5  ;;  %v4297_v54 = vadd.f32 %v4256_v21, %v3939_v52 }
 0x340   : > { %v4761_v43 = vmax.f32 %v4729_v63, 0.0  ;;  %v4734_v0 = vadd.f32 %v8188_v28, %v4695_v8 }
 0x341   : > { %v4696_v17 = vmul.f32 %v8177_v25, %v4657_v53  ;;  %v4655_v51 = vadd.f32 %v4614_v3, %v4297_v54  ;;  %v4732_v49 = vadd.f32 %v8188_v28, %v4693_v60 }
 0x342   : > { %v4780_v41 = vpack.c.bf16 %v4761_v43, %v4760_v57  ;;  %v4766_v40 = vmax.f32 %v4734_v0, 0.0  ;;  %v5085_v0 = vld [vmem:[%s6938_s24 + $0x50] sm:$0xff] }
 0x343   : > { %v4735_v26 = vadd.f32 %v8188_v28, %v4696_v17  ;;  %v4694_v23 = vmul.f32 %v8177_v25, %v4655_v51  ;;  %v4764_v55 = vmax.f32 %v4732_v49, 0.0  ;;  %v8351_v25 = vld [vmem:[%s8580_s8] ss:$0 sm:$0xff]  ;;  %v5083_v49 = vld [vmem:[%s6938_s24 + $0x40] sm:$0xff] }
 0x344   : > { %6394 = vmatprep.mubr.msk.bf16.mxu1 %vm1646_vm3, %v4780_v41 }
 0x345   : > { %v4767_v24 = vmax.f32 %v4735_v26, 0.0  ;;  %6395 = vmatmul.mubr.msk.bf16.gmra.mxu1 %vm1646_vm3, %v4781_v27  ;;  %v4733_v31 = vadd.f32 %v8188_v28, %v4694_v23  ;;  %v5080_v27 = vld [vmem:[%s6938_s24 + $0x28] sm:$0xff] }
 0x347   : > { %v4783_v22 = vpack.c.bf16 %v4767_v24, %v4766_v40  ;;  %v4765_v15 = vmax.f32 %v4733_v31, 0.0 }
 0x349   : > { %v4782_v47 = vpack.c.bf16 %v4765_v15, %v4764_v55  ;;  %v5086_v55 = vld [vmem:[%s6938_s24 + $0x58] sm:$0xff] }
 0x34b   : > { %6398 = vmatprep.mubr.msk.bf16.mxu1 %vm1646_vm3, %v4782_v47 }
 0x34d   : > { %6399 = vmatmul.mubr.msk.bf16.gmra.mxu1 %vm1646_vm3, %v4783_v22 }
 0x3d4   : > { %v6372_v30 = vpop.f32.mrf.mxu1 }
 0x3d5   : > { %v5006_v28 = vmul.f32 %v6372_v30, %v8351_v25 }
 0x3d6   : > { %v4870_v59 = vpop.f32.mrf.mxu1 }
 0x3d7   : > { %v5045_v4 = vadd.f32 %v8356_v46, %v5006_v28  ;;  %v5004_v32 = vmul.f32 %v8351_v25, %v4870_v59  ;;  %v5084_v59 = vld [vmem:[%s6938_s24 + $0x48] sm:$0xff] }
 0x3d8   : > { %v6373_v37 = vpop.f32.mrf.mxu1 }
 0x3d9   : > { %v5109_v2 = vadd.f32 %v5077_v33, %v5045_v4  ;;  %v5043_v11 = vadd.f32 %v8356_v46, %v5004_v32  ;;  %v5007_v19 = vmul.f32 %v6373_v37, %v8351_v25 }
 0x3da   : > { %v4873_v10 = vpop.f32.mrf.mxu1 }
 0x3db   : > { %v5141_v14 = vmax.f32 %v5109_v2, 0.0  ;;  %v5107_v42 = vadd.f32 %v5075_v38, %v5043_v11  ;;  %v5046_v58 = vadd.f32 %v8356_v46, %v5007_v19  ;;  %v5005_v12 = vmul.f32 %v8351_v25, %v4873_v10  ;;  %v5089_v11 = vld [vmem:[%s6938_s24 + $0x70] sm:$0xff] }
 0x3dd   : > { %5173 = vst.msk [vmem:[%s8371_s25 + $0x10] sm:$0xff] %vm458_vm0, %v5141_v14  ;;  %v5139_v29 = vmax.f32 %v5107_v42, 0.0  ;;  %v5110_v1 = vadd.f32 %v5078_v34, %v5046_v58  ;;  %v5044_v50 = vadd.f32 %v8356_v46, %v5005_v12  ;;  %v6376_v36 = vpop.f32.mrf.mxu1  ;;  %v5087_v58 = vld [vmem:[%s6938_s24 + $0x60] sm:$0xff] }
 0x3de   : > { %v5010_v48 = vmul.f32 %v6376_v36, %v8351_v25  ;;  %v5090_v36 = vld [vmem:[%s6938_s24 + $0x78] sm:$0xff] }
 0x3df   : > { %5171 = vst.msk [vmem:[%s8371_s25] sm:$0xff] %vm458_vm0, %v5139_v29  ;;  %v5142_v45 = vmax.f32 %v5110_v1, 0.0  ;;  %v5108_v56 = vadd.f32 %v5076_v18, %v5044_v50  ;;  %v4886_v44 = vpop.f32.mrf.mxu1 }
 0x3e0   : > { %v5049_v62 = vadd.f32 %v8356_v46, %v5010_v48  ;;  %v5008_v9 = vmul.f32 %v8351_v25, %v4886_v44 }
 0x3e1   : > { %5174 = vst.msk [vmem:[%s8371_s25 + $0x18] sm:$0xff] %vm458_vm0, %v5142_v45  ;;  %v5140_v7 = vmax.f32 %v5108_v56, 0.0  ;;  %v6377_v20 = vpop.f32.mrf.mxu1 }
 0x3e2   : > { %v5113_v8 = vadd.f32 %v5081_v39, %v5049_v62  ;;  %v5047_v61 = vadd.f32 %v8356_v46, %v5008_v9  ;;  %v5011_v5 = vmul.f32 %v6377_v20, %v8351_v25  ;;  %v5088_v62 = vld [vmem:[%s6938_s24 + $0x68] sm:$0xff] }
 0x3e3   : > { %5172 = vst.msk [vmem:[%s8371_s25 + $0x8] sm:$0xff] %vm458_vm0, %v5140_v7  ;;  %v4889_v13 = vpop.f32.mrf.mxu1 }
 0x3e4   : > { %v5145_v63 = vmax.f32 %v5113_v8, 0.0  ;;  %v5111_v16 = vadd.f32 %v5079_v6, %v5047_v61  ;;  %v5050_v52 = vadd.f32 %v8356_v46, %v5011_v5  ;;  %v5009_v21 = vmul.f32 %v8351_v25, %v4889_v13  ;;  %v5093_v61 = vld [vmem:[%s6938_s24 + $0x90] sm:$0xff] }
 0x3e5   : > { %v6380_v53 = vpop.f32.mrf.mxu1 }
 0x3e6   : > { %5177 = vst.msk [vmem:[%s8371_s25 + $0x30] sm:$0xff] %vm458_vm0, %v5145_v63  ;;  %v5143_v57 = vmax.f32 %v5111_v16, 0.0  ;;  %v5114_v43 = vadd.f32 %v5082_v35, %v5050_v52  ;;  %v5048_v60 = vadd.f32 %v8356_v46, %v5009_v21  ;;  %v5014_v54 = vmul.f32 %v6380_v53, %v8351_v25  ;;  %v5091_v52 = vld [vmem:[%s6938_s24 + $0x80] sm:$0xff] }
 0x3e7   : > { %v4902_v3 = vpop.f32.mrf.mxu1 }
 0x3e8   : > { %5175 = vst.msk [vmem:[%s8371_s25 + $0x20] sm:$0xff] %vm458_vm0, %v5143_v57  ;;  %v5146_v17 = vmax.f32 %v5114_v43, 0.0  ;;  %v5112_v51 = vadd.f32 %v5080_v27, %v5048_v60  ;;  %v5053_v41 = vadd.f32 %v8356_v46, %v5014_v54  ;;  %v5012_v26 = vmul.f32 %v8351_v25, %v4902_v3  ;;  %v5094_v60 = vld [vmem:[%s6938_s24 + $0x98] sm:$0xff] }
 0x3e9   : > { %v6381_v23 = vpop.f32.mrf.mxu1 }
 0x3ea   : > { %5178 = vst.msk [vmem:[%s8371_s25 + $0x38] sm:$0xff] %vm458_vm0, %v5146_v17  ;;  %v5144_v40 = vmax.f32 %v5112_v51, 0.0  ;;  %v5117_v24 = vadd.f32 %v5085_v0, %v5053_v41  ;;  %v5051_v31 = vadd.f32 %v8356_v46, %v5012_v26  ;;  %v5015_v22 = vmul.f32 %v6381_v23, %v8351_v25  ;;  %v5092_v41 = vld [vmem:[%s6938_s24 + $0x88] sm:$0xff] }
 0x3eb   : > { %v4905_v15 = vpop.f32.mrf.mxu1 }
 0x3ec   : > { %5176 = vst.msk [vmem:[%s8371_s25 + $0x28] sm:$0xff] %vm458_vm0, %v5144_v40  ;;  %v5149_v47 = vmax.f32 %v5117_v24, 0.0  ;;  %v5115_v30 = vadd.f32 %v5083_v49, %v5051_v31  ;;  %v5054_v28 = vadd.f32 %v8356_v46, %v5015_v22  ;;  %v5013_v33 = vmul.f32 %v8351_v25, %v4905_v15  ;;  %v5097_v31 = vld [vmem:[%s6938_s24 + $0xb0] sm:$0xff] }
 0x3ed   : > { %v6384_v4 = vpop.f32.mrf.mxu1 }
 0x3ee   : > { %5181 = vst.msk [vmem:[%s8371_s25 + $0x50] sm:$0xff] %vm458_vm0, %v5149_v47  ;;  %v5147_v32 = vmax.f32 %v5115_v30, 0.0  ;;  %v5118_v38 = vadd.f32 %v5086_v55, %v5054_v28  ;;  %v5052_v37 = vadd.f32 %v8356_v46, %v5013_v33  ;;  %v5018_v2 = vmul.f32 %v6384_v4, %v8351_v25  ;;  %v5095_v28 = vld [vmem:[%s6938_s24 + $0xa0] sm:$0xff] }
 0x3ef   : > { %v4918_v19 = vpop.f32.mrf.mxu1 }
 0x3f0   : > { %5179 = vst.msk [vmem:[%s8371_s25 + $0x40] sm:$0xff] %vm458_vm0, %v5147_v32  ;;  %v5150_v34 = vmax.f32 %v5118_v38, 0.0  ;;  %v5116_v10 = vadd.f32 %v5084_v59, %v5052_v37  ;;  %v5057_v14 = vadd.f32 %v8356_v46, %v5018_v2  ;;  %v5016_v42 = vmul.f32 %v8351_v25, %v4918_v19  ;;  %v5098_v37 = vld [vmem:[%s6938_s24 + $0xb8] sm:$0xff] }
 0x3f1   : > { %v6385_v12 = vpop.f32.mrf.mxu1 }
 0x3f2   : > { %5182 = vst.msk [vmem:[%s8371_s25 + $0x58] sm:$0xff] %vm458_vm0, %v5150_v34  ;;  %v5148_v18 = vmax.f32 %v5116_v10, 0.0  ;;  %v5121_v29 = vadd.f32 %v5089_v11, %v5057_v14  ;;  %v5055_v1 = vadd.f32 %v8356_v46, %v5016_v42  ;;  %v5019_v50 = vmul.f32 %v6385_v12, %v8351_v25  ;;  %v5096_v14 = vld [vmem:[%s6938_s24 + $0xa8] sm:$0xff] }
 0x3f3   : > { %v4921_v48 = vpop.f32.mrf.mxu1 }
 0x3f4   : > { %5180 = vst.msk [vmem:[%s8371_s25 + $0x48] sm:$0xff] %vm458_vm0, %v5148_v18  ;;  %v5153_v45 = vmax.f32 %v5121_v29, 0.0  ;;  %v5119_v56 = vadd.f32 %v5087_v58, %v5055_v1  ;;  %v5058_v39 = vadd.f32 %v8356_v46, %v5019_v50  ;;  %v5017_v44 = vmul.f32 %v8351_v25, %v4921_v48  ;;  %v5101_v1 = vld [vmem:[%s6938_s24 + $0xd0] sm:$0xff] }
 0x3f5   : > { %v6388_v9 = vpop.f32.mrf.mxu1 }
 0x3f6   : > { %5185 = vst.msk [vmem:[%s8371_s25 + $0x70] sm:$0xff] %vm458_vm0, %v5153_v45  ;;  %v5151_v7 = vmax.f32 %v5119_v56, 0.0  ;;  %v5122_v6 = vadd.f32 %v5090_v36, %v5058_v39  ;;  %v5056_v20 = vadd.f32 %v8356_v46, %v5017_v44  ;;  %v5022_v8 = vmul.f32 %v6388_v9, %v8351_v25  ;;  %v5099_v39 = vld [vmem:[%s6938_s24 + $0xc0] sm:$0xff] }
 0x3f7   : > { %v4934_v5 = vpop.f32.mrf.mxu1 }
 0x3f8   : > { %5183 = vst.msk [vmem:[%s8371_s25 + $0x60] sm:$0xff] %vm458_vm0, %v5151_v7  ;;  %v5154_v35 = vmax.f32 %v5122_v6, 0.0  ;;  %v5120_v13 = vadd.f32 %v5088_v62, %v5056_v20  ;;  %v5061_v63 = vadd.f32 %v8356_v46, %v5022_v8  ;;  %v5020_v16 = vmul.f32 %v8351_v25, %v4934_v5  ;;  %v5102_v20 = vld [vmem:[%s6938_s24 + $0xd8] sm:$0xff] }
 0x3f9   : > { %v6389_v21 = vpop.f32.mrf.mxu1 }
 0x3fa   : > { %5186 = vst.msk [vmem:[%s8371_s25 + $0x78] sm:$0xff] %vm458_vm0, %v5154_v35  ;;  %v5152_v27 = vmax.f32 %v5120_v13, 0.0  ;;  %v5125_v53 = vadd.f32 %v5093_v61, %v5061_v63  ;;  %v5059_v57 = vadd.f32 %v8356_v46, %v5020_v16  ;;  %v5023_v43 = vmul.f32 %v6389_v21, %v8351_v25  ;;  %v5100_v63 = vld [vmem:[%s6938_s24 + $0xc8] sm:$0xff] }
 0x3fb   : > { %v4937_v54 = vpop.f32.mrf.mxu1 }
 0x3fc   : > { %5184 = vst.msk [vmem:[%s8371_s25 + $0x68] sm:$0xff] %vm458_vm0, %v5152_v27  ;;  %v5157_v0 = vmax.f32 %v5125_v53, 0.0  ;;  %v5123_v3 = vadd.f32 %v5091_v52, %v5059_v57  ;;  %v5062_v17 = vadd.f32 %v8356_v46, %v5023_v43  ;;  %v5021_v51 = vmul.f32 %v8351_v25, %v4937_v54  ;;  %v5105_v57 = vld [vmem:[%s6938_s24 + $0xf0] sm:$0xff] }
 0x3fd   : > { %v6392_v26 = vpop.f32.mrf.mxu1 }
 0x3fe   : > { %5189 = vst.msk [vmem:[%s8371_s25 + $0x90] sm:$0xff] %vm458_vm0, %v5157_v0  ;;  %v5155_v49 = vmax.f32 %v5123_v3, 0.0  ;;  %v5126_v23 = vadd.f32 %v5094_v60, %v5062_v17  ;;  %v5060_v40 = vadd.f32 %v8356_v46, %v5021_v51  ;;  %v5026_v24 = vmul.f32 %v6392_v26, %v8351_v25  ;;  %v5103_v17 = vld [vmem:[%s6938_s24 + $0xe0] sm:$0xff] }
 0x3ff   : > { %v4950_v22 = vpop.f32.mrf.mxu1 }
 0x400   : > { %5187 = vst.msk [vmem:[%s8371_s25 + $0x80] sm:$0xff] %vm458_vm0, %v5155_v49  ;;  %v5158_v55 = vmax.f32 %v5126_v23, 0.0  ;;  %v5124_v15 = vadd.f32 %v5092_v41, %v5060_v40  ;;  %v5065_v47 = vadd.f32 %v8356_v46, %v5026_v24  ;;  %v5024_v30 = vmul.f32 %v8351_v25, %v4950_v22  ;;  %v5106_v40 = vld [vmem:[%s6938_s24 + $0xf8] sm:$0xff] }
 0x401   : > { %v6393_v33 = vpop.f32.mrf.mxu1 }
 0x402   : > { %5190 = vst.msk [vmem:[%s8371_s25 + $0x98] sm:$0xff] %vm458_vm0, %v5158_v55  ;;  %v5156_v59 = vmax.f32 %v5124_v15, 0.0  ;;  %v5129_v4 = vadd.f32 %v5097_v31, %v5065_v47  ;;  %v5063_v32 = vadd.f32 %v8356_v46, %v5024_v30  ;;  %v5027_v38 = vmul.f32 %v6393_v33, %v8351_v25  ;;  %v5104_v47 = vld [vmem:[%s6938_s24 + $0xe8] sm:$0xff]  ;;  %s6681_s24 = scalar_lea.vmem %s8525_s12, 4096 }
 0x403   : > { %v4953_v2 = vpop.f32.mrf.mxu1  ;;  %p6682_p3 = scmp.ne.s32.totalorder %s8525_s12, %s6681_s24  ;;  %p6689_p2 = scmp.lt.s32.totalorder %s6687_s29, %s6681_s24 }
 0x404   : > { %5188 = vst.msk [vmem:[%s8371_s25 + $0x88] sm:$0xff] %vm458_vm0, %v5156_v59  ;;  %v5161_v11 = vmax.f32 %v5129_v4, 0.0  ;;  %v5127_v19 = vadd.f32 %v5095_v28, %v5063_v32  ;;  %v5066_v34 = vadd.f32 %v8356_v46, %v5027_v38  ;;  %v5025_v10 = vmul.f32 %v8351_v25, %v4953_v2 }
 0x405   : > { %v6396_v42 = vpop.f32.mrf.mxu1  ;;  %p6683_p7 = pnand %p6682_p3, %p8667_p11  ;;  %p6690_p13 = por %p6689_p2, %p6688_p10 }
 0x406   : > { %5193 = vst.msk [vmem:[%s8371_s25 + $0xb0] sm:$0xff] %vm458_vm0, %v5161_v11  ;;  %v5159_v58 = vmax.f32 %v5127_v19, 0.0  ;;  %v5130_v12 = vadd.f32 %v5098_v37, %v5066_v34  ;;  %v5064_v18 = vadd.f32 %v8356_v46, %v5025_v10  ;;  %v5030_v29 = vmul.f32 %v6396_v42, %v8351_v25 }
 0x407   : > { %v4966_v50 = vpop.f32.mrf.mxu1  ;;  %p6684_p12 = pneg %p6683_p7 }
 0x408   : > { %5191 = vst.msk [vmem:[%s8371_s25 + $0xa0] sm:$0xff] %vm458_vm0, %v5159_v58  ;;  %v5162_v36 = vmax.f32 %v5130_v12, 0.0  ;;  %v5128_v48 = vadd.f32 %v5096_v14, %v5064_v18  ;;  %v5069_v45 = vadd.f32 %v8356_v46, %v5030_v29  ;;  %v5028_v56 = vmul.f32 %v8351_v25, %v4966_v50 }
 0x409   : > { %v6397_v44 = vpop.f32.mrf.mxu1  ;;  %p6691_p0 = pnand %p6690_p13, %p6684_p12 }
 0x40a   : > { %5194 = vst.msk [vmem:[%s8371_s25 + $0xb8] sm:$0xff] %vm458_vm0, %v5162_v36  ;;  %v5160_v62 = vmax.f32 %v5128_v48, 0.0  ;;  %v5133_v9 = vadd.f32 %v5101_v1, %v5069_v45  ;;  %v5067_v7 = vadd.f32 %v8356_v46, %v5028_v56  ;;  %v5031_v6 = vmul.f32 %v6397_v44, %v8351_v25 }
 0x40b   : > { %v4969_v8 = vpop.f32.mrf.mxu1 }
 0x40c   : > { %5192 = vst.msk [vmem:[%s8371_s25 + $0xa8] sm:$0xff] %vm458_vm0, %v5160_v62  ;;  %v5165_v61 = vmax.f32 %v5133_v9, 0.0  ;;  %v5131_v5 = vadd.f32 %v5099_v39, %v5067_v7  ;;  %v5070_v35 = vadd.f32 %v8356_v46, %v5031_v6  ;;  %v5029_v13 = vmul.f32 %v8351_v25, %v4969_v8 }
 0x40d   : > { %v6400_v16 = vpop.f32.mrf.mxu1 }
 0x40e   : > { %5197 = vst.msk [vmem:[%s8371_s25 + $0xd0] sm:$0xff] %vm458_vm0, %v5165_v61  ;;  %v5163_v52 = vmax.f32 %v5131_v5, 0.0  ;;  %v5134_v21 = vadd.f32 %v5102_v20, %v5070_v35  ;;  %v5068_v27 = vadd.f32 %v8356_v46, %v5029_v13  ;;  %v5034_v53 = vmul.f32 %v6400_v16, %v8351_v25 }
 0x40f   : > { %v4982_v43 = vpop.f32.mrf.mxu1 }
 0x410   : > { %5195 = vst.msk [vmem:[%s8371_s25 + $0xc0] sm:$0xff] %vm458_vm0, %v5163_v52  ;;  %v5166_v60 = vmax.f32 %v5134_v21, 0.0  ;;  %v5132_v54 = vadd.f32 %v5100_v63, %v5068_v27  ;;  %v5073_v0 = vadd.f32 %v8356_v46, %v5034_v53  ;;  %v5032_v3 = vmul.f32 %v8351_v25, %v4982_v43 }
 0x411   : > { %v6401_v51 = vpop.f32.mrf.mxu1 }
 0x412   : > { %5198 = vst.msk [vmem:[%s8371_s25 + $0xd8] sm:$0xff] %vm458_vm0, %v5166_v60  ;;  %v5164_v41 = vmax.f32 %v5132_v54, 0.0  ;;  %v5137_v26 = vadd.f32 %v5105_v57, %v5073_v0  ;;  %v5071_v49 = vadd.f32 %v8356_v46, %v5032_v3  ;;  %v5035_v23 = vmul.f32 %v6401_v51, %v8351_v25 }
 0x413   : > { %v4985_v24 = vpop.f32.mrf.mxu1 }
 0x414   : > { %5196 = vst.msk [vmem:[%s8371_s25 + $0xc8] sm:$0xff] %vm458_vm0, %v5164_v41  ;;  %v5169_v31 = vmax.f32 %v5137_v26, 0.0  ;;  %v5135_v22 = vadd.f32 %v5103_v17, %v5071_v49  ;;  %v5074_v55 = vadd.f32 %v8356_v46, %v5035_v23  ;;  %v5033_v15 = vmul.f32 %v8351_v25, %v4985_v24 }
 0x416   : > { %5201 = vst.msk [vmem:[%s8371_s25 + $0xf0] sm:$0xff] %vm458_vm0, %v5169_v31  ;;  %v5167_v30 = vmax.f32 %v5135_v22, 0.0  ;;  %v5138_v28 = vadd.f32 %v5106_v40, %v5074_v55  ;;  %v5072_v33 = vadd.f32 %v8356_v46, %v5033_v15 }
 0x418   : > { %5199 = vst.msk [vmem:[%s8371_s25 + $0xe0] sm:$0xff] %vm458_vm0, %v5167_v30  ;;  %v5170_v59 = vmax.f32 %v5138_v28, 0.0  ;;  %v5136_v4 = vadd.f32 %v5104_v47, %v5072_v33 }
 0x41a   : > { %5202 = vst.msk [vmem:[%s8371_s25 + $0xf8] sm:$0xff] %vm458_vm0, %v5170_v59  ;;  %v5168_v25 = vmax.f32 %v5136_v4, 0.0 }
 0x41c   : > { %5200 = vst.msk [vmem:[%s8371_s25 + $0xe8] sm:$0xff] %vm458_vm0, %v5168_v25 }
 0x41d   : > { %6694 = shalt.err (!%p6691_p0)
}
 0x41e   : > { %s6695_s28 = scalar_lea.hbm %s8523_s26, 4096  ;;  %s6699_s30 = scalar_lea.hbm %s8582_s10, 8192 }
 0x41f   : > { %p6696_p5 = scmp.ne.s32.totalorder %s8523_s26, %s6695_s28  ;;  %p6700_p4 = scmp.lt.s32.totalorder %s8523_s26, %s8582_s10 }
 0x420   : > { %p6701_p6 = scmp.lt.s32.totalorder %s6699_s30, %s6695_s28 }
 0x421   : > { %p6697_p9 = pnand %p6696_p5, %p8667_p11 }
 0x422   : > { %p6702_p8 = por %p6701_p6, %p6700_p4 }
 0x423   : > { %p6698_p1 = pneg %p6697_p9 }
 0x425   : > { %p6703_p3 = pnand %p6702_p8, %p6698_p1 }
 0x427   : > { %6706 = shalt.err (!%p6703_p3)
}
 0x428   : > { %s6759_s21 = smov 128   ;;  %s6760_s11 = smov 8  }
 0x429   : > { %6421 = dma.vmem_to_hbm [thread:$0]  (%p8667_p11), %s8525_s12, 4096, %s8523_s26, %s5204_s17, %s6759_s21, %s6759_s21, %s6760_s11  }
 0x42a PF: > { %s8668_s24 = sld [smem:[#allocation12_spill]]  ;;  %p8671_p12 = scmp.ge.s32.totalorder %s6749_s16, 2 }
 0x42b   : > { %s8669_s27 = sld [smem:[#allocation13_spill]] }
 0x430   : > { %s5232_s19 = sand.u32 1, %s8668_s24  }
 0x431   : > { %p8670_p7 = scmp.ne.s32.totalorder %s8669_s27, 0  ;;  %s5233_s29 = scalar_lea.sflag [#allocation5], %s5232_s19 }
 0x433   : > { %p6432_p10 = pnand %p8671_p12, %p8670_p7 }
 0x435   : > { %p6433_p2 = pneg %p6432_p10 }
 0x437   : > { %6732 = dma.done.wait (%p6433_p2), %s5233_s29, 4096  }
 0x438   : > { %6734 = vsyncadd (%p6433_p2), %s5233_s29, 4294963200  ;;  %s8672_s16 = sld [smem:[#allocation14_spill]]  ;;  %s8673_s13 = smov %s6741_s14 }
 0x439   : > { %s8674_s14 = smov %s6745_s15  ;;  %s8675_s15 = smov %s6887_s18 }
 0x43e   : > { %p24_p13 = scmp.ge.s32.totalorder %s8672_s16, 4  }
 0x440   :  { %26 = sbr.rel (!%p24_p13) target bundleno = 8 (0x8), region = 119 }
 0x445   :  { %5238 = vsyncpa [#allocation4], 1 }
 0x446   :  { %5240 = vsyncpa [#allocation4 + $0x1], 1 }
 0x447   :  { %5241 = vsyncpa [#allocation7], 1 }
 0x448   :  { %5242 = vsyncpa [#allocation5], 1 }
 0x449   :  { %5244 = vsyncpa [#allocation5 + $0x1], 1 }

</bundles_post_ra>
